<compile_context>
chip_gen: v5e
topology: v5e:2x2
jax: 0.10.0
libtpu: 0.0.40
codegen_flags: <defaults>
</compile_context>

<pallas_src>
import functools

import jax
import jax.numpy as jnp
from jax.experimental import pallas as pl
from jax.experimental.pallas import tpu as pltpu


def _round_up(n, m):
    return (n + m - 1) // m * m


def _vae_kernel(x_ref, eps_ref,
                w1_ref, b1_ref,
                wh_ref, bh_ref,
                w3_ref, b3_ref,
                w4_ref, b4_ref,
                recon_ref, head_ref):
    # x: [TB, 784] bf16
    x = x_ref[...]

    # encode: h1 = relu(x @ W1 + b1)   -> [TB, 512] (cols 400:512 are zero-pad)
    h1 = jnp.dot(x, w1_ref[...], preferred_element_type=jnp.float32) + b1_ref[...]
    h1 = jnp.maximum(h1, 0.0)

    # fused head: [TB, 256]; lanes 0:20 = mu, lanes 128:148 = logvar, rest 0.
    head = jnp.dot(h1.astype(jnp.bfloat16), wh_ref[...],
                   preferred_element_type=jnp.float32) + bh_ref[...]
    head_ref[...] = head

    mu = head[:, :128]        # valid in lanes 0:20, zero elsewhere
    logvar = head[:, 128:]    # valid in lanes 0:20, zero elsewhere

    # reparameterize (f32): z = mu + eps * exp(0.5 * logvar)
    # padded lanes: mu=0, eps=0, logvar=0 -> std=1 -> z=0, so padding stays exact.
    std = jnp.exp(0.5 * logvar)
    z = mu + eps_ref[...] * std                      # [TB, 128]

    # decode: sigmoid(relu(z @ W3 + b3) @ W4 + b4)
    h3 = jnp.dot(z.astype(jnp.bfloat16), w3_ref[...],
                 preferred_element_type=jnp.float32) + b3_ref[...]
    h3 = jnp.maximum(h3, 0.0)                        # [TB, 512]
    logits = jnp.dot(h3.astype(jnp.bfloat16), w4_ref[...],
                     preferred_element_type=jnp.float32) + b4_ref[...]  # [TB, 896]

    recon_ref[...] = jax.nn.sigmoid(logits)


def prepare_params(params):
    """Fuse/pad/cast raw [in,out] f32 params into kernel layout (do this once)."""
    def pad2(w, rows, cols):
        r, c = w.shape
        return jnp.pad(w, ((0, rows - r), (0, cols - c)))

    w1 = pad2(params["w1"], 784, 512).astype(jnp.bfloat16)     # [784, 512]
    b1 = pad2(params["b1"], 1, 512).astype(jnp.float32)

    # fused encoder head: cols 0:20 = fc21 (mu), cols 128:148 = fc22 (logvar)
    wh = jnp.zeros((512, 256), jnp.float32)
    wh = wh.at[:400, 0:20].set(params["w21"])
    wh = wh.at[:400, 128:148].set(params["w22"])
    wh = wh.astype(jnp.bfloat16)
    bh = jnp.zeros((1, 256), jnp.float32)
    bh = bh.at[:, 0:20].set(params["b21"])
    bh = bh.at[:, 128:148].set(params["b22"])

    w3 = pad2(params["w3"], 128, 512).astype(jnp.bfloat16)     # [128, 512]
    b3 = pad2(params["b3"], 1, 512).astype(jnp.float32)
    w4 = pad2(params["w4"], 512, 896).astype(jnp.bfloat16)     # [512, 896]
    b4 = pad2(params["b4"], 1, 896).astype(jnp.float32)
    return dict(w1=w1, b1=b1, wh=wh, bh=bh, w3=w3, b3=b3, w4=w4, b4=b4)


@functools.partial(jax.jit, static_argnames=("tb",))
def vae_forward(x_nchw, eps, prep, *, tb=256):
    """Full VAE forward in one Pallas call.

    x_nchw: [B, 1, 28, 28] f32   (flattened like x.view(-1, 784))
    eps:    [B, 20] f32          (the torch.randn_like noise, explicit)
    prep:   output of prepare_params(...)
    returns (recon [B,784], mu [B,20], logvar [B,20]) in f32
    """
    B = x_nchw.shape[0]
    x = x_nchw.reshape(B, 784)

    tb = min(tb, _round_up(B, 8))     # batch tile (>= 8 sublanes)
    Bp = _round_up(B, tb)

    xp = jnp.zeros((Bp, 784), jnp.bfloat16).at[:B].set(x.astype(jnp.bfloat16))
    epsp = jnp.zeros((Bp, 128), jnp.float32).at[:B, :20].set(eps)

    row_map = lambda i: (i, 0)
    const_map = lambda i: (0, 0)      # weights: same block every step -> VMEM-resident

    def full_spec(a):
        return pl.BlockSpec(a.shape, const_map)

    in_specs = [
        pl.BlockSpec((tb, 784), row_map),        # x
        pl.BlockSpec((tb, 128), row_map),        # eps (padded)
        full_spec(prep["w1"]), full_spec(prep["b1"]),
        full_spec(prep["wh"]), full_spec(prep["bh"]),
        full_spec(prep["w3"]), full_spec(prep["b3"]),
        full_spec(prep["w4"]), full_spec(prep["b4"]),
    ]
    out_specs = (
        pl.BlockSpec((tb, 896), row_map),        # recon (lane-padded)
        pl.BlockSpec((tb, 256), row_map),        # fused head (mu | logvar)
    )
    out_shapes = (
        jax.ShapeDtypeStruct((Bp, 896), jnp.float32),
        jax.ShapeDtypeStruct((Bp, 256), jnp.float32),
    )

    recon_p, head_p = pl.pallas_call(
        _vae_kernel,
        out_shape=out_shapes,
        grid_spec=pltpu.PrefetchScalarGridSpec(
            num_scalar_prefetch=0,
            grid=(Bp // tb,),
            in_specs=in_specs,
            out_specs=out_specs,
        ),
        compiler_params=pltpu.CompilerParams(
            dimension_semantics=("parallel",),
            vmem_limit_bytes=24 << 20,
        ),
    )(xp, epsp,
      prep["w1"], prep["b1"], prep["wh"], prep["bh"],
      prep["w3"], prep["b3"], prep["w4"], prep["b4"])

    recon = recon_p[:B, :784]
    mu = head_p[:B, 0:20]
    logvar = head_p[:B, 128:148]
    return recon, mu, logvar


def init_params(key):
    """Param init mirroring the nn.Linear shapes (weights stored [in, out])."""
    dims = {
        "fc1": (784, 400),
        "fc21": (400, 20),
        "fc22": (400, 20),
        "fc3": (20, 400),
        "fc4": (400, 784),
    }
    params = {}
    keys = jax.random.split(key, len(dims))
    name_map = {"fc1": "1", "fc21": "21", "fc22": "22", "fc3": "3", "fc4": "4"}
    for (name, (fan_in, fan_out)), k in zip(dims.items(), keys):
        kw, kb = jax.random.split(k)
        bound = 1.0 / jnp.sqrt(fan_in)  # PyTorch Linear default uniform bound
        w = jax.random.uniform(kw, (fan_in, fan_out), jnp.float32, -bound, bound)
        b = jax.random.uniform(kb, (1, fan_out), jnp.float32, -bound, bound)
        params["w" + name_map[name]] = w
        params["b" + name_map[name]] = b
    return params


def vae_reference(x_nchw, eps, params):
    """Plain-JAX reference with the same bf16 matmul-operand casts as the kernel."""
    B = x_nchw.shape[0]
    x = x_nchw.reshape(B, 784)

    def mm(a, w):
        return jnp.dot(a.astype(jnp.bfloat16), w.astype(jnp.bfloat16),
                       preferred_element_type=jnp.float32)

    h1 = jnp.maximum(mm(x, params["w1"]) + params["b1"], 0.0)
    mu = mm(h1, params["w21"]) + params["b21"]
    logvar = mm(h1, params["w22"]) + params["b22"]
    z = mu + eps * jnp.exp(0.5 * logvar)
    h3 = jnp.maximum(mm(z, params["w3"]) + params["b3"], 0.0)
    recon = jax.nn.sigmoid(mm(h3, params["w4"]) + params["b4"])
    return recon, mu, logvar


if __name__ == "__main__":
    key = jax.random.PRNGKey(0)
    k_params, k_x, k_eps = jax.random.split(key, 3)

    B = 2
    x = jax.random.uniform(k_x, (B, 1, 28, 28), jnp.float32)   # MNIST-like NCHW
    eps = jax.random.normal(k_eps, (B, 20), jnp.float32)       # reparam noise
    params = init_params(k_params)
    prep = prepare_params(params)                              # fuse/pad/bf16 once

    recon, mu, logvar = jax.block_until_ready(vae_forward(x, eps, prep))

    # sanity check against a bf16-matched plain-JAX reference
    r_ref, mu_ref, lv_ref = vae_reference(x, eps, params)
    assert recon.shape == (B, 784) and mu.shape == (B, 20) and logvar.shape == (B, 20)
    assert jnp.allclose(recon, r_ref, atol=1e-2)
    assert jnp.allclose(mu, mu_ref, atol=1e-2)
    assert jnp.allclose(logvar, lv_ref, atol=1e-2)

    print("KERNEL_OK")
</pallas_src>

<mosaic_0001>
module attributes {stable_mosaic.version = 11 : i64} {
  func.func @_vae_kernel(%arg0: i32, %arg1: memref<8x784xbf16, #tpu.memory_space<vmem>>, %arg2: memref<8x128xf32, #tpu.memory_space<vmem>>, %arg3: memref<784x512xbf16, #tpu.memory_space<vmem>>, %arg4: memref<1x512xf32, #tpu.memory_space<vmem>>, %arg5: memref<512x256xbf16, #tpu.memory_space<vmem>>, %arg6: memref<1x256xf32, #tpu.memory_space<vmem>>, %arg7: memref<128x512xbf16, #tpu.memory_space<vmem>>, %arg8: memref<1x512xf32, #tpu.memory_space<vmem>>, %arg9: memref<512x896xbf16, #tpu.memory_space<vmem>>, %arg10: memref<1x896xf32, #tpu.memory_space<vmem>>, %arg11: memref<8x896xf32, #tpu.memory_space<vmem>>, %arg12: memref<8x256xf32, #tpu.memory_space<vmem>>) attributes {dimension_semantics = [#tpu.dimension_semantics<parallel>], iteration_bounds = array<i64: 1>, scalar_prefetch = 0 : i64, scratch_operands = 0 : i64, tpu.core_type = #tpu.core_type<tc>, window_params = [{transform_indices = @transform_0, window_bounds = array<i64: 8, 784>}, {transform_indices = @transform_1, window_bounds = array<i64: 8, 128>}, {pipeline_mode = #tpu.pipeline_mode<synchronous>, transform_indices = @transform_2, window_bounds = array<i64: 784, 512>}, {pipeline_mode = #tpu.pipeline_mode<synchronous>, transform_indices = @transform_3, window_bounds = array<i64: 1, 512>}, {pipeline_mode = #tpu.pipeline_mode<synchronous>, transform_indices = @transform_4, window_bounds = array<i64: 512, 256>}, {pipeline_mode = #tpu.pipeline_mode<synchronous>, transform_indices = @transform_5, window_bounds = array<i64: 1, 256>}, {pipeline_mode = #tpu.pipeline_mode<synchronous>, transform_indices = @transform_6, window_bounds = array<i64: 128, 512>}, {pipeline_mode = #tpu.pipeline_mode<synchronous>, transform_indices = @transform_7, window_bounds = array<i64: 1, 512>}, {pipeline_mode = #tpu.pipeline_mode<synchronous>, transform_indices = @transform_8, window_bounds = array<i64: 512, 896>}, {pipeline_mode = #tpu.pipeline_mode<synchronous>, transform_indices = @transform_9, window_bounds = array<i64: 1, 896>}, {transform_indices = @transform_10, window_bounds = array<i64: 8, 896>}, {transform_indices = @transform_11, window_bounds = array<i64: 8, 256>}]} {
    %c0 = arith.constant 0 : index
    %c0_0 = arith.constant 0 : index
    %0 = vector.load %arg1[%c0, %c0_0] : memref<8x784xbf16, #tpu.memory_space<vmem>>, vector<8x784xbf16>
    %c0_1 = arith.constant 0 : index
    %c0_2 = arith.constant 0 : index
    %1 = vector.load %arg3[%c0_1, %c0_2] : memref<784x512xbf16, #tpu.memory_space<vmem>>, vector<784x512xbf16>
    %cst = arith.constant dense<0.000000e+00> : vector<8x512xf32>
    %2 = tpu.matmul %0, %1, %cst {dimension_numbers = #tpu.dot_dimension_numbers<[1], [0], [0], [1], [0, 0, 1, 1], [], []>} : vector<8x784xbf16>, vector<784x512xbf16>, vector<8x512xf32> -> vector<8x512xf32>
    %c0_3 = arith.constant 0 : index
    %c0_4 = arith.constant 0 : index
    %3 = vector.load %arg4[%c0_3, %c0_4] : memref<1x512xf32, #tpu.memory_space<vmem>>, vector<1x512xf32>
    %4 = vector.broadcast %3 : vector<1x512xf32> to vector<8x512xf32>
    %5 = arith.addf %2, %4 : vector<8x512xf32>
    %cst_5 = arith.constant 0.000000e+00 : f32
    %6 = vector.broadcast %cst_5 : f32 to vector<8x512xf32>
    %7 = arith.maximumf %5, %6 : vector<8x512xf32>
    %8 = arith.truncf %7 : vector<8x512xf32> to vector<8x512xbf16>
    %c0_6 = arith.constant 0 : index
    %c0_7 = arith.constant 0 : index
    %9 = vector.load %arg5[%c0_6, %c0_7] : memref<512x256xbf16, #tpu.memory_space<vmem>>, vector<512x256xbf16>
    %cst_8 = arith.constant dense<0.000000e+00> : vector<8x256xf32>
    %10 = tpu.matmul %8, %9, %cst_8 {dimension_numbers = #tpu.dot_dimension_numbers<[1], [0], [0], [1], [0, 0, 1, 1], [], []>} : vector<8x512xbf16>, vector<512x256xbf16>, vector<8x256xf32> -> vector<8x256xf32>
    %c0_9 = arith.constant 0 : index
    %c0_10 = arith.constant 0 : index
    %11 = vector.load %arg6[%c0_9, %c0_10] : memref<1x256xf32, #tpu.memory_space<vmem>>, vector<1x256xf32>
    %12 = vector.broadcast %11 : vector<1x256xf32> to vector<8x256xf32>
    %13 = arith.addf %10, %12 : vector<8x256xf32>
    %c0_11 = arith.constant 0 : index
    %c0_12 = arith.constant 0 : index
    %14 = vector.load %arg12[%c0_11, %c0_12] : memref<8x256xf32, #tpu.memory_space<vmem>>, vector<8x256xf32>
    tpu.vector_store %arg12[%c0_11, %c0_12], %13 {strides = array<i32>} : memref<8x256xf32, #tpu.memory_space<vmem>>, vector<8x256xf32>,
    %15 = vector.extract_strided_slice %13 {offsets = [0, 0], sizes = [8, 128], strides = [1, 1]} : vector<8x256xf32> to vector<8x128xf32>
    %16 = vector.extract_strided_slice %13 {offsets = [0, 128], sizes = [8, 128], strides = [1, 1]} : vector<8x256xf32> to vector<8x128xf32>
    %cst_13 = arith.constant 5.000000e-01 : f32
    %17 = vector.broadcast %cst_13 : f32 to vector<8x128xf32>
    %18 = arith.mulf %17, %16 : vector<8x128xf32>
    %19 = math.exp %18 : vector<8x128xf32>
    %c0_14 = arith.constant 0 : index
    %c0_15 = arith.constant 0 : index
    %20 = vector.load %arg2[%c0_14, %c0_15] : memref<8x128xf32, #tpu.memory_space<vmem>>, vector<8x128xf32>
    %21 = arith.mulf %20, %19 : vector<8x128xf32>
    %22 = arith.addf %15, %21 : vector<8x128xf32>
    %23 = arith.truncf %22 : vector<8x128xf32> to vector<8x128xbf16>
    %c0_16 = arith.constant 0 : index
    %c0_17 = arith.constant 0 : index
    %24 = vector.load %arg7[%c0_16, %c0_17] : memref<128x512xbf16, #tpu.memory_space<vmem>>, vector<128x512xbf16>
    %cst_18 = arith.constant dense<0.000000e+00> : vector<8x512xf32>
    %25 = tpu.matmul %23, %24, %cst_18 {dimension_numbers = #tpu.dot_dimension_numbers<[1], [0], [0], [1], [0, 0, 1, 1], [], []>} : vector<8x128xbf16>, vector<128x512xbf16>, vector<8x512xf32> -> vector<8x512xf32>
    %c0_19 = arith.constant 0 : index
    %c0_20 = arith.constant 0 : index
    %26 = vector.load %arg8[%c0_19, %c0_20] : memref<1x512xf32, #tpu.memory_space<vmem>>, vector<1x512xf32>
    %27 = vector.broadcast %26 : vector<1x512xf32> to vector<8x512xf32>
    %28 = arith.addf %25, %27 : vector<8x512xf32>
    %cst_21 = arith.constant 0.000000e+00 : f32
    %29 = vector.broadcast %cst_21 : f32 to vector<8x512xf32>
    %30 = arith.maximumf %28, %29 : vector<8x512xf32>
    %31 = arith.truncf %30 : vector<8x512xf32> to vector<8x512xbf16>
    %c0_22 = arith.constant 0 : index
    %c0_23 = arith.constant 0 : index
    %32 = vector.load %arg9[%c0_22, %c0_23] : memref<512x896xbf16, #tpu.memory_space<vmem>>, vector<512x896xbf16>
    %cst_24 = arith.constant dense<0.000000e+00> : vector<8x896xf32>
    %33 = tpu.matmul %31, %32, %cst_24 {dimension_numbers = #tpu.dot_dimension_numbers<[1], [0], [0], [1], [0, 0, 1, 1], [], []>} : vector<8x512xbf16>, vector<512x896xbf16>, vector<8x896xf32> -> vector<8x896xf32>
    %c0_25 = arith.constant 0 : index
    %c0_26 = arith.constant 0 : index
    %34 = vector.load %arg10[%c0_25, %c0_26] : memref<1x896xf32, #tpu.memory_space<vmem>>, vector<1x896xf32>
    %35 = vector.broadcast %34 : vector<1x896xf32> to vector<8x896xf32>
    %36 = arith.addf %33, %35 : vector<8x896xf32>
    %37 = arith.negf %36 : vector<8x896xf32>
    %38 = math.exp %37 : vector<8x896xf32>
    %cst_27 = arith.constant 1.000000e+00 : f32
    %39 = vector.broadcast %cst_27 : f32 to vector<8x896xf32>
    %40 = arith.addf %39, %38 : vector<8x896xf32>
    %41 = arith.divf %39, %40 : vector<8x896xf32>
    %c0_28 = arith.constant 0 : index
    %c0_29 = arith.constant 0 : index
    %42 = vector.load %arg11[%c0_28, %c0_29] : memref<8x896xf32, #tpu.memory_space<vmem>>, vector<8x896xf32>
    tpu.vector_store %arg11[%c0_28, %c0_29], %41 {strides = array<i32>} : memref<8x896xf32, #tpu.memory_space<vmem>>, vector<8x896xf32>,
    return
  }
  func.func @transform_0(%arg0: i32) -> (i32, i32) {
    %c0_i32 = arith.constant 0 : i32
    %c0_i32_0 = arith.constant 0 : i32
    return %arg0, %c0_i32 : i32, i32
  }
  func.func @transform_1(%arg0: i32) -> (i32, i32) {
    %c0_i32 = arith.constant 0 : i32
    %c0_i32_0 = arith.constant 0 : i32
    return %arg0, %c0_i32 : i32, i32
  }
  func.func @transform_2(%arg0: i32) -> (i32, i32) {
    %c0_i32 = arith.constant 0 : i32
    %c0_i32_0 = arith.constant 0 : i32
    %c0_i32_1 = arith.constant 0 : i32
    return %c0_i32, %c0_i32_0 : i32, i32
  }
  func.func @transform_3(%arg0: i32) -> (i32, i32) {
    %c0_i32 = arith.constant 0 : i32
    %c0_i32_0 = arith.constant 0 : i32
    %c0_i32_1 = arith.constant 0 : i32
    return %c0_i32, %c0_i32_0 : i32, i32
  }
  func.func @transform_4(%arg0: i32) -> (i32, i32) {
    %c0_i32 = arith.constant 0 : i32
    %c0_i32_0 = arith.constant 0 : i32
    %c0_i32_1 = arith.constant 0 : i32
    return %c0_i32, %c0_i32_0 : i32, i32
  }
  func.func @transform_5(%arg0: i32) -> (i32, i32) {
    %c0_i32 = arith.constant 0 : i32
    %c0_i32_0 = arith.constant 0 : i32
    %c0_i32_1 = arith.constant 0 : i32
    return %c0_i32, %c0_i32_0 : i32, i32
  }
  func.func @transform_6(%arg0: i32) -> (i32, i32) {
    %c0_i32 = arith.constant 0 : i32
    %c0_i32_0 = arith.constant 0 : i32
    %c0_i32_1 = arith.constant 0 : i32
    return %c0_i32, %c0_i32_0 : i32, i32
  }
  func.func @transform_7(%arg0: i32) -> (i32, i32) {
    %c0_i32 = arith.constant 0 : i32
    %c0_i32_0 = arith.constant 0 : i32
    %c0_i32_1 = arith.constant 0 : i32
    return %c0_i32, %c0_i32_0 : i32, i32
  }
  func.func @transform_8(%arg0: i32) -> (i32, i32) {
    %c0_i32 = arith.constant 0 : i32
    %c0_i32_0 = arith.constant 0 : i32
    %c0_i32_1 = arith.constant 0 : i32
    return %c0_i32, %c0_i32_0 : i32, i32
  }
  func.func @transform_9(%arg0: i32) -> (i32, i32) {
    %c0_i32 = arith.constant 0 : i32
    %c0_i32_0 = arith.constant 0 : i32
    %c0_i32_1 = arith.constant 0 : i32
    return %c0_i32, %c0_i32_0 : i32, i32
  }
  func.func @transform_10(%arg0: i32) -> (i32, i32) {
    %c0_i32 = arith.constant 0 : i32
    %c0_i32_0 = arith.constant 0 : i32
    return %arg0, %c0_i32 : i32, i32
  }
  func.func @transform_11(%arg0: i32) -> (i32, i32) {
    %c0_i32 = arith.constant 0 : i32
    %c0_i32_0 = arith.constant 0 : i32
    return %arg0, %c0_i32 : i32, i32
  }
}

</mosaic_0001>

<bundles_post_ra>
// kernel: vae_forward.1
= control target key start
LH: loop header
LB: loop body
LE: loop exit
PB: predicated region body
PF: predicated region fallthrough
CT: control target
= control target key end

     0   :  { %17 = vsyncpa [#allocation3], 0  ;;  %s7408_s0 = inlined_call_operand.vmem [shape: bf16[8,784], index: 0, kind: input, shape index: {}]   ;;  %s7409_s1 = inlined_call_operand.vmem [shape: f32[8,128], index: 1, kind: input, shape index: {}]   ;;  %s7410_s2 = inlined_call_operand.hbm [shape: bf16[784,512], index: 2, kind: input, shape index: {}]   ;;  %s7411_s3 = inlined_call_operand.vmem [shape: f32[1,512], index: 3, kind: input, shape index: {}]   ;;  %s7412_s4 = inlined_call_operand.hbm [shape: bf16[512,256], index: 4, kind: input, shape index: {}]   ;;  %s7413_s5 = inlined_call_operand.vmem [shape: f32[1,256], index: 5, kind: input, shape index: {}]   ;;  %s7414_s6 = inlined_call_operand.hbm [shape: bf16[128,512], index: 6, kind: input, shape index: {}]   ;;  %s7415_s7 = inlined_call_operand.vmem [shape: f32[1,512], index: 7, kind: input, shape index: {}]   ;;  %s7416_s8 = inlined_call_operand.hbm [shape: bf16[512,896], index: 8, kind: input, shape index: {}]   ;;  %s7417_s9 = inlined_call_operand.vmem [shape: f32[1,896], index: 9, kind: input, shape index: {}]   ;;  %s7418_s10 = inlined_call_operand.vmem [shape: f32[8,896], index: 10, kind: output, shape index: {0}]   ;;  %s7419_s11 = inlined_call_operand.vmem [shape: f32[8,256], index: 11, kind: output, shape index: {1}]  }
   0x1   :  { %18 = vsyncpa [#allocation5], 0  ;;  %s43_s19 = sshll.u32 %s7412_s4, 4  ;;  %s44_s19 = int_to_ptr.hbm [resolvable:$true] %s43_s19 }
   0x2   :  { %19 = vsyncpa [#allocation8], 0  ;;  %s7128_s20 = smov [#allocation4]   ;;  %s28_s24 = sshll.u32 %s7410_s2, 4  ;;  %s29_s24 = int_to_ptr.hbm [resolvable:$true] %s28_s24 }
   0x3   :  { %s45_s21 = sshll.u32 %s7128_s20, 4  ;;  %s7129_s25 = smov 128   ;;  %s46_s21 = int_to_ptr.vmem [resolvable:$true] %s45_s21 }
   0x4   :  { %s7130_s26 = smov 8   ;;  %s7131_s27 = smov [#allocation2]  }
   0x5   :  { %51 = dma.hbm_to_vmem [thread:$0]  %s44_s19, 8192, %s46_s21, [#allocation5], %s7129_s25, %s7129_s25, %s7130_s26  }
   0x6   :  { %s30_s28 = sshll.u32 %s7131_s27, 4  ;;  %s7132_s29 = smov 256   ;;  %s31_s28 = int_to_ptr.vmem [resolvable:$true] %s30_s28 }
   0x7   :  { %s7133_s30 = smov 16   ;;  %s58_s13 = sshll.u32 %s7414_s6, 4  ;;  %s59_s13 = int_to_ptr.hbm [resolvable:$true] %s58_s13 }
   0x8   :  { %36 = dma.hbm_to_vmem [thread:$0]  %s29_s24, 25088, %s31_s28, [#allocation3], %s7132_s29, %s7132_s29, %s7133_s30  }
   0x9   :  { %s7134_s14 = smov [#allocation6]   ;;  %s73_s17 = sshll.u32 %s7416_s8, 4  ;;  %s74_s17 = int_to_ptr.hbm [resolvable:$true] %s73_s17 }
   0xa   :  { %s60_s15 = sshll.u32 %s7134_s14, 4  ;;  %s7135_s18 = smov [#allocation7]   ;;  %s61_s15 = int_to_ptr.vmem [resolvable:$true] %s60_s15 }
   0xb   :  { %66 = dma.hbm_to_vmem [thread:$0]  %s59_s13, 4096, %s61_s15, [#allocation5], %s7132_s29, %s7132_s29, %s7133_s30  }
   0xc   :  { %s75_s19 = sshll.u32 %s7135_s18, 4  ;;  %s7136_s20 = smov 448   ;;  %s76_s19 = int_to_ptr.vmem [resolvable:$true] %s75_s19 }
   0xd   :  { %s7137_s21 = smov 28  }
   0xe   :  { %81 = dma.hbm_to_vmem [thread:$0]  %s74_s17, 28672, %s76_s19, [#allocation8], %s7136_s20, %s7136_s20, %s7137_s21  }
   0xf   :  { %7122 = dma.done.wait [#allocation3], 25088  }
  0x10   :  { %7123 = vsyncadd [#allocation3], 4294942208 }
  0x11   :  { %7124 = dma.done.wait [#allocation5], 12288  }
  0x12   :  { %7125 = vsyncadd [#allocation5], 4294955008 }
  0x13   :  { %7126 = dma.done.wait [#allocation8], 28672  }
  0x14   :  { %7127 = vsyncadd [#allocation8], 4294938624  ;;  %v4509_v0 = vld [vmem:[#allocation2 + $0xe0] sm:$0xf]  ;;  %v6500_v1 = vld [vmem:[#allocation2 + $0xec] sm:$0xf0] }
  0x15   :  { %v4637_v2 = vld [vmem:[#allocation2 + $0x1e0] sm:$0xf]  ;;  %v4510_v3 = vor.u32 %v6500_v1, %v4509_v0  ;;  %v6532_v4 = vld [vmem:[#allocation2 + $0x1ec] sm:$0xf0]  ;;  %vm1315_vm0 = vcmask 130048  }
  0x16   :  { %v4765_v5 = vld [vmem:[#allocation2 + $0x2e0] sm:$0xf]  ;;  %v6564_v6 = vld [vmem:[#allocation2 + $0x2ec] sm:$0xf0]  ;;  %v4638_v7 = vor.u32 %v6532_v4, %v4637_v2 }
  0x17   :  { %v4766_v8 = vor.u32 %v6564_v6, %v4765_v5  ;;  %v4893_v9 = vld [vmem:[#allocation2 + $0x3e0] sm:$0xf]  ;;  %v6596_v10 = vld [vmem:[#allocation2 + $0x3ec] sm:$0xf0]  ;;  %1319 = vmatpush.bf16.msra.mxu0 %v4510_v3 }
  0x18   :  { %v4493_v11 = vld [vmem:[#allocation2 + $0xc0] sm:$0xf]  ;;  %v4894_v12 = vor.u32 %v6596_v10, %v4893_v9  ;;  %v6496_v13 = vld [vmem:[#allocation2 + $0xcc] sm:$0xf0]  ;;  %1332 = vmatpush.bf16.msra.mxu1 %v4638_v7 }
  0x19   :  { %v4621_v14 = vld [vmem:[#allocation2 + $0x1c0] sm:$0xf]  ;;  %v6528_v15 = vld [vmem:[#allocation2 + $0x1cc] sm:$0xf0]  ;;  %1345 = vmatpush.bf16.msra.mxu2 %v4766_v8  ;;  %v4494_v16 = vor.u32 %v6496_v13, %v4493_v11 }
  0x1a   :  { %v4622_v17 = vor.u32 %v6528_v15, %v4621_v14  ;;  %v4749_v18 = vld [vmem:[#allocation2 + $0x2c0] sm:$0xf]  ;;  %v6560_v19 = vld [vmem:[#allocation2 + $0x2cc] sm:$0xf0]  ;;  %1358 = vmatpush.bf16.msra.mxu3 %v4894_v12 }
  0x1b   :  { %v4877_v20 = vld [vmem:[#allocation2 + $0x3c0] sm:$0xf]  ;;  %v4750_v21 = vor.u32 %v6560_v19, %v4749_v18  ;;  %v6592_v22 = vld [vmem:[#allocation2 + $0x3cc] sm:$0xf0]  ;;  %1320 = vmatpush.bf16.msra.mxu0 %v4494_v16 }
  0x1c   :  { %v4477_v23 = vld [vmem:[#allocation2 + $0xa0] sm:$0xf]  ;;  %v6492_v24 = vld [vmem:[#allocation2 + $0xac] sm:$0xf0]  ;;  %v4878_v25 = vor.u32 %v6592_v22, %v4877_v20  ;;  %1333 = vmatpush.bf16.msra.mxu1 %v4622_v17 }
  0x1d   :  { %v4605_v26 = vld [vmem:[#allocation2 + $0x1a0] sm:$0xf]  ;;  %v6524_v27 = vld [vmem:[#allocation2 + $0x1ac] sm:$0xf0]  ;;  %v4478_v29 = vor.u32 %v6492_v24, %v4477_v23  ;;  %1346 = vmatpush.bf16.msra.mxu2 %v4750_v21 }
  0x1e   :  { %v4733_v28 = vld [vmem:[#allocation2 + $0x2a0] sm:$0xf]  ;;  %v6556_v30 = vld [vmem:[#allocation2 + $0x2ac] sm:$0xf0]  ;;  %v4606_v33 = vor.u32 %v6524_v27, %v4605_v26  ;;  %1359 = vmatpush.bf16.msra.mxu3 %v4878_v25  ;;  %v102_v25 = vld [vmem:[%s7408_s0 + $0x8] sm:$0xff] }
  0x1f   :  { %v4861_v31 = vld [vmem:[#allocation2 + $0x3a0] sm:$0xf]  ;;  %v6588_v32 = vld [vmem:[#allocation2 + $0x3ac] sm:$0xf0]  ;;  %v4734_v34 = vor.u32 %v6556_v30, %v4733_v28  ;;  %1321 = vmatpush.bf16.msra.mxu0 %v4478_v29 }
  0x20   :  { %v4461_v35 = vld [vmem:[#allocation2 + $0x80] sm:$0xf]  ;;  %v6488_v36 = vld [vmem:[#allocation2 + $0x8c] sm:$0xf0]  ;;  %v4862_v38 = vor.u32 %v6588_v32, %v4861_v31  ;;  %1334 = vmatpush.bf16.msra.mxu1 %v4606_v33 }
  0x21   :  { %v4589_v37 = vld [vmem:[#allocation2 + $0x180] sm:$0xf]  ;;  %v6520_v39 = vld [vmem:[#allocation2 + $0x18c] sm:$0xf0]  ;;  %v4462_v44 = vor.u32 %v6488_v36, %v4461_v35  ;;  %1347 = vmatpush.bf16.msra.mxu2 %v4734_v34  ;;  %v6498_v34 = vld [vmem:[#allocation2 + $0xe4] sm:$0xf]  ;;  %v317_v36 = vunpack.c.l.b16 %v102_v25 }
  0x22   :  { %v4717_v40 = vld [vmem:[#allocation2 + $0x280] sm:$0xf]  ;;  %v6552_v41 = vld [vmem:[#allocation2 + $0x28c] sm:$0xf0]  ;;  %v4590_v45 = vor.u32 %v6520_v39, %v4589_v37  ;;  %1360 = vmatpush.bf16.msra.mxu3 %v4862_v38  ;;  %v4511_v35 = vld [vmem:[#allocation2 + $0xf0] sm:$0xf0] }
  0x23   :  { %v4845_v42 = vld [vmem:[#allocation2 + $0x380] sm:$0xf]  ;;  %v6584_v43 = vld [vmem:[#allocation2 + $0x38c] sm:$0xf0]  ;;  %v4718_v46 = vor.u32 %v6552_v41, %v4717_v40  ;;  %1322 = vmatpush.bf16.msra.mxu0 %v4462_v44 }
  0x24   :  { %v4445_v47 = vld [vmem:[#allocation2 + $0x60] sm:$0xf]  ;;  %v6484_v48 = vld [vmem:[#allocation2 + $0x6c] sm:$0xf0]  ;;  %v4846_v50 = vor.u32 %v6584_v43, %v4845_v42  ;;  %1335 = vmatpush.bf16.msra.mxu1 %v4590_v45  ;;  %v318_v42 = vunpack.c.h.b16 %v102_v25  ;;  %v6518_v25 = vld [vmem:[#allocation2 + $0x184] sm:$0xf] }
  0x25   :  { %v4573_v49 = vld [vmem:[#allocation2 + $0x160] sm:$0xf]  ;;  %v6516_v51 = vld [vmem:[#allocation2 + $0x16c] sm:$0xf0]  ;;  %v4446_v56 = vor.u32 %v6484_v48, %v4445_v47  ;;  %1348 = vmatpush.bf16.msra.mxu2 %v4718_v46  ;;  %v6530_v46 = vld [vmem:[#allocation2 + $0x1e4] sm:$0xf] }
  0x26   :  { %v4701_v52 = vld [vmem:[#allocation2 + $0x260] sm:$0xf]  ;;  %v6548_v53 = vld [vmem:[#allocation2 + $0x26c] sm:$0xf0]  ;;  %v4574_v57 = vor.u32 %v6516_v51, %v4573_v49  ;;  %1361 = vmatpush.bf16.msra.mxu3 %v4846_v50  ;;  %v4639_v47 = vld [vmem:[#allocation2 + $0x1f0] sm:$0xf0]  ;;  %v4514_v49 = vor.u32 %v6498_v34, %v4511_v35 }
  0x27   :  { %v4829_v54 = vld [vmem:[#allocation2 + $0x360] sm:$0xf]  ;;  %v6580_v55 = vld [vmem:[#allocation2 + $0x36c] sm:$0xf0]  ;;  %v4702_v58 = vor.u32 %v6548_v53, %v4701_v52  ;;  %1323 = vmatpush.bf16.msra.mxu0 %v4446_v56  ;;  %v7216_v53 = vpack.c.b16 %v317_v36, %v317_v36  ;;  %v4495_v56 = vld [vmem:[#allocation2 + $0xd0] sm:$0xf0] }
  0x28   :  { %v4429_v59 = vld [vmem:[#allocation2 + $0x40] sm:$0xf]  ;;  %v6480_v60 = vld [vmem:[#allocation2 + $0x4c] sm:$0xf0]  ;;  %v4830_v62 = vor.u32 %v6580_v55, %v4829_v54  ;;  %1336 = vmatpush.bf16.msra.mxu1 %v4574_v57  ;;  %v6494_v55 = vld [vmem:[#allocation2 + $0xc4] sm:$0xf] }
  0x29   :  { %v4557_v61 = vld [vmem:[#allocation2 + $0x140] sm:$0xf]  ;;  %v6512_v63 = vld [vmem:[#allocation2 + $0x14c] sm:$0xf0]  ;;  %v4430_v4 = vor.u32 %v6480_v60, %v4429_v59  ;;  %1349 = vmatpush.bf16.msra.mxu2 %v4702_v58  ;;  %v7220_v60 = vpack.c.b16 %v318_v42, %v318_v42  ;;  %v4447_v34 = vld [vmem:[#allocation2 + $0x70] sm:$0xf0] }
  0x2a   :  { %v4685_v0 = vld [vmem:[#allocation2 + $0x240] sm:$0xf]  ;;  %v6544_v1 = vld [vmem:[#allocation2 + $0x24c] sm:$0xf0]  ;;  %v4558_v5 = vor.u32 %v6512_v63, %v4557_v61  ;;  %1362 = vmatpush.bf16.msra.mxu3 %v4830_v62  ;;  %v4642_v61 = vor.u32 %v6530_v46, %v4639_v47  ;;  %v6526_v63 = vld [vmem:[#allocation2 + $0x1c4] sm:$0xf] }
  0x2b   :  { %v4813_v2 = vld [vmem:[#allocation2 + $0x340] sm:$0xf]  ;;  %v6576_v3 = vld [vmem:[#allocation2 + $0x34c] sm:$0xf0]  ;;  %v4686_v6 = vor.u32 %v6544_v1, %v4685_v0  ;;  %1324 = vmatpush.bf16.msra.mxu0 %v4430_v4  ;;  %v4623_v0 = vld [vmem:[#allocation2 + $0x1d0] sm:$0xf0] }
  0x2c   :  { %v4413_v7 = vld [vmem:[#allocation2 + $0x20] sm:$0xf]  ;;  %v6476_v8 = vld [vmem:[#allocation2 + $0x2c] sm:$0xf0]  ;;  %v4814_v10 = vor.u32 %v6576_v3, %v4813_v2  ;;  %1337 = vmatpush.bf16.msra.mxu1 %v4558_v5  ;;  %v4498_v2 = vor.u32 %v6494_v55, %v4495_v56  ;;  %v6478_v46 = vld [vmem:[#allocation2 + $0x44] sm:$0xf] }
  0x2d   :  { %v4541_v9 = vld [vmem:[#allocation2 + $0x120] sm:$0xf]  ;;  %v6508_v11 = vld [vmem:[#allocation2 + $0x12c] sm:$0xf0]  ;;  %v4414_v17 = vor.u32 %v6476_v8, %v4413_v7  ;;  %1350 = vmatpush.bf16.msra.mxu2 %v4686_v6  ;;  %v6490_v7 = vld [vmem:[#allocation2 + $0xa4] sm:$0xf] }
  0x2e   :  { %v4669_v12 = vld [vmem:[#allocation2 + $0x220] sm:$0xf]  ;;  %v6540_v13 = vld [vmem:[#allocation2 + $0x22c] sm:$0xf0]  ;;  %v4542_v21 = vor.u32 %v6508_v11, %v4541_v9  ;;  %1363 = vmatpush.bf16.msra.mxu3 %v4814_v10  ;;  %v4479_v8 = vld [vmem:[#allocation2 + $0xb0] sm:$0xf0]  ;;  %v4626_v10 = vor.u32 %v6526_v63, %v4623_v0 }
  0x2f   :  { %v4797_v14 = vld [vmem:[#allocation2 + $0x320] sm:$0xf]  ;;  %v6572_v15 = vld [vmem:[#allocation2 + $0x32c] sm:$0xf0]  ;;  %v4670_v22 = vor.u32 %v6540_v13, %v4669_v12  ;;  %1325 = vmatpush.bf16.msra.mxu0 %v4414_v17  ;;  %v6522_v12 = vld [vmem:[#allocation2 + $0x1a4] sm:$0xf] }
  0x30   :  { %v4397_v16 = vld [vmem:[#allocation2] sm:$0xf]  ;;  %v6472_v18 = vld [vmem:[#allocation2 + $0xc] sm:$0xf0]  ;;  %v4798_v26 = vor.u32 %v6572_v15, %v4797_v14  ;;  %1338 = vmatpush.bf16.msra.mxu1 %v4542_v21  ;;  %v4607_v13 = vld [vmem:[#allocation2 + $0x1b0] sm:$0xf0]  ;;  %v4482_v15 = vor.u32 %v6490_v7, %v4479_v8 }
  0x31   :  { %v4525_v19 = vld [vmem:[#allocation2 + $0x100] sm:$0xf]  ;;  %v6504_v20 = vld [vmem:[#allocation2 + $0x10c] sm:$0xf0]  ;;  %v4398_v33 = vor.u32 %v6472_v18, %v4397_v16  ;;  %1351 = vmatpush.bf16.msra.mxu2 %v4670_v22  ;;  %v4463_v21 = vld [vmem:[#allocation2 + $0x90] sm:$0xf0] }
  0x32   :  { %v4653_v23 = vld [vmem:[#allocation2 + $0x200] sm:$0xf]  ;;  %v6536_v24 = vld [vmem:[#allocation2 + $0x20c] sm:$0xf0]  ;;  %v4526_v38 = vor.u32 %v6504_v20, %v4525_v19  ;;  %1364 = vmatpush.bf16.msra.mxu3 %v4798_v26  ;;  %v6486_v20 = vld [vmem:[#allocation2 + $0x84] sm:$0xf] }
  0x33   :  { %v4781_v27 = vld [vmem:[#allocation2 + $0x300] sm:$0xf]  ;;  %v6568_v28 = vld [vmem:[#allocation2 + $0x30c] sm:$0xf0]  ;;  %v4654_v39 = vor.u32 %v6536_v24, %v4653_v23  ;;  %1326 = vmatpush.bf16.msra.mxu0 %v4398_v33  ;;  %v104_v22 = vld [vmem:[%s7408_s0 + $0x18] sm:$0xf]  ;;  %v4610_v23 = vor.u32 %v6522_v12, %v4607_v13 }
  0x34   :  { %v5021_v29 = vld [vmem:[#allocation2 + $0x4e0] sm:$0xf]  ;;  %v6628_v30 = vld [vmem:[#allocation2 + $0x4ec] sm:$0xf0]  ;;  %v4782_v43 = vor.u32 %v6568_v28, %v4781_v27  ;;  %1339 = vmatpush.bf16.msra.mxu1 %v4526_v38  ;;  %v4591_v26 = vld [vmem:[#allocation2 + $0x190] sm:$0xf0]  ;;  %v4466_v28 = vor.u32 %v6486_v20, %v4463_v21  ;;  %v321_v35 = vunpack.c.l.b16 %v104_v22 }
  0x35   :  { %v5149_v31 = vld [vmem:[#allocation2 + $0x5e0] sm:$0xf]  ;;  %v6660_v32 = vld [vmem:[#allocation2 + $0x5ec] sm:$0xf0]  ;;  %v5022_v44 = vor.u32 %v6628_v30, %v5021_v29  ;;  %1352 = vmatpush.bf16.msra.mxu2 %v4654_v39  ;;  %v6482_v33 = vld [vmem:[#allocation2 + $0x64] sm:$0xf]  ;;  %v4594_v36 = vor.u32 %v6518_v25, %v4591_v26 }
  0x36   :  { %v101_v37 = vld [vmem:[%s7408_s0] sm:$0xff]  ;;  %v6664_v45 = vld [vmem:[#allocation2 + $0x60c] sm:$0xf0]  ;;  %v5150_v48 = vor.u32 %v6660_v32, %v5149_v31  ;;  %1365 = vmatpush.bf16.msra.mxu3 %v4782_v43  ;;  %v4575_v39 = vld [vmem:[#allocation2 + $0x170] sm:$0xf0] }
  0x37   :  { %v5165_v40 = vld [vmem:[#allocation2 + $0x600] sm:$0xf]  ;;  %v315_v41 = vunpack.c.l.b16 %v101_v37  ;;  %v6624_v51 = vld [vmem:[#allocation2 + $0x4cc] sm:$0xf0]  ;;  %v316_v58 = vunpack.c.h.b16 %v101_v37  ;;  %1371 = vmatpush.bf16.msrb.mxu0 %v5022_v44  ;;  %v6514_v38 = vld [vmem:[#allocation2 + $0x164] sm:$0xf] }
  0x38   :  { %v5005_v50 = vld [vmem:[#allocation2 + $0x4c0] sm:$0xf]  ;;  %v6656_v54 = vld [vmem:[#allocation2 + $0x5cc] sm:$0xf0]  ;;  %v5166_v59 = vor.u32 %v6664_v45, %v5165_v40  ;;  %1384 = vmatpush.bf16.msrb.mxu1 %v5150_v48  ;;  %1353 = vmatmul.bf16.vlgmr.msra.gmra.mxu2 %v7216_v53  ;;  %v4431_v47 = vld [vmem:[#allocation2 + $0x50] sm:$0xf0]  ;;  %v7231_v48 = vpack.c.b16 %v321_v35, %v321_v35 }
  0x39   :  { %v5133_v52 = vld [vmem:[#allocation2 + $0x5c0] sm:$0xf]  ;;  %v7218_v57 = vpack.c.b16 %v315_v41, %v315_v41  ;;  %v5006_v62 = vor.u32 %v6624_v51, %v5005_v50  ;;  %v6620_v4 = vld [vmem:[#allocation2 + $0x4ac] sm:$0xf0]  ;;  %v7224_v9 = vpack.c.b16 %v316_v58, %v316_v58  ;;  %1366 = vmatmul.bf16.vlgmr.msra.gmra.mxu3 %v7220_v60  ;;  %v4450_v41 = vor.u32 %v6482_v33, %v4447_v34  ;;  %v6510_v51 = vld [vmem:[#allocation2 + $0x144] sm:$0xf] }
  0x3a   :  { %1410 = vmatpush.bf16.msrb.mxu3 %v4514_v49  ;;  %v5134_v1 = vor.u32 %v6656_v54, %v5133_v52  ;;  %v4989_v3 = vld [vmem:[#allocation2 + $0x4a0] sm:$0xf]  ;;  %v6652_v6 = vld [vmem:[#allocation2 + $0x5ac] sm:$0xf0]  ;;  %1404 = vmatpush.bf16.msrb.mxu2 %v5166_v59  ;;  %v4578_v49 = vor.u32 %v6514_v38, %v4575_v39  ;;  %v4559_v52 = vld [vmem:[#allocation2 + $0x150] sm:$0xf0]  ;;  %v4434_v55 = vor.u32 %v6478_v46, %v4431_v47 }
  0x3b   :  { %v5117_v5 = vld [vmem:[#allocation2 + $0x5a0] sm:$0xf]  ;;  %1327 = vmatmul.bf16.vlgmr.msra.gmra.mxu0 %v7218_v57  ;;  %v4990_v11 = vor.u32 %v6620_v4, %v4989_v3  ;;  %v6616_v17 = vld [vmem:[#allocation2 + $0x48c] sm:$0xf0]  ;;  %1340 = vmatmul.bf16.vlgmr.msra.gmra.mxu1 %v7224_v9  ;;  %v4415_v63 = vld [vmem:[#allocation2 + $0x30] sm:$0xf0] }
  0x3c   :  { %1372 = vmatpush.bf16.msrb.mxu0 %v5006_v62  ;;  %1385 = vmatpush.bf16.msrb.mxu1 %v5134_v1  ;;  %v5118_v14 = vor.u32 %v6652_v6, %v5117_v5  ;;  %v4973_v16 = vld [vmem:[#allocation2 + $0x480] sm:$0xf]  ;;  %v6648_v19 = vld [vmem:[#allocation2 + $0x58c] sm:$0xf0]  ;;  %v6474_v62 = vld [vmem:[#allocation2 + $0x24] sm:$0xf]  ;;  %v4562_v1 = vor.u32 %v6510_v51, %v4559_v52 }
  0x3d   :  { %v5101_v18 = vld [vmem:[#allocation2 + $0x580] sm:$0xf]  ;;  %v4974_v24 = vor.u32 %v6616_v17, %v4973_v16  ;;  %v6612_v30 = vld [vmem:[#allocation2 + $0x46c] sm:$0xf0]  ;;  %v6506_v0 = vld [vmem:[#allocation2 + $0x124] sm:$0xf]  ;;  %v4418_v7 = vor.u32 %v6474_v62, %v4415_v63 }
  0x3e   :  { %1423 = vmatpush.bf16.msra.mxu2 %v4642_v61  ;;  %1411 = vmatpush.bf16.msrb.mxu3 %v4498_v2  ;;  %v5102_v27 = vor.u32 %v6648_v19, %v5101_v18  ;;  %v4957_v29 = vld [vmem:[#allocation2 + $0x460] sm:$0xf]  ;;  %v6644_v32 = vld [vmem:[#allocation2 + $0x56c] sm:$0xf0]  ;;  %v4543_v3 = vld [vmem:[#allocation2 + $0x130] sm:$0xf0] }
  0x3f   :  { %v5085_v31 = vld [vmem:[#allocation2 + $0x560] sm:$0xf]  ;;  %v4958_v37 = vor.u32 %v6612_v30, %v4957_v29  ;;  %v6608_v43 = vld [vmem:[#allocation2 + $0x44c] sm:$0xf0]  ;;  %v6470_v12 = vld [vmem:[#allocation2 + $0x4] sm:$0xf]  ;;  %v4546_v19 = vor.u32 %v6506_v0, %v4543_v3 }
  0x40   :  { %1373 = vmatpush.bf16.msrb.mxu0 %v4990_v11  ;;  %1386 = vmatpush.bf16.msrb.mxu1 %v5118_v14  ;;  %v5086_v40 = vor.u32 %v6644_v32, %v5085_v31  ;;  %v4941_v42 = vld [vmem:[#allocation2 + $0x440] sm:$0xf]  ;;  %v6640_v45 = vld [vmem:[#allocation2 + $0x54c] sm:$0xf0]  ;;  %v4399_v13 = vld [vmem:[#allocation2 + $0x10] sm:$0xf0] }
  0x41   :  { %v5069_v44 = vld [vmem:[#allocation2 + $0x540] sm:$0xf]  ;;  %v4942_v50 = vor.u32 %v6608_v43, %v4941_v42  ;;  %v6604_v58 = vld [vmem:[#allocation2 + $0x42c] sm:$0xf0]  ;;  %v6562_v14 = vld [vmem:[#allocation2 + $0x2e4] sm:$0xf]  ;;  %v4402_v25 = vor.u32 %v6470_v12, %v4399_v13 }
  0x42   :  { %1424 = vmatpush.bf16.msra.mxu2 %v4626_v10  ;;  %1412 = vmatpush.bf16.msrb.mxu3 %v4482_v15  ;;  %v5070_v54 = vor.u32 %v6640_v45, %v5069_v44  ;;  %v4925_v56 = vld [vmem:[#allocation2 + $0x420] sm:$0xf]  ;;  %v6636_v61 = vld [vmem:[#allocation2 + $0x52c] sm:$0xf0]  ;;  %v4767_v15 = vld [vmem:[#allocation2 + $0x2f0] sm:$0xf0] }
  0x43   :  { %v5053_v59 = vld [vmem:[#allocation2 + $0x520] sm:$0xf]  ;;  %v4926_v2 = vor.u32 %v6604_v58, %v4925_v56  ;;  %v103_v5 = vld [vmem:[%s7408_s0 + $0x10] sm:$0xff]  ;;  %v6594_v16 = vld [vmem:[#allocation2 + $0x3e4] sm:$0xf] }
  0x44   :  { %1374 = vmatpush.bf16.msrb.mxu0 %v4974_v24  ;;  %1387 = vmatpush.bf16.msrb.mxu1 %v5102_v27  ;;  %v4909_v4 = vld [vmem:[#allocation2 + $0x400] sm:$0xf]  ;;  %v5054_v6 = vor.u32 %v6636_v61, %v5053_v59  ;;  %v6600_v8 = vld [vmem:[#allocation2 + $0x40c] sm:$0xf0]  ;;  %v4895_v17 = vld [vmem:[#allocation2 + $0x3f0] sm:$0xf0]  ;;  %v319_v18 = vunpack.c.l.b16 %v103_v5 }
  0x45   :  { %v5037_v10 = vld [vmem:[#allocation2 + $0x500] sm:$0xf]  ;;  %v6632_v11 = vld [vmem:[#allocation2 + $0x50c] sm:$0xf0]  ;;  %v4910_v20 = vor.u32 %v6600_v8, %v4909_v4  ;;  %v6626_v21 = vld [vmem:[#allocation2 + $0x4e4] sm:$0xf]  ;;  %v4898_v29 = vor.u32 %v6594_v16, %v4895_v17 }
  0x46   :  { %1425 = vmatpush.bf16.msra.mxu2 %v4610_v23  ;;  %1413 = vmatpush.bf16.msrb.mxu3 %v4466_v28  ;;  %v5023_v22 = vld [vmem:[#allocation2 + $0x4f0] sm:$0xf0]  ;;  %v320_v23 = vunpack.c.h.b16 %v103_v5  ;;  %v5038_v24 = vor.u32 %v6632_v11, %v5037_v10  ;;  %v6502_v26 = vld [vmem:[#allocation2 + $0x104] sm:$0xf]  ;;  %v4770_v28 = vor.u32 %v6562_v14, %v4767_v15  ;;  %v7238_v34 = vpack.c.b16 %v319_v18, %v319_v18 }
  0x47   :  { %v4527_v27 = vld [vmem:[#allocation2 + $0x110] sm:$0xf0]  ;;  %v6658_v30 = vld [vmem:[#allocation2 + $0x5e4] sm:$0xf]  ;;  %v5026_v33 = vor.u32 %v6626_v21, %v5023_v22 }
  0x48   :  { %1375 = vmatpush.bf16.msrb.mxu0 %v4958_v37  ;;  %1388 = vmatpush.bf16.msrb.mxu1 %v5086_v40  ;;  %v5151_v31 = vld [vmem:[#allocation2 + $0x5f0] sm:$0xf0]  ;;  %v6558_v32 = vld [vmem:[#allocation2 + $0x2c4] sm:$0xf]  ;;  %v4530_v38 = vor.u32 %v6502_v26, %v4527_v27  ;;  %v7240_v39 = vpack.c.b16 %v320_v23, %v320_v23 }
  0x49   :  { %5179 = vmatmul.msk.bf16.vlgmr.msrb.gmra.mxu2 %vm1315_vm0, %v7231_v48  ;;  %v4751_v35 = vld [vmem:[#allocation2 + $0x2d0] sm:$0xf0]  ;;  %v6622_v40 = vld [vmem:[#allocation2 + $0x4c4] sm:$0xf]  ;;  %v5154_v42 = vor.u32 %v6658_v30, %v5151_v31 }
  0x4a   :  { %1426 = vmatpush.bf16.msra.mxu2 %v4594_v36  ;;  %1414 = vmatpush.bf16.msrb.mxu3 %v4450_v41  ;;  %v6590_v36 = vld [vmem:[#allocation2 + $0x3c4] sm:$0xf]  ;;  %v4879_v37 = vld [vmem:[#allocation2 + $0x3d0] sm:$0xf0]  ;;  %v4754_v43 = vor.u32 %v6558_v32, %v4751_v35 }
  0x4b   :  { %v5007_v41 = vld [vmem:[#allocation2 + $0x4d0] sm:$0xf0]  ;;  %v4882_v44 = vor.u32 %v6590_v36, %v4879_v37  ;;  %v6654_v45 = vld [vmem:[#allocation2 + $0x5c4] sm:$0xf] }
  0x4c   :  { %1376 = vmatpush.bf16.msrb.mxu0 %v4942_v50  ;;  %1389 = vmatpush.bf16.msrb.mxu1 %v5070_v54  ;;  %v5135_v46 = vld [vmem:[#allocation2 + $0x5d0] sm:$0xf0]  ;;  %v6554_v47 = vld [vmem:[#allocation2 + $0x2a4] sm:$0xf] }
  0x4d   :  { %v4735_v50 = vld [vmem:[#allocation2 + $0x2b0] sm:$0xf0]  ;;  %v6586_v51 = vld [vmem:[#allocation2 + $0x3a4] sm:$0xf]  ;;  %v5138_v56 = vor.u32 %v6654_v45, %v5135_v46 }
  0x4e   :  { %1427 = vmatpush.bf16.msra.mxu2 %v4578_v49  ;;  %1415 = vmatpush.bf16.msrb.mxu3 %v4434_v55  ;;  %v5010_v49 = vor.u32 %v6622_v40, %v5007_v41  ;;  %v4863_v52 = vld [vmem:[#allocation2 + $0x3b0] sm:$0xf0]  ;;  %v6618_v54 = vld [vmem:[#allocation2 + $0x4a4] sm:$0xf]  ;;  %v4738_v58 = vor.u32 %v6554_v47, %v4735_v50 }
  0x4f   :  { %v4991_v55 = vld [vmem:[#allocation2 + $0x4b0] sm:$0xf0]  ;;  %v4866_v59 = vor.u32 %v6586_v51, %v4863_v52  ;;  %v6650_v61 = vld [vmem:[#allocation2 + $0x5a4] sm:$0xf] }
  0x50   :  { %1377 = vmatpush.bf16.msrb.mxu0 %v4926_v2  ;;  %1390 = vmatpush.bf16.msrb.mxu1 %v5054_v6  ;;  %v5119_v62 = vld [vmem:[#allocation2 + $0x5b0] sm:$0xf0]  ;;  %v6550_v63 = vld [vmem:[#allocation2 + $0x284] sm:$0xf]  ;;  %v4994_v0 = vor.u32 %v6618_v54, %v4991_v55 }
  0x51   :  { %v6582_v2 = vld [vmem:[#allocation2 + $0x384] sm:$0xf]  ;;  %v4847_v3 = vld [vmem:[#allocation2 + $0x390] sm:$0xf0]  ;;  %v5122_v6 = vor.u32 %v6650_v61, %v5119_v62  ;;  %v4517_v61 = vld [vmem:[#allocation2 + $0xe8] sm:$0xf] }
  0x52   :  { %1428 = vmatpush.bf16.msra.mxu2 %v4562_v1  ;;  %1416 = vmatpush.bf16.msrb.mxu3 %v4418_v7  ;;  %v4719_v1 = vld [vmem:[#allocation2 + $0x290] sm:$0xf0]  ;;  %v6614_v4 = vld [vmem:[#allocation2 + $0x484] sm:$0xf]  ;;  %v4850_v8 = vor.u32 %v6582_v2, %v4847_v3  ;;  %v6501_v62 = vld [vmem:[#allocation2 + $0xf4] sm:$0xf0] }
  0x53   :  { %v4975_v5 = vld [vmem:[#allocation2 + $0x490] sm:$0xf0]  ;;  %v4722_v7 = vor.u32 %v6550_v63, %v4719_v1  ;;  %v6646_v10 = vld [vmem:[#allocation2 + $0x584] sm:$0xf]  ;;  %v4773_v2 = vld [vmem:[#allocation2 + $0x2e8] sm:$0xf] }
  0x54   :  { %1378 = vmatpush.bf16.msrb.mxu0 %v4910_v20  ;;  %1391 = vmatpush.bf16.msrb.mxu1 %v5038_v24  ;;  %v5103_v11 = vld [vmem:[#allocation2 + $0x590] sm:$0xf0]  ;;  %v6546_v12 = vld [vmem:[#allocation2 + $0x264] sm:$0xf]  ;;  %v4978_v13 = vor.u32 %v6614_v4, %v4975_v5  ;;  %v6565_v3 = vld [vmem:[#allocation2 + $0x2f4] sm:$0xf0] }
  0x55   :  { %v4703_v14 = vld [vmem:[#allocation2 + $0x270] sm:$0xf0]  ;;  %v6578_v15 = vld [vmem:[#allocation2 + $0x364] sm:$0xf] }
  0x56   :  { %1429 = vmatpush.bf16.msra.mxu2 %v4546_v19  ;;  %1417 = vmatpush.bf16.msrb.mxu3 %v4402_v25  ;;  %v4831_v16 = vld [vmem:[#allocation2 + $0x370] sm:$0xf0]  ;;  %v6610_v17 = vld [vmem:[#allocation2 + $0x464] sm:$0xf]  ;;  %v5106_v19 = vor.u32 %v6646_v10, %v5103_v11  ;;  %v4706_v20 = vor.u32 %v6546_v12, %v4703_v14  ;;  %v4518_v10 = vor.u32 %v6501_v62, %v4517_v61  ;;  %v4901_v11 = vld [vmem:[#allocation2 + $0x3e8] sm:$0xf] }
  0x57   :  { %1379 = vmatmul.bf16.vlgmr.msrb.gmra.mxu0 %v7238_v34  ;;  %1392 = vmatmul.bf16.vlgmr.msrb.gmra.mxu1 %v7240_v39  ;;  %v4959_v18 = vld [vmem:[#allocation2 + $0x470] sm:$0xf0]  ;;  %v4834_v21 = vor.u32 %v6578_v15, %v4831_v16  ;;  %v6642_v22 = vld [vmem:[#allocation2 + $0x564] sm:$0xf]  ;;  %v6597_v12 = vld [vmem:[#allocation2 + $0x3f4] sm:$0xf0]  ;;  %v4774_v16 = vor.u32 %v6565_v3, %v4773_v2 }
  0x58   :  { %1436 = vmatpush.bf16.msra.mxu0 %v4770_v28  ;;  %1449 = vmatpush.bf16.msra.mxu1 %v4898_v29  ;;  %v5087_v23 = vld [vmem:[#allocation2 + $0x570] sm:$0xf0]  ;;  %v6542_v24 = vld [vmem:[#allocation2 + $0x244] sm:$0xf]  ;;  %v4962_v25 = vor.u32 %v6610_v17, %v4959_v18  ;;  %v4645_v14 = vld [vmem:[#allocation2 + $0x1e8] sm:$0xf] }
  0x59   :  { %1418 = vmatmul.bf16.vlgmr.msrb.gmra.mxu3 %v7218_v57  ;;  %v4687_v26 = vld [vmem:[#allocation2 + $0x250] sm:$0xf0]  ;;  %v6574_v27 = vld [vmem:[#allocation2 + $0x344] sm:$0xf]  ;;  %v5090_v31 = vor.u32 %v6642_v22, %v5087_v23  ;;  %v6533_v15 = vld [vmem:[#allocation2 + $0x1f4] sm:$0xf0] }
  0x5a   :  { %1462 = vmatpush.bf16.msra.mxu3 %v5026_v33  ;;  %1430 = vmatpush.bf16.msra.mxu2 %v4530_v38  ;;  %v4815_v28 = vld [vmem:[#allocation2 + $0x350] sm:$0xf0]  ;;  %v6606_v29 = vld [vmem:[#allocation2 + $0x444] sm:$0xf]  ;;  %v4690_v32 = vor.u32 %v6542_v24, %v4687_v26  ;;  %v4501_v18 = vld [vmem:[#allocation2 + $0xc8] sm:$0xf]  ;;  %v4646_v23 = vor.u32 %v6533_v15, %v4645_v14 }
  0x5b   :  { %v4943_v30 = vld [vmem:[#allocation2 + $0x450] sm:$0xf0]  ;;  %v4818_v33 = vor.u32 %v6574_v27, %v4815_v28  ;;  %v6638_v35 = vld [vmem:[#allocation2 + $0x544] sm:$0xf]  ;;  %v6561_v22 = vld [vmem:[#allocation2 + $0x2d4] sm:$0xf0] }
  0x5c   :  { %1437 = vmatpush.bf16.msra.mxu0 %v4754_v43  ;;  %1450 = vmatpush.bf16.msra.mxu1 %v4882_v44  ;;  %v5071_v36 = vld [vmem:[#allocation2 + $0x550] sm:$0xf0]  ;;  %v6538_v37 = vld [vmem:[#allocation2 + $0x224] sm:$0xf]  ;;  %v4946_v38 = vor.u32 %v6606_v29, %v4943_v30  ;;  %v4885_v24 = vld [vmem:[#allocation2 + $0x3c8] sm:$0xf] }
  0x5d   :  { %1431 = vmatmul.bf16.vlgmr.msra.gmra.mxu2 %v7224_v9  ;;  %v4671_v40 = vld [vmem:[#allocation2 + $0x230] sm:$0xf0]  ;;  %v6570_v41 = vld [vmem:[#allocation2 + $0x324] sm:$0xf]  ;;  %v5074_v45 = vor.u32 %v6638_v35, %v5071_v36  ;;  %v4629_v27 = vld [vmem:[#allocation2 + $0x1c8] sm:$0xf] }
  0x5e   :  { %1475 = vmatpush.bf16.msrb.mxu2 %v5154_v42  ;;  %1463 = vmatpush.bf16.msra.mxu3 %v5010_v49  ;;  %v4799_v42 = vld [vmem:[#allocation2 + $0x330] sm:$0xf0]  ;;  %v6602_v43 = vld [vmem:[#allocation2 + $0x424] sm:$0xf]  ;;  %v4674_v49 = vor.u32 %v6538_v37, %v4671_v40  ;;  %v6529_v28 = vld [vmem:[#allocation2 + $0x1d4] sm:$0xf0] }
  0x5f   :  { %v4927_v44 = vld [vmem:[#allocation2 + $0x430] sm:$0xf0]  ;;  %v6634_v46 = vld [vmem:[#allocation2 + $0x524] sm:$0xf]  ;;  %v4802_v50 = vor.u32 %v6570_v41, %v4799_v42  ;;  %v4485_v30 = vld [vmem:[#allocation2 + $0xa8] sm:$0xf]  ;;  %v4630_v36 = vor.u32 %v6529_v28, %v4629_v27 }
  0x60   :  { %1438 = vmatpush.bf16.msra.mxu0 %v4738_v58  ;;  %1451 = vmatpush.bf16.msra.mxu1 %v4866_v59  ;;  %v5055_v47 = vld [vmem:[#allocation2 + $0x530] sm:$0xf0]  ;;  %v6534_v51 = vld [vmem:[#allocation2 + $0x204] sm:$0xf]  ;;  %v4930_v55 = vor.u32 %v6602_v43, %v4927_v44  ;;  %v6557_v35 = vld [vmem:[#allocation2 + $0x2b4] sm:$0xf0] }
  0x61   :  { %v4655_v52 = vld [vmem:[#allocation2 + $0x210] sm:$0xf0]  ;;  %v6566_v54 = vld [vmem:[#allocation2 + $0x304] sm:$0xf]  ;;  %v4869_v37 = vld [vmem:[#allocation2 + $0x3a8] sm:$0xf] }
  0x62   :  { %1476 = vmatpush.bf16.msrb.mxu2 %v5138_v56  ;;  %1464 = vmatpush.bf16.msra.mxu3 %v4994_v0  ;;  %v4783_v56 = vld [vmem:[#allocation2 + $0x310] sm:$0xf0]  ;;  %v6598_v58 = vld [vmem:[#allocation2 + $0x404] sm:$0xf]  ;;  %v5058_v0 = vor.u32 %v6634_v46, %v5055_v47  ;;  %v4658_v4 = vor.u32 %v6534_v51, %v4655_v52  ;;  %v4613_v41 = vld [vmem:[#allocation2 + $0x1a8] sm:$0xf] }
  0x63   :  { %v4911_v59 = vld [vmem:[#allocation2 + $0x410] sm:$0xf0]  ;;  %v6662_v63 = vld [vmem:[#allocation2 + $0x604] sm:$0xf]  ;;  %v4786_v5 = vor.u32 %v6566_v54, %v4783_v56  ;;  %v6525_v42 = vld [vmem:[#allocation2 + $0x1b4] sm:$0xf0] }
  0x64   :  { %1439 = vmatpush.bf16.msra.mxu0 %v4722_v7  ;;  %1452 = vmatpush.bf16.msra.mxu1 %v4850_v8  ;;  %v5167_v1 = vld [vmem:[#allocation2 + $0x610] sm:$0xf0]  ;;  %v4914_v8 = vor.u32 %v6598_v58, %v4911_v59  ;;  %v4469_v44 = vld [vmem:[#allocation2 + $0x88] sm:$0xf]  ;;  %v6585_v52 = vld [vmem:[#allocation2 + $0x394] sm:$0xf0] }
  0x65   :  { %v5039_v7 = vld [vmem:[#allocation2 + $0x510] sm:$0xf0]  ;;  %v4725_v47 = vld [vmem:[#allocation2 + $0x288] sm:$0xf]  ;;  %v6521_v56 = vld [vmem:[#allocation2 + $0x194] sm:$0xf0] }
  0x66   :  { %1477 = vmatpush.bf16.msrb.mxu2 %v5122_v6  ;;  %1465 = vmatpush.bf16.msra.mxu3 %v4978_v13  ;;  %v6630_v6 = vld [vmem:[#allocation2 + $0x504] sm:$0xf]  ;;  %v5170_v13 = vor.u32 %v6662_v63, %v5167_v1  ;;  %v4853_v51 = vld [vmem:[#allocation2 + $0x388] sm:$0xf]  ;;  %v6485_v61 = vld [vmem:[#allocation2 + $0x74] sm:$0xf0] }
  0x67   :  { %v5042_v17 = vor.u32 %v6630_v6, %v5039_v7  ;;  %v4453_v59 = vld [vmem:[#allocation2 + $0x68] sm:$0xf]  ;;  %v4854_v62 = vor.u32 %v6585_v52, %v4853_v51  ;;  %v6581_v3 = vld [vmem:[#allocation2 + $0x374] sm:$0xf0]  ;;  %v6499_v51 = vld [vmem:[#allocation2 + $0xec] sm:$0xf] }
  0x68   :  { %1440 = vmatpush.bf16.msra.mxu0 %v4706_v20  ;;  %1453 = vmatpush.bf16.msra.mxu1 %v4834_v21  ;;  %v4902_v20 = vor.u32 %v6597_v12, %v4901_v11  ;;  %v4757_v21 = vld [vmem:[#allocation2 + $0x2c8] sm:$0xf]  ;;  %v6517_v6 = vld [vmem:[#allocation2 + $0x174] sm:$0xf0]  ;;  %v4519_v52 = vld [vmem:[#allocation2 + $0xf8] sm:$0xf0] }
  0x69   :  { %v4758_v29 = vor.u32 %v6561_v22, %v4757_v21  ;;  %v4709_v63 = vld [vmem:[#allocation2 + $0x268] sm:$0xf]  ;;  %v6477_v22 = vld [vmem:[#allocation2 + $0x34] sm:$0xf0] }
  0x6a   :  { %1478 = vmatpush.bf16.msrb.mxu2 %v5106_v19  ;;  %1466 = vmatpush.bf16.msra.mxu3 %v4962_v25  ;;  %v6497_v19 = vld [vmem:[#allocation2 + $0xd4] sm:$0xf0]  ;;  %v4837_v2 = vld [vmem:[#allocation2 + $0x368] sm:$0xf] }
  0x6b   :  { %v6593_v25 = vld [vmem:[#allocation2 + $0x3d4] sm:$0xf0]  ;;  %v4502_v26 = vor.u32 %v6497_v19, %v4501_v18  ;;  %v4838_v11 = vor.u32 %v6581_v3, %v4837_v2  ;;  %v4693_v12 = vld [vmem:[#allocation2 + $0x248] sm:$0xf]  ;;  %v4522_v3 = vor.u32 %v6499_v51, %v4519_v52 }
  0x6c   :  { %1441 = vmatpush.bf16.msra.mxu0 %v4690_v32  ;;  %1454 = vmatpush.bf16.msra.mxu1 %v4818_v33  ;;  %v4886_v32 = vor.u32 %v6593_v25, %v4885_v24  ;;  %v4741_v33 = vld [vmem:[#allocation2 + $0x2a8] sm:$0xf]  ;;  %v6513_v19 = vld [vmem:[#allocation2 + $0x154] sm:$0xf0] }
  0x6d   :  { %v4742_v43 = vor.u32 %v6557_v35, %v4741_v33  ;;  %v4821_v15 = vld [vmem:[#allocation2 + $0x348] sm:$0xf]  ;;  %v6541_v25 = vld [vmem:[#allocation2 + $0x234] sm:$0xf0] }
  0x6e   :  { %1479 = vmatpush.bf16.msrb.mxu2 %v5090_v31  ;;  %1467 = vmatpush.bf16.msra.mxu3 %v4946_v38  ;;  %v6493_v31 = vld [vmem:[#allocation2 + $0xb4] sm:$0xf0]  ;;  %v4565_v18 = vld [vmem:[#allocation2 + $0x148] sm:$0xf] }
  0x6f   :  { %v6589_v38 = vld [vmem:[#allocation2 + $0x3b4] sm:$0xf0]  ;;  %v4486_v40 = vor.u32 %v6493_v31, %v4485_v30  ;;  %v4421_v21 = vld [vmem:[#allocation2 + $0x28] sm:$0xf] }
  0x70   :  { %1442 = vmatpush.bf16.msra.mxu0 %v4674_v49  ;;  %1455 = vmatpush.bf16.msra.mxu1 %v4802_v50  ;;  %v4870_v46 = vor.u32 %v6589_v38, %v4869_v37  ;;  %v6553_v49 = vld [vmem:[#allocation2 + $0x294] sm:$0xf0]  ;;  %v4614_v50 = vor.u32 %v6525_v42, %v4613_v41  ;;  %v4677_v24 = vld [vmem:[#allocation2 + $0x228] sm:$0xf] }
  0x71   :  { %v4726_v58 = vor.u32 %v6553_v49, %v4725_v47  ;;  %v4805_v27 = vld [vmem:[#allocation2 + $0x328] sm:$0xf]  ;;  %v6573_v28 = vld [vmem:[#allocation2 + $0x334] sm:$0xf0]  ;;  %v4678_v33 = vor.u32 %v6541_v25, %v4677_v24 }
  0x72   :  { %1480 = vmatpush.bf16.msrb.mxu2 %v5074_v45  ;;  %1468 = vmatpush.bf16.msra.mxu3 %v4930_v55  ;;  %v6489_v45 = vld [vmem:[#allocation2 + $0x94] sm:$0xf0]  ;;  %v4597_v55 = vld [vmem:[#allocation2 + $0x188] sm:$0xf]  ;;  %v4806_v38 = vor.u32 %v6573_v28, %v4805_v27  ;;  %v4615_v27 = vld [vmem:[#allocation2 + $0x1b8] sm:$0xf0] }
  0x73   :  { %v4470_v54 = vor.u32 %v6489_v45, %v4469_v44  ;;  %v4598_v1 = vor.u32 %v6521_v56, %v4597_v55  ;;  %v4549_v30 = vld [vmem:[#allocation2 + $0x128] sm:$0xf]  ;;  %v6509_v31 = vld [vmem:[#allocation2 + $0x134] sm:$0xf0] }
  0x74   :  { %1443 = vmatpush.bf16.msra.mxu0 %v4658_v4  ;;  %1456 = vmatpush.bf16.msra.mxu1 %v4786_v5  ;;  %v4454_v4 = vor.u32 %v6485_v61, %v4453_v59  ;;  %v4581_v5 = vld [vmem:[#allocation2 + $0x168] sm:$0xf]  ;;  %v6473_v35 = vld [vmem:[#allocation2 + $0x14] sm:$0xf0]  ;;  %v4550_v44 = vor.u32 %v6509_v31, %v4549_v30  ;;  %v6487_v30 = vld [vmem:[#allocation2 + $0x8c] sm:$0xf] }
  0x75   :  { %v4582_v14 = vor.u32 %v6517_v6, %v4581_v5  ;;  %v6629_v37 = vld [vmem:[#allocation2 + $0x4f4] sm:$0xf0]  ;;  %v4661_v41 = vld [vmem:[#allocation2 + $0x208] sm:$0xf]  ;;  %v6495_v5 = vld [vmem:[#allocation2 + $0xcc] sm:$0xf] }
  0x76   :  { %1481 = vmatpush.bf16.msrb.mxu2 %v5058_v0  ;;  %1469 = vmatpush.bf16.msra.mxu3 %v4914_v8  ;;  %v6549_v0 = vld [vmem:[#allocation2 + $0x274] sm:$0xf0]  ;;  %v4437_v8 = vld [vmem:[#allocation2 + $0x48] sm:$0xf]  ;;  %v4503_v6 = vld [vmem:[#allocation2 + $0xd8] sm:$0xf0] }
  0x77   :  { %1444 = vmatmul.bf16.vlgmr.msra.gmra.mxu0 %v7216_v53  ;;  %1457 = vmatmul.bf16.vlgmr.msra.gmra.mxu1 %v7220_v60  ;;  %v4710_v7 = vor.u32 %v6549_v0, %v4709_v63  ;;  %v6537_v42 = vld [vmem:[#allocation2 + $0x214] sm:$0xf0]  ;;  %v5157_v56 = vld [vmem:[#allocation2 + $0x5e8] sm:$0xf]  ;;  %v6531_v0 = vld [vmem:[#allocation2 + $0x1ec] sm:$0xf] }
  0x78   :  { %1501 = vmatpush.bf16.msrb.mxu1 %v4518_v10  ;;  %1527 = vmatpush.bf16.msrb.mxu0 %v4774_v16  ;;  %v6481_v10 = vld [vmem:[#allocation2 + $0x54] sm:$0xf0]  ;;  %v4662_v55 = vor.u32 %v6537_v42, %v4661_v41  ;;  %v5013_v59 = vld [vmem:[#allocation2 + $0x4c8] sm:$0xf]  ;;  %v4471_v31 = vld [vmem:[#allocation2 + $0x98] sm:$0xf0] }
  0x79   :  { %1470 = vmatmul.bf16.vlgmr.msra.gmra.mxu3 %v7238_v34  ;;  %v6577_v16 = vld [vmem:[#allocation2 + $0x354] sm:$0xf0]  ;;  %v4981_v24 = vld [vmem:[#allocation2 + $0x488] sm:$0xf]  ;;  %v4599_v41 = vld [vmem:[#allocation2 + $0x198] sm:$0xf0]  ;;  %v4474_v42 = vor.u32 %v6487_v30, %v4471_v31 }
  0x7a   :  { %1495 = vmatpush.bf16.msrb.mxu3 %v5170_v13  ;;  %1482 = vmatpush.bf16.msrb.mxu2 %v5042_v17  ;;  %v6545_v13 = vld [vmem:[#allocation2 + $0x254] sm:$0xf0]  ;;  %v4438_v17 = vor.u32 %v6481_v10, %v4437_v8  ;;  %v5141_v10 = vld [vmem:[#allocation2 + $0x5c8] sm:$0xf]  ;;  %v4903_v30 = vld [vmem:[#allocation2 + $0x3f8] sm:$0xf0] }
  0x7b   :  { %v6569_v45 = vld [vmem:[#allocation2 + $0x314] sm:$0xf0]  ;;  %v4949_v51 = vld [vmem:[#allocation2 + $0x448] sm:$0xf] }
  0x7c   :  { %1502 = vmatpush.bf16.msrb.mxu1 %v4502_v26  ;;  %1528 = vmatpush.bf16.msrb.mxu0 %v4758_v29  ;;  %v4566_v26 = vor.u32 %v6513_v19, %v4565_v18  ;;  %v4422_v29 = vor.u32 %v6477_v22, %v4421_v21  ;;  %v6665_v47 = vld [vmem:[#allocation2 + $0x614] sm:$0xf0]  ;;  %v6491_v18 = vld [vmem:[#allocation2 + $0xac] sm:$0xf]  ;;  %v4487_v19 = vld [vmem:[#allocation2 + $0xb8] sm:$0xf0] }
  0x7d   :  { %1483 = vmatmul.bf16.vlgmr.msrb.gmra.mxu2 %v7240_v39  ;;  %v5125_v22 = vld [vmem:[#allocation2 + $0x5a8] sm:$0xf]  ;;  %v6617_v25 = vld [vmem:[#allocation2 + $0x494] sm:$0xf0]  ;;  %v4490_v28 = vor.u32 %v6491_v18, %v4487_v19  ;;  %v4551_v18 = vld [vmem:[#allocation2 + $0x138] sm:$0xf0] }
  0x7e   :  { %1540 = vmatpush.bf16.msra.mxu2 %v4902_v20  ;;  %1514 = vmatpush.bf16.msra.mxu3 %v4646_v23  ;;  %v4694_v20 = vor.u32 %v6545_v13, %v4693_v12  ;;  %v4822_v23 = vor.u32 %v6577_v16, %v4821_v15  ;;  %v4997_v12 = vld [vmem:[#allocation2 + $0x4a8] sm:$0xf]  ;;  %v6621_v13 = vld [vmem:[#allocation2 + $0x4b4] sm:$0xf0]  ;;  %v4631_v15 = vld [vmem:[#allocation2 + $0x1d8] sm:$0xf0]  ;;  %v4506_v16 = vor.u32 %v6495_v5, %v4503_v6 }
  0x7f   :  { %v6609_v52 = vld [vmem:[#allocation2 + $0x454] sm:$0xf0]  ;;  %v4567_v5 = vld [vmem:[#allocation2 + $0x158] sm:$0xf0] }
  0x80   :  { %1503 = vmatpush.bf16.msrb.mxu1 %v4486_v40  ;;  %1529 = vmatpush.bf16.msrb.mxu0 %v4742_v43  ;;  %v4533_v40 = vld [vmem:[#allocation2 + $0x108] sm:$0xf] }
  0x81   :  { %v4789_v43 = vld [vmem:[#allocation2 + $0x308] sm:$0xf] }
  0x82   :  { %1541 = vmatpush.bf16.msra.mxu2 %v4886_v32  ;;  %1515 = vmatpush.bf16.msra.mxu3 %v4630_v36  ;;  %v4405_v32 = vld [vmem:[#allocation2 + $0x8] sm:$0xf]  ;;  %v4790_v61 = vor.u32 %v6569_v45, %v4789_v43  ;;  %v4455_v45 = vld [vmem:[#allocation2 + $0x78] sm:$0xf0] }
  0x83   :  { %v5029_v36 = vld [vmem:[#allocation2 + $0x4e8] sm:$0xf]  ;;  %v4406_v49 = vor.u32 %v6473_v35, %v4405_v32  ;;  %v4982_v32 = vor.u32 %v6617_v25, %v4981_v24  ;;  %v6471_v24 = vld [vmem:[#allocation2 + $0xc] sm:$0xf]  ;;  %v4407_v25 = vld [vmem:[#allocation2 + $0x18] sm:$0xf0] }
  0x84   :  { %1504 = vmatpush.bf16.msrb.mxu1 %v4470_v54  ;;  %1530 = vmatpush.bf16.msrb.mxu0 %v4726_v58  ;;  %v5030_v54 = vor.u32 %v6629_v37, %v5029_v36  ;;  %v6661_v58 = vld [vmem:[#allocation2 + $0x5f4] sm:$0xf0]  ;;  %v5109_v35 = vld [vmem:[#allocation2 + $0x588] sm:$0xf] }
  0x85   :  { %v6649_v36 = vld [vmem:[#allocation2 + $0x594] sm:$0xf0]  ;;  %v4965_v37 = vld [vmem:[#allocation2 + $0x468] sm:$0xf] }
  0x86   :  { %1542 = vmatpush.bf16.msra.mxu2 %v4870_v46  ;;  %1516 = vmatpush.bf16.msra.mxu3 %v4614_v50  ;;  %v5173_v46 = vld [vmem:[#allocation2 + $0x608] sm:$0xf]  ;;  %v6505_v50 = vld [vmem:[#allocation2 + $0x114] sm:$0xf0]  ;;  %v5110_v43 = vor.u32 %v6649_v36, %v5109_v35  ;;  %v6559_v35 = vld [vmem:[#allocation2 + $0x2cc] sm:$0xf]  ;;  %v4410_v36 = vor.u32 %v6471_v24, %v4407_v25 }
  0x87   :  { %v5174_v63 = vor.u32 %v6665_v47, %v5173_v46  ;;  %v4534_v2 = vor.u32 %v6505_v50, %v4533_v40  ;;  %v6519_v40 = vld [vmem:[#allocation2 + $0x18c] sm:$0xf]  ;;  %v6645_v50 = vld [vmem:[#allocation2 + $0x574] sm:$0xf0] }
  0x88   :  { %1505 = vmatpush.bf16.msrb.mxu1 %v4454_v4  ;;  %1531 = vmatpush.bf16.msrb.mxu0 %v4710_v7  ;;  %v5158_v4 = vor.u32 %v6661_v58, %v5157_v56  ;;  %v4602_v47 = vor.u32 %v6519_v40, %v4599_v41  ;;  %v4535_v40 = vld [vmem:[#allocation2 + $0x118] sm:$0xf0]  ;;  %v6579_v24 = vld [vmem:[#allocation2 + $0x36c] sm:$0xf] }
  0x89   :  { %5180 = vmatmul.msk.bf16.vlgmr.msrb.gmra.mxu3 %vm1315_vm0, %v7231_v48 }
  0x8a   :  { %1543 = vmatpush.bf16.msra.mxu2 %v4854_v62  ;;  %1517 = vmatpush.bf16.msra.mxu3 %v4598_v1  ;;  %v6625_v62 = vld [vmem:[#allocation2 + $0x4d4] sm:$0xf0]  ;;  %v4647_v1 = vld [vmem:[#allocation2 + $0x1f8] sm:$0xf0] }
  0x8b   :  { %v5014_v7 = vor.u32 %v6625_v62, %v5013_v59  ;;  %v4650_v8 = vor.u32 %v6531_v0, %v4647_v1  ;;  %v6479_v59 = vld [vmem:[#allocation2 + $0x4c] sm:$0xf]  ;;  %v4950_v62 = vor.u32 %v6609_v52, %v4949_v51  ;;  %v5077_v0 = vld [vmem:[#allocation2 + $0x548] sm:$0xf]  ;;  %v6641_v1 = vld [vmem:[#allocation2 + $0x554] sm:$0xf0] }
  0x8c   :  { %1506 = vmatpush.bf16.msrb.mxu1 %v4438_v17  ;;  %1532 = vmatpush.bf16.msrb.mxu0 %v4694_v20  ;;  %v4998_v20 = vor.u32 %v6621_v13, %v4997_v12  ;;  %v5061_v13 = vld [vmem:[#allocation2 + $0x528] sm:$0xf]  ;;  %v6623_v51 = vld [vmem:[#allocation2 + $0x4cc] sm:$0xf]  ;;  %v5015_v52 = vld [vmem:[#allocation2 + $0x4d8] sm:$0xf0] }
  0x8e   :  { %1544 = vmatpush.bf16.msra.mxu2 %v4838_v11  ;;  %1518 = vmatpush.bf16.msra.mxu3 %v4582_v14  ;;  %v6657_v11 = vld [vmem:[#allocation2 + $0x5d4] sm:$0xf0]  ;;  %v6527_v14 = vld [vmem:[#allocation2 + $0x1cc] sm:$0xf] }
  0x8f   :  { %v5142_v17 = vor.u32 %v6657_v11, %v5141_v10  ;;  %v4634_v21 = vor.u32 %v6527_v14, %v4631_v15  ;;  %v4423_v10 = vld [vmem:[#allocation2 + $0x38] sm:$0xf0]  ;;  %v6637_v14 = vld [vmem:[#allocation2 + $0x534] sm:$0xf0]  ;;  %v4917_v15 = vld [vmem:[#allocation2 + $0x408] sm:$0xf] }
  0x90   :  { %1507 = vmatpush.bf16.msrb.mxu1 %v4422_v29  ;;  %1533 = vmatpush.bf16.msrb.mxu0 %v4678_v33 }
  0x92   :  { %1545 = vmatpush.bf16.msra.mxu2 %v4822_v23  ;;  %1519 = vmatpush.bf16.msra.mxu3 %v4566_v26  ;;  %v6653_v23 = vld [vmem:[#allocation2 + $0x5b4] sm:$0xf0]  ;;  %v6523_v26 = vld [vmem:[#allocation2 + $0x1ac] sm:$0xf] }
  0x93   :  { %v5126_v29 = vor.u32 %v6653_v23, %v5125_v22  ;;  %v4618_v33 = vor.u32 %v6523_v26, %v4615_v27  ;;  %v5062_v22 = vor.u32 %v6637_v14, %v5061_v13  ;;  %v5045_v23 = vld [vmem:[#allocation2 + $0x508] sm:$0xf]  ;;  %v4855_v14 = vld [vmem:[#allocation2 + $0x398] sm:$0xf0] }
  0x94   :  { %1508 = vmatpush.bf16.msrb.mxu1 %v4406_v49  ;;  %1534 = vmatpush.bf16.msrb.mxu0 %v4662_v55  ;;  %v5093_v49 = vld [vmem:[#allocation2 + $0x568] sm:$0xf]  ;;  %v4583_v55 = vld [vmem:[#allocation2 + $0x178] sm:$0xf0] }
  0x95   :  { %v5094_v58 = vor.u32 %v6645_v50, %v5093_v49  ;;  %v4887_v50 = vld [vmem:[#allocation2 + $0x3d8] sm:$0xf0] }
  0x96   :  { %1546 = vmatpush.bf16.msra.mxu2 %v4806_v38  ;;  %1520 = vmatpush.bf16.msra.mxu3 %v4550_v44  ;;  %v6613_v38 = vld [vmem:[#allocation2 + $0x474] sm:$0xf0]  ;;  %v6483_v44 = vld [vmem:[#allocation2 + $0x6c] sm:$0xf] }
  0x97   :  { %1535 = vmatmul.bf16.vlgmr.msrb.gmra.mxu0 %v7216_v53  ;;  %1509 = vmatmul.bf16.vlgmr.msrb.gmra.mxu1 %v7218_v57  ;;  %v4966_v46 = vor.u32 %v6613_v38, %v4965_v37  ;;  %v4458_v56 = vor.u32 %v6483_v44, %v4455_v45  ;;  %v4759_v37 = vld [vmem:[#allocation2 + $0x2d8] sm:$0xf0]  ;;  %v6503_v38 = vld [vmem:[#allocation2 + $0x10c] sm:$0xf] }
  0x98   :  { %1553 = vmatpush.bf16.msra.mxu1 %v5030_v54  ;;  %1586 = vmatpush.bf16.msra.mxu0 %v5174_v63  ;;  %v6515_v54 = vld [vmem:[#allocation2 + $0x16c] sm:$0xf]  ;;  %v4538_v49 = vor.u32 %v6503_v38, %v4535_v40 }
  0x99   :  { %v4586_v63 = vor.u32 %v6515_v54, %v4583_v55  ;;  %v6555_v55 = vld [vmem:[#allocation2 + $0x2ac] sm:$0xf] }
  0x9a   :  { %1547 = vmatpush.bf16.msra.mxu2 %v4790_v61  ;;  %1521 = vmatpush.bf16.msra.mxu3 %v4534_v2  ;;  %v4439_v61 = vld [vmem:[#allocation2 + $0x58] sm:$0xf0]  ;;  %v4933_v2 = vld [vmem:[#allocation2 + $0x428] sm:$0xf]  ;;  %v6575_v38 = vld [vmem:[#allocation2 + $0x34c] sm:$0xf] }
  0x9b   :  { %v4442_v6 = vor.u32 %v6479_v59, %v4439_v61  ;;  %v5143_v59 = vld [vmem:[#allocation2 + $0x5d8] sm:$0xf0] }
  0x9c   :  { %1554 = vmatpush.bf16.msra.mxu1 %v5014_v7  ;;  %1605 = vmatpush.bf16.msrb.mxu0 %v4650_v8  ;;  %v5078_v7 = vor.u32 %v6641_v1, %v5077_v0  ;;  %v6475_v8 = vld [vmem:[#allocation2 + $0x2c] sm:$0xf]  ;;  %v4871_v1 = vld [vmem:[#allocation2 + $0x3b8] sm:$0xf0] }
  0x9d   :  { %1522 = vmatmul.bf16.vlgmr.msra.gmra.mxu3 %v7224_v9  ;;  %1548 = vmatmul.bf16.vlgmr.msra.gmra.mxu2 %v7220_v60  ;;  %v4426_v19 = vor.u32 %v6475_v8, %v4423_v10  ;;  %v5127_v8 = vld [vmem:[#allocation2 + $0x5b8] sm:$0xf0] }
  0x9e   :  { %1592 = vmatpush.bf16.msrb.mxu2 %v4522_v3  ;;  %1566 = vmatpush.bf16.msrb.mxu3 %v5158_v4  ;;  %v6605_v3 = vld [vmem:[#allocation2 + $0x434] sm:$0xf0]  ;;  %v6511_v4 = vld [vmem:[#allocation2 + $0x14c] sm:$0xf] }
  0x9f   :  { %v4934_v11 = vor.u32 %v6605_v3, %v4933_v2  ;;  %v4570_v12 = vor.u32 %v6511_v4, %v4567_v5  ;;  %v6619_v2 = vld [vmem:[#allocation2 + $0x4ac] sm:$0xf]  ;;  %v4999_v3 = vld [vmem:[#allocation2 + $0x4b8] sm:$0xf0] }
  0xa0   :  { %1555 = vmatpush.bf16.msra.mxu1 %v4998_v20  ;;  %1606 = vmatpush.bf16.msrb.mxu0 %v4634_v21  ;;  %v6563_v20 = vld [vmem:[#allocation2 + $0x2ec] sm:$0xf]  ;;  %v4775_v21 = vld [vmem:[#allocation2 + $0x2f8] sm:$0xf0] }
  0xa1   :  { %v4778_v31 = vor.u32 %v6563_v20, %v4775_v21  ;;  %v6551_v5 = vld [vmem:[#allocation2 + $0x28c] sm:$0xf]  ;;  %v5111_v21 = vld [vmem:[#allocation2 + $0x598] sm:$0xf0] }
  0xa2   :  { %1593 = vmatpush.bf16.msrb.mxu2 %v4506_v16  ;;  %1567 = vmatpush.bf16.msrb.mxu3 %v5142_v17  ;;  %v6601_v16 = vld [vmem:[#allocation2 + $0x414] sm:$0xf0]  ;;  %v6507_v17 = vld [vmem:[#allocation2 + $0x12c] sm:$0xf] }
  0xa3   :  { %v4918_v26 = vor.u32 %v6601_v16, %v4917_v15  ;;  %v4554_v27 = vor.u32 %v6507_v17, %v4551_v18  ;;  %v6615_v15 = vld [vmem:[#allocation2 + $0x48c] sm:$0xf]  ;;  %v4983_v16 = vld [vmem:[#allocation2 + $0x498] sm:$0xf0] }
  0xa4   :  { %1556 = vmatpush.bf16.msra.mxu1 %v4982_v32  ;;  %1607 = vmatpush.bf16.msrb.mxu0 %v4618_v33  ;;  %v6627_v32 = vld [vmem:[#allocation2 + $0x4ec] sm:$0xf]  ;;  %v5031_v33 = vld [vmem:[#allocation2 + $0x4f8] sm:$0xf0] }
  0xa5   :  { %v5034_v45 = vor.u32 %v6627_v32, %v5031_v33  ;;  %v6547_v18 = vld [vmem:[#allocation2 + $0x26c] sm:$0xf]  ;;  %v5095_v33 = vld [vmem:[#allocation2 + $0x578] sm:$0xf0] }
  0xa6   :  { %1594 = vmatpush.bf16.msrb.mxu2 %v4490_v28  ;;  %1568 = vmatpush.bf16.msrb.mxu3 %v5126_v29  ;;  %v6633_v28 = vld [vmem:[#allocation2 + $0x514] sm:$0xf0]  ;;  %v6595_v29 = vld [vmem:[#allocation2 + $0x3ec] sm:$0xf] }
  0xa7   :  { %5181 = vmatmul.msk.bf16.vlgmr.msra.gmra.mxu0 %vm1315_vm0, %v7231_v48  ;;  %v5046_v41 = vor.u32 %v6633_v28, %v5045_v23  ;;  %v4906_v44 = vor.u32 %v6595_v29, %v4903_v30  ;;  %v4986_v23 = vor.u32 %v6615_v15, %v4983_v16  ;;  %v4967_v28 = vld [vmem:[#allocation2 + $0x478] sm:$0xf0]  ;;  %v6543_v30 = vld [vmem:[#allocation2 + $0x24c] sm:$0xf] }
  0xa8   :  { %1557 = vmatpush.bf16.msra.mxu1 %v4966_v46  ;;  %1608 = vmatpush.bf16.msrb.mxu0 %v4602_v47  ;;  %v6591_v46 = vld [vmem:[#allocation2 + $0x3cc] sm:$0xf]  ;;  %v4762_v47 = vor.u32 %v6559_v35, %v4759_v37  ;;  %v4919_v15 = vld [vmem:[#allocation2 + $0x418] sm:$0xf0] }
  0xa9   :  { %v4890_v61 = vor.u32 %v6591_v46, %v4887_v50  ;;  %v6643_v32 = vld [vmem:[#allocation2 + $0x56c] sm:$0xf] }
  0xaa   :  { %1595 = vmatpush.bf16.msrb.mxu2 %v4474_v42  ;;  %1569 = vmatpush.bf16.msrb.mxu3 %v5110_v43  ;;  %v6659_v42 = vld [vmem:[#allocation2 + $0x5ec] sm:$0xf]  ;;  %v5159_v43 = vld [vmem:[#allocation2 + $0x5f8] sm:$0xf0] }
  0xab   :  { %v5162_v54 = vor.u32 %v6659_v42, %v5159_v43  ;;  %v4823_v42 = vld [vmem:[#allocation2 + $0x358] sm:$0xf0]  ;;  %v6607_v43 = vld [vmem:[#allocation2 + $0x44c] sm:$0xf] }
  0xac   :  { %1558 = vmatpush.bf16.msra.mxu1 %v4950_v62  ;;  %1609 = vmatpush.bf16.msrb.mxu0 %v4586_v63  ;;  %v5018_v62 = vor.u32 %v6623_v51, %v5015_v52  ;;  %v6587_v63 = vld [vmem:[#allocation2 + $0x3ac] sm:$0xf]  ;;  %v5079_v51 = vld [vmem:[#allocation2 + $0x558] sm:$0xf0]  ;;  %v4826_v52 = vor.u32 %v6575_v38, %v4823_v42  ;;  %v5225_v42 = vld [vmem:[#allocation4 + $0x50] sm:$0xf] }
  0xad   :  { %v4874_v10 = vor.u32 %v6587_v63, %v4871_v1  ;;  %v6539_v46 = vld [vmem:[#allocation2 + $0x22c] sm:$0xf] }
  0xae   :  { %1596 = vmatpush.bf16.msrb.mxu2 %v4458_v56  ;;  %1570 = vmatpush.bf16.msrb.mxu3 %v5094_v58  ;;  %v4743_v56 = vld [vmem:[#allocation2 + $0x2b8] sm:$0xf0]  ;;  %v6655_v58 = vld [vmem:[#allocation2 + $0x5cc] sm:$0xf] }
  0xaf   :  { %v4746_v0 = vor.u32 %v6555_v55, %v4743_v56  ;;  %v5146_v4 = vor.u32 %v6655_v58, %v5143_v59  ;;  %v6639_v50 = vld [vmem:[#allocation2 + $0x54c] sm:$0xf]  ;;  %v4807_v58 = vld [vmem:[#allocation2 + $0x338] sm:$0xf0] }
  0xb0   :  { %1559 = vmatpush.bf16.msra.mxu1 %v4934_v11  ;;  %1610 = vmatpush.bf16.msrb.mxu0 %v4570_v12  ;;  %v5002_v11 = vor.u32 %v6619_v2, %v4999_v3  ;;  %v6583_v12 = vld [vmem:[#allocation2 + $0x38c] sm:$0xf]  ;;  %v5063_v3 = vld [vmem:[#allocation2 + $0x538] sm:$0xf0] }
  0xb1   :  { %v6571_v55 = vld [vmem:[#allocation2 + $0x32c] sm:$0xf] }
  0xb2   :  { %1597 = vmatpush.bf16.msrb.mxu2 %v4442_v6  ;;  %1571 = vmatpush.bf16.msrb.mxu3 %v5078_v7  ;;  %v4727_v6 = vld [vmem:[#allocation2 + $0x298] sm:$0xf0]  ;;  %v6651_v7 = vld [vmem:[#allocation2 + $0x5ac] sm:$0xf] }
  0xb3   :  { %v4730_v13 = vor.u32 %v6551_v5, %v4727_v6  ;;  %v5130_v17 = vor.u32 %v6651_v7, %v5127_v8  ;;  %v6603_v59 = vld [vmem:[#allocation2 + $0x42c] sm:$0xf]  ;;  %v5175_v5 = vld [vmem:[#allocation2 + $0x618] sm:$0xf0]  ;;  %v7273_v6 = vld [vmem:[%s7411_s3] sm:$0xf]  ;;  %v4810_v8 = vor.u32 %v6571_v55, %v4807_v58 }
  0xb4   :  { %1560 = vmatpush.bf16.msra.mxu1 %v4918_v26  ;;  %1611 = vmatpush.bf16.msrb.mxu0 %v4554_v27  ;;  %v4839_v26 = vld [vmem:[#allocation2 + $0x378] sm:$0xf0]  ;;  %v6611_v27 = vld [vmem:[#allocation2 + $0x46c] sm:$0xf] }
  0xb5   :  { %v4970_v37 = vor.u32 %v6611_v27, %v4967_v28  ;;  %v6535_v63 = vld [vmem:[#allocation2 + $0x20c] sm:$0xf] }
  0xb6   :  { %1598 = vmatpush.bf16.msrb.mxu2 %v4426_v19  ;;  %1572 = vmatpush.bf16.msrb.mxu3 %v5062_v22  ;;  %v4711_v19 = vld [vmem:[#allocation2 + $0x278] sm:$0xf0]  ;;  %v4858_v22 = vor.u32 %v6583_v12, %v4855_v14  ;;  %v6635_v1 = vld [vmem:[#allocation2 + $0x52c] sm:$0xf] }
  0xb7   :  { %1561 = vmatmul.bf16.vlgmr.msra.gmra.mxu1 %v7238_v34  ;;  %v4714_v25 = vor.u32 %v6547_v18, %v4711_v19  ;;  %v6599_v14 = vld [vmem:[#allocation2 + $0x40c] sm:$0xf]  ;;  %v5241_v18 = vld [vmem:[#allocation4 + $0x70] sm:$0xf]  ;;  %v6681_v19 = vld [vmem:[#allocation4 + $0x74] sm:$0xf0] }
  0xb8   :  { %1618 = vmatpush.bf16.msrb.mxu1 %v4778_v31  ;;  %1612 = vmatpush.bf16.msrb.mxu0 %v4538_v49  ;;  %v7262_v20 = vpop.f32.mrf.mxu0  ;;  %v7264_v29 = vpop.f32.mrf.mxu1  ;;  %v4695_v31 = vld [vmem:[#allocation2 + $0x258] sm:$0xf0]  ;;  %v4922_v27 = vor.u32 %v6599_v14, %v4919_v15  ;;  %v5242_v28 = vor.u32 %v6681_v19, %v5241_v18  ;;  %v5257_v15 = vld [vmem:[#allocation4 + $0x90] sm:$0xf]  ;;  %v5185_v19 = vld [vmem:[#allocation4] sm:$0xf] }
  0xb9   :  { %v4698_v40 = vor.u32 %v6543_v30, %v4695_v31  ;;  %v5233_v30 = vld [vmem:[#allocation4 + $0x60] sm:$0xf]  ;;  %v6679_v31 = vld [vmem:[#allocation4 + $0x64] sm:$0xf0] }
  0xba   :  { %1599 = vmatpush.bf16.msrb.mxu2 %v4410_v36  ;;  %1573 = vmatpush.bf16.msrb.mxu3 %v5046_v41  ;;  %v4842_v36 = vor.u32 %v6579_v24, %v4839_v26  ;;  %v6697_v24 = vld [vmem:[#allocation4 + $0xf4] sm:$0xf0] }
  0xbb   :  { %1613 = vmatmul.bf16.vlgmr.msrb.gmra.mxu0 %v7224_v9  ;;  %v7266_v35 = vpop.f32.mrf.mxu2 }
  0xbc   :  { %1619 = vmatpush.bf16.msrb.mxu1 %v4762_v47  ;;  %1657 = vmatpush.bf16.msra.mxu0 %v5162_v54  ;;  %v7268_v41 = vpop.f32.mrf.mxu3  ;;  %v4679_v47 = vld [vmem:[#allocation2 + $0x238] sm:$0xf0] }
  0xbd   :  { %1574 = vmatmul.bf16.vlgmr.msrb.gmra.mxu3 %v7240_v39  ;;  %1600 = vmatmul.bf16.vlgmr.msrb.gmra.mxu2 %v7218_v57  ;;  %v6647_v57 = vld [vmem:[#allocation2 + $0x58c] sm:$0xf]  ;;  %v4682_v56 = vor.u32 %v6539_v46, %v4679_v47  ;;  %v6693_v46 = vld [vmem:[#allocation4 + $0xd4] sm:$0xf0] }
  0xbe   :  { %1631 = vmatpush.bf16.msra.mxu3 %v4906_v44  ;;  %1644 = vmatpush.bf16.msra.mxu2 %v5034_v45  ;;  %v5114_v9 = vor.u32 %v6647_v57, %v5111_v21  ;;  %v4951_v44 = vld [vmem:[#allocation2 + $0x458] sm:$0xf0]  ;;  %v5098_v45 = vor.u32 %v6643_v32, %v5095_v33  ;;  %v6631_v57 = vld [vmem:[#allocation2 + $0x50c] sm:$0xf]  ;;  %v5297_v33 = vld [vmem:[#allocation4 + $0xe0] sm:$0xf] }
  0xbf   :  { %v4954_v54 = vor.u32 %v6607_v43, %v4951_v44  ;;  %v6677_v43 = vld [vmem:[#allocation4 + $0x54] sm:$0xf0] }
  0xc0   :  { %1620 = vmatpush.bf16.msrb.mxu1 %v4746_v0  ;;  %1658 = vmatpush.bf16.msra.mxu0 %v5146_v4  ;;  %v1330_v49 = vpop.f32.mrf.mxu0  ;;  %v4663_v0 = vld [vmem:[#allocation2 + $0x218] sm:$0xf0]  ;;  %v1343_v2 = vpop.f32.mrf.mxu1  ;;  %v6663_v4 = vld [vmem:[#allocation2 + $0x60c] sm:$0xf] }
  0xc1   :  { %v4666_v12 = vor.u32 %v6535_v63, %v4663_v0  ;;  %v5178_v21 = vor.u32 %v6663_v4, %v5175_v5  ;;  %v6675_v49 = vld [vmem:[#allocation4 + $0x44] sm:$0xf0]  ;;  %v5265_v5 = vld [vmem:[#allocation4 + $0xa0] sm:$0xf] }
  0xc2   :  { %1632 = vmatpush.bf16.msra.mxu3 %v4890_v61  ;;  %1645 = vmatpush.bf16.msra.mxu2 %v5018_v62  ;;  %v4935_v61 = vld [vmem:[#allocation2 + $0x438] sm:$0xf0]  ;;  %v5082_v62 = vor.u32 %v6639_v50, %v5079_v51  ;;  %v6671_v2 = vld [vmem:[#allocation4 + $0x24] sm:$0xf0] }
  0xc3   :  { %v1356_v7 = vpop.f32.mrf.mxu2 }
  0xc4   :  { %1621 = vmatpush.bf16.msrb.mxu1 %v4730_v13  ;;  %1659 = vmatpush.bf16.msra.mxu0 %v5130_v17  ;;  %v4791_v13 = vld [vmem:[#allocation2 + $0x318] sm:$0xf0]  ;;  %v1369_v16 = vpop.f32.mrf.mxu3  ;;  %v5066_v17 = vor.u32 %v6635_v1, %v5063_v3  ;;  %v5201_v1 = vld [vmem:[#allocation4 + $0x20] sm:$0xf]  ;;  %v6687_v7 = vld [vmem:[#allocation4 + $0xa4] sm:$0xf0] }
  0xc5   :  { %v5266_v14 = vor.u32 %v6687_v7, %v5265_v5  ;;  %v6685_v16 = vld [vmem:[#allocation4 + $0x94] sm:$0xf0]  ;;  %v6670_v7 = vld [vmem:[#allocation4 + $0x24] sm:$0xf] }
  0xc6   :  { %1633 = vmatpush.bf16.msra.mxu3 %v4874_v10  ;;  %1646 = vmatpush.bf16.msra.mxu2 %v5002_v11  ;;  %v4938_v10 = vor.u32 %v6603_v59, %v4935_v61  ;;  %v6567_v11 = vld [vmem:[#allocation2 + $0x30c] sm:$0xf]  ;;  %v6673_v59 = vld [vmem:[#allocation4 + $0x34] sm:$0xf0]  ;;  %v5273_v61 = vld [vmem:[#allocation4 + $0xb0] sm:$0xf] }
  0xc7   :  { %v4794_v26 = vor.u32 %v6567_v11, %v4791_v13  ;;  %v6669_v13 = vld [vmem:[#allocation4 + $0x14] sm:$0xf0] }
  0xc8   :  { %1622 = vmatpush.bf16.msrb.mxu1 %v4714_v25  ;;  %1660 = vmatpush.bf16.msra.mxu0 %v5114_v9  ;;  %v303_v25 = vperm.slane %v7273_v6, 0 }
  0xca   :  { %1634 = vmatpush.bf16.msra.mxu3 %v4858_v22  ;;  %1647 = vmatpush.bf16.msra.mxu2 %v4986_v23  ;;  %v5047_v22 = vld [vmem:[#allocation2 + $0x518] sm:$0xf0]  ;;  %v5305_v23 = vld [vmem:[#allocation4 + $0xf0] sm:$0xf] }
  0xcb   :  { %v5050_v9 = vor.u32 %v6631_v57, %v5047_v22  ;;  %v5306_v32 = vor.u32 %v6697_v24, %v5305_v23  ;;  %v6667_v57 = vld [vmem:[#allocation4 + $0x4] sm:$0xf0]  ;;  %v5243_v23 = vld [vmem:[#allocation4 + $0x78] sm:$0xf0]  ;;  %v5249_v24 = vld [vmem:[#allocation4 + $0x80] sm:$0xf] }
  0xcc   :  { %1623 = vmatpush.bf16.msrb.mxu1 %v4698_v40  ;;  %1661 = vmatpush.bf16.msra.mxu0 %v5098_v45  ;;  %v1406_v38 = vpop.f32.mrf.mxu2  ;;  %v5234_v40 = vor.u32 %v6679_v31, %v5233_v30  ;;  %v5289_v45 = vld [vmem:[#allocation4 + $0xd0] sm:$0xf] }
  0xcd   :  { %v5290_v50 = vor.u32 %v6693_v46, %v5289_v45  ;;  %v5227_v45 = vld [vmem:[#allocation4 + $0x58] sm:$0xf0] }
  0xce   :  { %1635 = vmatpush.bf16.msra.mxu3 %v4842_v36  ;;  %1648 = vmatpush.bf16.msra.mxu2 %v4970_v37  ;;  %v6695_v36 = vld [vmem:[#allocation4 + $0xe4] sm:$0xf0]  ;;  %v1329_v37 = vadd.f32 %v7262_v20, %v303_v25  ;;  %v5217_v20 = vld [vmem:[#allocation4 + $0x40] sm:$0xf] }
  0xcf   :  { %v5298_v44 = vor.u32 %v6695_v36, %v5297_v33  ;;  %v5218_v58 = vor.u32 %v6675_v49, %v5217_v20  ;;  %v6683_v25 = vld [vmem:[#allocation4 + $0x84] sm:$0xf0]  ;;  %v6678_v33 = vld [vmem:[#allocation4 + $0x64] sm:$0xf]  ;;  %v5235_v36 = vld [vmem:[#allocation4 + $0x68] sm:$0xf0] }
  0xd0   :  { %1624 = vmatpush.bf16.msrb.mxu1 %v4682_v56  ;;  %1662 = vmatpush.bf16.msra.mxu0 %v5082_v62  ;;  %v1342_v47 = vadd.f32 %v7264_v29, %v1329_v37  ;;  %v5209_v29 = vld [vmem:[#allocation4 + $0x30] sm:$0xf]  ;;  %v6674_v49 = vld [vmem:[#allocation4 + $0x44] sm:$0xf] }
  0xd1   :  { %v5210_v63 = vor.u32 %v6673_v59, %v5209_v29  ;;  %v5361_v29 = vld [vmem:[#allocation4 + $0x160] sm:$0xf]  ;;  %v6711_v59 = vld [vmem:[#allocation4 + $0x164] sm:$0xf0] }
  0xd2   :  { %1636 = vmatpush.bf16.msra.mxu3 %v4826_v52  ;;  %1649 = vmatpush.bf16.msra.mxu2 %v4954_v54  ;;  %v5281_v52 = vld [vmem:[#allocation4 + $0xc0] sm:$0xf]  ;;  %v6691_v54 = vld [vmem:[#allocation4 + $0xc4] sm:$0xf0]  ;;  %v1355_v55 = vadd.f32 %v7266_v35, %v1342_v47  ;;  %v6692_v47 = vld [vmem:[#allocation4 + $0xd4] sm:$0xf] }
  0xd4   :  { %1625 = vmatpush.bf16.msrb.mxu1 %v4666_v12  ;;  %1663 = vmatpush.bf16.msra.mxu0 %v5066_v17  ;;  %v1380_v51 = vpop.f32.mrf.mxu0  ;;  %v1408_v56 = vpop.f32.mrf.mxu2  ;;  %v1368_v62 = vadd.f32 %v7268_v41, %v1355_v55  ;;  %v5193_v12 = vld [vmem:[#allocation4 + $0x10] sm:$0xf] }
  0xd5   :  { %v5194_v17 = vor.u32 %v6669_v13, %v5193_v12  ;;  %v5369_v55 = vld [vmem:[#allocation4 + $0x170] sm:$0xf]  ;;  %v5267_v13 = vld [vmem:[#allocation4 + $0xa8] sm:$0xf0] }
  0xd6   :  { %1637 = vmatpush.bf16.msra.mxu3 %v4810_v8  ;;  %1650 = vmatpush.bf16.msra.mxu2 %v4938_v10  ;;  %v1381_v0 = vadd.f32 %v1380_v51, %v1368_v62  ;;  %v5202_v10 = vor.u32 %v6671_v2, %v5201_v1  ;;  %v6672_v62 = vld [vmem:[#allocation4 + $0x34] sm:$0xf]  ;;  %v5362_v1 = vor.u32 %v6711_v59, %v5361_v29  ;;  %v6699_v29 = vld [vmem:[#allocation4 + $0x104] sm:$0xf0] }
  0xd7   :  { %1626 = vmatmul.bf16.vlgmr.msrb.gmra.mxu1 %v7216_v53  ;;  %v5226_v53 = vor.u32 %v6677_v43, %v5225_v42  ;;  %v5238_v43 = vor.u32 %v6678_v33, %v5235_v36  ;;  %v6688_v2 = vld [vmem:[#allocation4 + $0xb4] sm:$0xf]  ;;  %v6682_v33 = vld [vmem:[#allocation4 + $0x84] sm:$0xf]  ;;  %v6705_v36 = vld [vmem:[#allocation4 + $0x134] sm:$0xf0] }
  0xd8   :  { %1677 = vmatpush.bf16.msra.mxu1 %v5178_v21  ;;  %1664 = vmatpush.bf16.msra.mxu0 %v5050_v9  ;;  %v6680_v21 = vld [vmem:[#allocation4 + $0x74] sm:$0xf] }
  0xd9   :  { %v5246_v31 = vor.u32 %v6680_v21, %v5243_v23  ;;  %v6668_v21 = vld [vmem:[#allocation4 + $0x14] sm:$0xf] }
  0xda   :  { %1638 = vmatpush.bf16.msra.mxu3 %v4794_v26  ;;  %1651 = vmatpush.bf16.msra.mxu2 %v4922_v27  ;;  %v6696_v26 = vld [vmem:[#allocation4 + $0xf4] sm:$0xf]  ;;  %v5307_v27 = vld [vmem:[#allocation4 + $0xf8] sm:$0xf0] }
  0xdb   :  { %1665 = vmatmul.bf16.vlgmr.msra.gmra.mxu0 %v7240_v39  ;;  %v6689_v39 = vld [vmem:[#allocation4 + $0xb4] sm:$0xf0]  ;;  %v5310_v37 = vor.u32 %v6696_v26, %v5307_v27  ;;  %v6684_v23 = vld [vmem:[#allocation4 + $0x94] sm:$0xf]  ;;  %v6707_v26 = vld [vmem:[#allocation4 + $0x144] sm:$0xf0] }
  0xdc   :  { %2094 = vmatpush.bf16.msrb.mxu1 %v5306_v32  ;;  %v5274_v3 = vor.u32 %v6689_v39, %v5273_v61  ;;  %v7284_v35 = vpop.f32.mrf.mxu3  ;;  %v1382_v4 = vpop.f32.mrf.mxu0  ;;  %v5250_v32 = vor.u32 %v6683_v25, %v5249_v24  ;;  %v304_v61 = vperm.slane %v7273_v6, 1  ;;  %v5259_v24 = vld [vmem:[#allocation4 + $0x98] sm:$0xf0]  ;;  %v5345_v25 = vld [vmem:[#allocation4 + $0x140] sm:$0xf] }
  0xdd   :  { %1639 = vmatmul.bf16.vlgmr.msra.gmra.mxu3 %v7220_v60  ;;  %1652 = vmatmul.bf16.vlgmr.msra.gmra.mxu2 %v7238_v34  ;;  %v1393_v60 = vpop.f32.mrf.mxu1  ;;  %v5282_v34 = vor.u32 %v6691_v54, %v5281_v52  ;;  %v6690_v52 = vld [vmem:[#allocation4 + $0xc4] sm:$0xf]  ;;  %v5283_v54 = vld [vmem:[#allocation4 + $0xc8] sm:$0xf0] }
  0xde   :  { %2081 = vmatpush.bf16.msrb.mxu3 %v5242_v28  ;;  %v1394_v41 = vadd.f32 %v1393_v60, %v1381_v0  ;;  %v5186_v28 = vor.u32 %v6667_v57, %v5185_v19  ;;  %v6713_v60 = vld [vmem:[#allocation4 + $0x174] sm:$0xf0]  ;;  %v5286_v0 = vor.u32 %v6690_v52, %v5283_v54  ;;  %v1420_v5 = vadd.f32 %v7284_v35, %v304_v61  ;;  %v6712_v61 = vld [vmem:[#allocation4 + $0x174] sm:$0xf] }
  0xe0   :  { %2095 = vmatpush.bf16.msrb.mxu1 %v5298_v44  ;;  %v7288_v11 = vpop.f32.mrf.mxu2  ;;  %v1407_v18 = vadd.f32 %v1406_v38, %v1394_v41  ;;  %v6694_v38 = vld [vmem:[#allocation4 + $0xe4] sm:$0xf]  ;;  %v6676_v44 = vld [vmem:[#allocation4 + $0x54] sm:$0xf] }
  0xe1   :  { %v5230_v20 = vor.u32 %v6676_v44, %v5227_v45  ;;  %v6686_v41 = vld [vmem:[#allocation4 + $0xa4] sm:$0xf]  ;;  %v1433_v57 = vadd.f32 %v7288_v11, %v1420_v5  ;;  %v5337_v11 = vld [vmem:[#allocation4 + $0x130] sm:$0xf]  ;;  %v6703_v44 = vld [vmem:[#allocation4 + $0x124] sm:$0xf0] }
  0xe2   :  { %2082 = vmatpush.bf16.msrb.mxu3 %v5234_v40  ;;  %v1683_v30 = vmax.f32 %v1407_v18, 0.0  ;;  %v5299_v40 = vld [vmem:[#allocation4 + $0xe8] sm:$0xf0] }
  0xe3   :  { %v5302_v46 = vor.u32 %v6694_v38, %v5299_v40  ;;  %v5251_v38 = vld [vmem:[#allocation4 + $0x88] sm:$0xf0]  ;;  %v5338_v40 = vor.u32 %v6705_v36, %v5337_v11 }
  0xe4   :  { %2096 = vmatpush.bf16.msrb.mxu1 %v5290_v50  ;;  %v1421_v22 = vpop.f32.mrf.mxu3  ;;  %v7290_v42 = vpack.c.bf16 %v1683_v30, %v1683_v30  ;;  %v5219_v50 = vld [vmem:[#allocation4 + $0x48] sm:$0xf0]  ;;  %v6666_v30 = vld [vmem:[#allocation4 + $0x4] sm:$0xf] }
  0xe5   :  { %v1395_v8 = vpop.f32.mrf.mxu1  ;;  %v5270_v22 = vor.u32 %v6686_v41, %v5267_v13  ;;  %v6727_v13 = vld [vmem:[#allocation4 + $0x1e4] sm:$0xf0] }
  0xe6   :  { %2083 = vmatpush.bf16.msrb.mxu3 %v5226_v53  ;;  %v5291_v53 = vld [vmem:[#allocation4 + $0xd8] sm:$0xf0]  ;;  %v5203_v8 = vld [vmem:[#allocation4 + $0x28] sm:$0xf0] }
  0xe7   :  { %5182 = vmatmul.msk.bf16.vlgmr.msra.gmra.mxu1 %vm1315_vm0, %v7231_v48  ;;  %v5258_v48 = vor.u32 %v6685_v16, %v5257_v15  ;;  %v5294_v51 = vor.u32 %v6692_v47, %v5291_v53  ;;  %v6709_v15 = vld [vmem:[#allocation4 + $0x154] sm:$0xf0]  ;;  %v5206_v19 = vor.u32 %v6670_v7, %v5203_v8  ;;  %v6708_v8 = vld [vmem:[#allocation4 + $0x154] sm:$0xf] }
  0xe8   :  { %2097 = vmatpush.bf16.msrb.mxu1 %v5282_v34  ;;  %v1434_v9 = vpop.f32.mrf.mxu2  ;;  %v5222_v34 = vor.u32 %v6674_v49, %v5219_v50  ;;  %v5321_v50 = vld [vmem:[#allocation4 + $0x110] sm:$0xf] }
  0xea   :  { %2084 = vmatpush.bf16.msrb.mxu3 %v5218_v58  ;;  %v5370_v58 = vor.u32 %v6713_v60, %v5369_v55 }
  0xec   :  { %2098 = vmatpush.bf16.msrb.mxu1 %v5274_v3  ;;  %2107 = vmatpush.bf16.msrb.mxu2 %v5370_v58  ;;  %v5275_v3 = vld [vmem:[#allocation4 + $0xb8] sm:$0xf0]  ;;  %v5313_v58 = vld [vmem:[#allocation4 + $0x100] sm:$0xf] }
  0xee   :  { %2085 = vmatpush.bf16.msrb.mxu3 %v5210_v63  ;;  %v5211_v63 = vld [vmem:[#allocation4 + $0x38] sm:$0xf0] }
  0xef   :  { %v5214_v4 = vor.u32 %v6672_v62, %v5211_v63  ;;  %v6710_v62 = vld [vmem:[#allocation4 + $0x164] sm:$0xf] }
  0xf0   :  { %2099 = vmatpush.bf16.msrb.mxu1 %v5266_v14  ;;  %2108 = vmatpush.bf16.msrb.mxu2 %v5362_v1  ;;  %v5353_v14 = vld [vmem:[#allocation4 + $0x150] sm:$0xf] }
  0xf1   :  { %v5433_v1 = vld [vmem:[#allocation4 + $0x1f0] sm:$0xf] }
  0xf2   :  { %2086 = vmatpush.bf16.msrb.mxu3 %v5202_v10  ;;  %v5278_v10 = vor.u32 %v6688_v2, %v5275_v3  ;;  %v6729_v2 = vld [vmem:[#allocation4 + $0x1f4] sm:$0xf0] }
  0xf3   :  { %v5434_v3 = vor.u32 %v6729_v2, %v5433_v1  ;;  %v6726_v2 = vld [vmem:[#allocation4 + $0x1e4] sm:$0xf] }
  0xf4   :  { %2100 = vmatpush.bf16.msrb.mxu1 %v5258_v48  ;;  %v1445_v56 = vpop.f32.mrf.mxu0  ;;  %v1458_v39 = vpop.f32.mrf.mxu1  ;;  %v5195_v48 = vld [vmem:[#allocation4 + $0x18] sm:$0xf0] }
  0xf5   :  { %v1446_v27 = vadd.f32 %v1445_v56, %v1433_v57  ;;  %v5198_v9 = vor.u32 %v6668_v21, %v5195_v48  ;;  %2120 = vmatpush.bf16.msrb.mxu0 %v5434_v3  ;;  %v5417_v48 = vld [vmem:[#allocation4 + $0x1d0] sm:$0xf]  ;;  %v5427_v3 = vld [vmem:[#allocation4 + $0x1e8] sm:$0xf0] }
  0xf6   :  { %2087 = vmatpush.bf16.msrb.mxu3 %v5194_v17  ;;  %v5354_v17 = vor.u32 %v6709_v15, %v5353_v14 }
  0xf7   :  { %v1459_v45 = vadd.f32 %v1458_v39, %v1446_v27  ;;  %v5371_v39 = vld [vmem:[#allocation4 + $0x178] sm:$0xf0]  ;;  %v6723_v27 = vld [vmem:[#allocation4 + $0x1c4] sm:$0xf0] }
  0xf8   :  { %2101 = vmatpush.bf16.msrb.mxu1 %v5250_v32  ;;  %2109 = vmatpush.bf16.msrb.mxu2 %v5354_v17  ;;  %v5262_v32 = vor.u32 %v6684_v23, %v5259_v24  ;;  %v5374_v63 = vor.u32 %v6712_v61, %v5371_v39  ;;  %v6706_v17 = vld [vmem:[#allocation4 + $0x144] sm:$0xf]  ;;  %v6704_v23 = vld [vmem:[#allocation4 + $0x134] sm:$0xf]  ;;  %v5339_v24 = vld [vmem:[#allocation4 + $0x138] sm:$0xf0] }
  0xf9   :  { %v6728_v39 = vld [vmem:[#allocation4 + $0x1f4] sm:$0xf] }
  0xfa   :  { %2088 = vmatpush.bf16.msrb.mxu3 %v5186_v28  ;;  %v5346_v28 = vor.u32 %v6707_v26, %v5345_v25  ;;  %v5342_v25 = vor.u32 %v6704_v23, %v5339_v24  ;;  %v5409_v26 = vld [vmem:[#allocation4 + $0x1c0] sm:$0xf]  ;;  %v6718_v24 = vld [vmem:[#allocation4 + $0x1a4] sm:$0xf] }
  0xfc   :  { %2146 = vmatpush.bf16.msra.mxu1 %v5310_v37  ;;  %v1471_v12 = vpop.f32.mrf.mxu3  ;;  %v1447_v16 = vpop.f32.mrf.mxu0  ;;  %2110 = vmatpush.bf16.msrb.mxu2 %v5346_v28  ;;  %v6702_v28 = vld [vmem:[#allocation4 + $0x124] sm:$0xf] }
  0xfd   :  { %2089 = vmatmul.bf16.vlgmr.msrb.gmra.mxu3 %v7290_v42  ;;  %v1460_v35 = vpop.f32.mrf.mxu1  ;;  %v1472_v53 = vadd.f32 %v1471_v12, %v1459_v45  ;;  %v5425_v12 = vld [vmem:[#allocation4 + $0x1e0] sm:$0xf] }
  0xfe   :  { %2133 = vmatpush.bf16.msra.mxu3 %v5246_v31  ;;  %v5187_v31 = vld [vmem:[#allocation4 + $0x8] sm:$0xf0]  ;;  %v5426_v14 = vor.u32 %v6727_v13, %v5425_v12  ;;  %v6725_v35 = vld [vmem:[#allocation4 + $0x1d4] sm:$0xf0]  ;;  %v5393_v45 = vld [vmem:[#allocation4 + $0x1a0] sm:$0xf] }
  0xff   :  { %v5419_v12 = vld [vmem:[#allocation4 + $0x1d8] sm:$0xf0] }
 0x100   :  { %2147 = vmatpush.bf16.msra.mxu1 %v5302_v46  ;;  %v1484_v18 = vpop.f32.mrf.mxu2  ;;  %v5190_v46 = vor.u32 %v6666_v30, %v5187_v31  ;;  %2111 = vmatpush.bf16.msrb.mxu2 %v5338_v40  ;;  %v5331_v30 = vld [vmem:[#allocation4 + $0x128] sm:$0xf0]  ;;  %v5401_v31 = vld [vmem:[#allocation4 + $0x1b0] sm:$0xf]  ;;  %v5323_v40 = vld [vmem:[#allocation4 + $0x118] sm:$0xf0] }
 0x101   :  { %v1485_v52 = vadd.f32 %v1484_v18, %v1472_v53  ;;  %2121 = vmatpush.bf16.msrb.mxu0 %v5426_v14  ;;  %v5347_v18 = vld [vmem:[#allocation4 + $0x148] sm:$0xf0]  ;;  %v5334_v36 = vor.u32 %v6702_v28, %v5331_v30  ;;  %v5387_v28 = vld [vmem:[#allocation4 + $0x198] sm:$0xf0] }
 0x102   :  { %2134 = vmatpush.bf16.msra.mxu3 %v5238_v43  ;;  %v5329_v43 = vld [vmem:[#allocation4 + $0x120] sm:$0xf]  ;;  %v5350_v21 = vor.u32 %v6706_v17, %v5347_v18  ;;  %v6722_v17 = vld [vmem:[#allocation4 + $0x1c4] sm:$0xf]  ;;  %v5411_v18 = vld [vmem:[#allocation4 + $0x1c8] sm:$0xf0] }
 0x103   :  { %v5330_v49 = vor.u32 %v6703_v44, %v5329_v43  ;;  %v305_v43 = vperm.slane %v7273_v6, 2 }
 0x104   :  { %2148 = vmatpush.bf16.msra.mxu1 %v5294_v51  ;;  %v1473_v37 = vpop.f32.mrf.mxu3  ;;  %v6701_v51 = vld [vmem:[#allocation4 + $0x114] sm:$0xf0] }
 0x105   :  { %2112 = vmatpush.bf16.msrb.mxu2 %v5330_v49  ;;  %v5322_v54 = vor.u32 %v6701_v51, %v5321_v50  ;;  %v6698_v50 = vld [vmem:[#allocation4 + $0x104] sm:$0xf]  ;;  %v5315_v51 = vld [vmem:[#allocation4 + $0x108] sm:$0xf0] }
 0x106   :  { %2135 = vmatpush.bf16.msra.mxu3 %v5230_v20  ;;  %v5254_v20 = vor.u32 %v6682_v33, %v5251_v38  ;;  %v6700_v38 = vld [vmem:[#allocation4 + $0x114] sm:$0xf] }
 0x108   :  { %2149 = vmatpush.bf16.msra.mxu1 %v5286_v0  ;;  %v1486_v47 = vpop.f32.mrf.mxu2  ;;  %v5363_v0 = vld [vmem:[#allocation4 + $0x168] sm:$0xf0] }
 0x109   :  { %2113 = vmatpush.bf16.msrb.mxu2 %v5322_v54  ;;  %v5326_v47 = vor.u32 %v6700_v38, %v5323_v40  ;;  %v5318_v54 = vor.u32 %v6698_v50, %v5315_v51 }
 0x10a   :  { %2136 = vmatpush.bf16.msra.mxu3 %v5222_v34  ;;  %v5314_v34 = vor.u32 %v6699_v29, %v5313_v58 }
 0x10c   :  { %2150 = vmatpush.bf16.msra.mxu1 %v5278_v10  ;;  %v1497_v55 = vpop.f32.mrf.mxu3  ;;  %v5355_v10 = vld [vmem:[#allocation4 + $0x158] sm:$0xf0] }
 0x10d   :  { %v1498_v60 = vadd.f32 %v1497_v55, %v1485_v52  ;;  %2114 = vmatpush.bf16.msrb.mxu2 %v5314_v34  ;;  %v5358_v41 = vor.u32 %v6708_v8, %v5355_v10  ;;  %v5385_v55 = vld [vmem:[#allocation4 + $0x190] sm:$0xf]  ;;  %v6715_v34 = vld [vmem:[#allocation4 + $0x184] sm:$0xf0] }
 0x10e   :  { %2137 = vmatpush.bf16.msra.mxu3 %v5214_v4 }
 0x10f   :  { %v1684_v56 = vmax.f32 %v1498_v60, 0.0  ;;  %v6717_v60 = vld [vmem:[#allocation4 + $0x194] sm:$0xf0] }
 0x110   :  { %2151 = vmatpush.bf16.msra.mxu1 %v5270_v22  ;;  %v5418_v22 = vor.u32 %v6725_v35, %v5417_v48  ;;  %v6720_v35 = vld [vmem:[#allocation4 + $0x1b4] sm:$0xf] }
 0x111   :  { %v1688_v59 = vpack.c.bf16 %v1684_v56, %v1684_v56  ;;  %2159 = vmatpush.bf16.msra.mxu2 %v5374_v63  ;;  %v5386_v56 = vor.u32 %v6717_v60, %v5385_v55 }
 0x112   :  { %2138 = vmatpush.bf16.msra.mxu3 %v5206_v19  ;;  %2122 = vmatpush.bf16.msrb.mxu0 %v5418_v22  ;;  %v5403_v22 = vld [vmem:[#allocation4 + $0x1b8] sm:$0xf0] }
 0x113   :  { %2102 = vmatmul.bf16.vlgmr.msrb.gmra.mxu1 %v1688_v59  ;;  %v5406_v23 = vor.u32 %v6720_v35, %v5403_v22  ;;  %v5539_v35 = vld [vmem:[#allocation6 + $0xd0] sm:$0xf0]  ;;  %v5545_v22 = vld [vmem:[#allocation6 + $0xc8] sm:$0xf] }
 0x114   :  { %2152 = vmatpush.bf16.msra.mxu1 %v5262_v32  ;;  %v1499_v4 = vpop.f32.mrf.mxu3  ;;  %v7297_v5 = vpop.f32.mrf.mxu0  ;;  %v6721_v32 = vld [vmem:[#allocation4 + $0x1b4] sm:$0xf0] }
 0x115   :  { %v1510_v7 = vpop.f32.mrf.mxu1  ;;  %v5402_v37 = vor.u32 %v6721_v32, %v5401_v31  ;;  %v6714_v31 = vld [vmem:[#allocation4 + $0x184] sm:$0xf]  ;;  %v5379_v32 = vld [vmem:[#allocation4 + $0x188] sm:$0xf0] }
 0x116   :  { %2139 = vmatpush.bf16.msra.mxu3 %v5198_v9  ;;  %v5410_v9 = vor.u32 %v6723_v27, %v5409_v26  ;;  %v6716_v27 = vld [vmem:[#allocation4 + $0x194] sm:$0xf] }
 0x117   :  { %v5390_v30 = vor.u32 %v6716_v27, %v5387_v28  ;;  %v5547_v27 = vld [vmem:[#allocation6 + $0xd8] sm:$0xf0]  ;;  %v5521_v28 = vld [vmem:[#allocation6 + $0xa0] sm:$0xf] }
 0x118   :  { %2153 = vmatpush.bf16.msra.mxu1 %v5254_v20  ;;  %2123 = vmatpush.bf16.msrb.mxu0 %v5410_v9  ;;  %v1511_v20 = vadd.f32 %v1510_v7, %v305_v43  ;;  %v5430_v7 = vor.u32 %v6726_v2, %v5427_v3  ;;  %v306_v9 = vperm.slane %v7273_v6, 3 }
 0x11a   :  { %2140 = vmatpush.bf16.msra.mxu3 %v5190_v46  ;;  %v6719_v46 = vld [vmem:[#allocation4 + $0x1a4] sm:$0xf0] }
 0x11b   :  { %v5394_v53 = vor.u32 %v6719_v46, %v5393_v45 }
 0x11c   :  { %v1538_v16 = vpop.f32.mrf.mxu0  ;;  %2124 = vmatpush.bf16.msrb.mxu0 %v5402_v37 }
 0x11d   :  { %2141 = vmatmul.bf16.vlgmr.msra.gmra.mxu3 %v7290_v42  ;;  %v5366_v42 = vor.u32 %v6710_v62, %v5363_v0  ;;  %v1512_v57 = vpop.f32.mrf.mxu1  ;;  %v5435_v62 = vld [vmem:[#allocation4 + $0x1f8] sm:$0xf0] }
 0x11e   :  { %v5438_v63 = vor.u32 %v6728_v39, %v5435_v62  ;;  %v5414_v57 = vor.u32 %v6722_v17, %v5411_v18  ;;  %v5563_v17 = vld [vmem:[#allocation6 + $0xf8] sm:$0xf0] }
 0x11f   :  { %2160 = vmatpush.bf16.msra.mxu2 %v5366_v42 }
 0x120   :  { %v1523_v15 = vpop.f32.mrf.mxu3  ;;  %v1549_v19 = vpop.f32.mrf.mxu2  ;;  %2125 = vmatpush.bf16.msrb.mxu0 %v5394_v53 }
 0x121   :  { %v1524_v52 = vadd.f32 %v1523_v15, %v1511_v20 }
 0x123   :  { %2161 = vmatpush.bf16.msra.mxu2 %v5358_v41  ;;  %2154 = vmatmul.bf16.vlgmr.msra.gmra.mxu1 %v1688_v59  ;;  %v1537_v29 = vadd.f32 %v7297_v5, %v1524_v52  ;;  %v5377_v59 = vld [vmem:[#allocation4 + $0x180] sm:$0xf]  ;;  %v6724_v5 = vld [vmem:[#allocation4 + $0x1d4] sm:$0xf] }
 0x124   :  { %v1588_v11 = vpop.f32.mrf.mxu0  ;;  %2126 = vmatpush.bf16.msrb.mxu0 %v5386_v56  ;;  %v5378_v61 = vor.u32 %v6715_v34, %v5377_v59  ;;  %v5422_v14 = vor.u32 %v6724_v5, %v5419_v12  ;;  %v5555_v5 = vld [vmem:[#allocation6 + $0xf0] sm:$0xf0]  ;;  %v5561_v12 = vld [vmem:[#allocation6 + $0xe8] sm:$0xf] }
 0x125   :  { %v1550_v0 = vadd.f32 %v1549_v19, %v1537_v29 }
 0x127   :  { %2162 = vmatpush.bf16.msra.mxu2 %v5350_v21 }
 0x128   :  { %v1525_v33 = vpop.f32.mrf.mxu3  ;;  %v1551_v44 = vpop.f32.mrf.mxu2  ;;  %2127 = vmatpush.bf16.msrb.mxu0 %v5378_v61 }
 0x12b   :  { %2163 = vmatpush.bf16.msra.mxu2 %v5342_v25  ;;  %v5395_v25 = vld [vmem:[#allocation4 + $0x1a8] sm:$0xf0] }
 0x12c   :  { %v1590_v49 = vpop.f32.mrf.mxu0  ;;  %2172 = vmatpush.bf16.msra.mxu0 %v5438_v63  ;;  %v5398_v26 = vor.u32 %v6718_v24, %v5395_v25 }
 0x12f   :  { %2164 = vmatpush.bf16.msra.mxu2 %v5334_v36  ;;  %v5382_v36 = vor.u32 %v6714_v31, %v5379_v32  ;;  %v6750_v31 = vld [vmem:[#allocation6 + $0xa4] sm:$0xf]  ;;  %v5523_v32 = vld [vmem:[#allocation6 + $0xb0] sm:$0xf0] }
 0x130   :  { %2173 = vmatpush.bf16.msra.mxu0 %v5430_v7  ;;  %v6760_v7 = vld [vmem:[#allocation6 + $0xec] sm:$0xf0] }
 0x133   :  { %2165 = vmatpush.bf16.msra.mxu2 %v5326_v47 }
 0x134   :  { %v1562_v58 = vpop.f32.mrf.mxu1  ;;  %2174 = vmatpush.bf16.msra.mxu0 %v5422_v14 }
 0x135   :  { %v1563_v4 = vadd.f32 %v1562_v58, %v1550_v0  ;;  %v1755_v58 = vld [vmem:[%s7413_s5] sm:$0x3] }
 0x136   :  { %v1757_v29 = vperm.slane %v1755_v58, 0  ;;  %v1758_v0 = vperm.slane %v1755_v58, 1  ;;  %v6744_v58 = vld [vmem:[#allocation6 + $0x6c] sm:$0xf0] }
 0x137   :  { %2166 = vmatpush.bf16.msra.mxu2 %v5318_v54 }
 0x138   :  { %v1614_v1 = vpop.f32.mrf.mxu0  ;;  %2175 = vmatpush.bf16.msra.mxu0 %v5414_v57  ;;  %v6756_v57 = vld [vmem:[#allocation6 + $0xcc] sm:$0xf0] }
 0x13c   :  { %v1564_v42 = vpop.f32.mrf.mxu1  ;;  %2176 = vmatpush.bf16.msra.mxu0 %v5406_v23  ;;  %v6757_v23 = vld [vmem:[#allocation6 + $0xd4] sm:$0xf0] }
 0x13d   :  { %v5553_v42 = vld [vmem:[#allocation6 + $0xe0] sm:$0xf]  ;;  %v5546_v25 = vor.u32 %v6757_v23, %v5545_v22 }
 0x140   :  { %v1575_v8 = vpop.f32.mrf.mxu3  ;;  %v1601_v41 = vpop.f32.mrf.mxu2  ;;  %2177 = vmatpush.bf16.msra.mxu0 %v5398_v26  ;;  %v6755_v26 = vld [vmem:[#allocation6 + $0xcc] sm:$0xf] }
 0x141   :  { %v1576_v10 = vadd.f32 %v1575_v8, %v1563_v4  ;;  %v1616_v16 = vpop.f32.mrf.mxu0  ;;  %v1602_v33 = vadd.f32 %v1601_v41, %v306_v9  ;;  %v6758_v8 = vld [vmem:[#allocation6 + $0xe4] sm:$0xf]  ;;  %v5554_v41 = vor.u32 %v6760_v7, %v5553_v42  ;;  %v5550_v9 = vor.u32 %v6755_v26, %v5547_v27  ;;  %v5473_v7 = vld [vmem:[#allocation6 + $0x40] sm:$0xf]  ;;  %v6735_v26 = vld [vmem:[#allocation6 + $0x2c] sm:$0xf] }
 0x142   :  { %v5558_v14 = vor.u32 %v6758_v8, %v5555_v5  ;;  %v6759_v16 = vld [vmem:[#allocation6 + $0xec] sm:$0xf]  ;;  %v6740_v8 = vld [vmem:[#allocation6 + $0x4c] sm:$0xf0] }
 0x143   :  { %v1589_v13 = vadd.f32 %v1588_v11, %v1576_v10  ;;  %v1615_v37 = vadd.f32 %v1614_v1, %v1602_v33  ;;  %2396 = vmatpush.bf16.msrb.mxu3 %v5554_v41  ;;  %v5566_v18 = vor.u32 %v6759_v16, %v5563_v17  ;;  %v6738_v41 = vld [vmem:[#allocation6 + $0x44] sm:$0xf]  ;;  %v5474_v5 = vor.u32 %v6740_v8, %v5473_v7  ;;  %v6739_v17 = vld [vmem:[#allocation6 + $0x4c] sm:$0xf]  ;;  %v6968_v7 = vld [vmem:[#allocation7 + $0x670] sm:$0xf0] }
 0x144   :  { %2178 = vmatpush.bf16.msra.mxu0 %v5390_v30  ;;  %2409 = vmatpush.bf16.msrb.mxu1 %v5558_v14  ;;  %v6752_v30 = vld [vmem:[#allocation6 + $0xac] sm:$0xf0]  ;;  %v6741_v14 = vld [vmem:[#allocation6 + $0x54] sm:$0xf0] }
 0x145   :  { %v1685_v15 = vmax.f32 %v1589_v13, 0.0  ;;  %v6761_v13 = vld [vmem:[#allocation6 + $0xf4] sm:$0xf0]  ;;  %v5522_v33 = vor.u32 %v6752_v30, %v5521_v28  ;;  %v5441_v30 = vld [vmem:[#allocation6] sm:$0xf] }
 0x146   :  { %v5737_v8 = vld [vmem:[#allocation7 + $0x150] sm:$0xf] }
 0x147   :  { %v1689_v19 = vpack.c.bf16 %v1685_v15, %v1685_v15  ;;  %v5562_v15 = vor.u32 %v6761_v13, %v5561_v12  ;;  %v5475_v12 = vld [vmem:[#allocation6 + $0x50] sm:$0xf0]  ;;  %v5481_v13 = vld [vmem:[#allocation6 + $0x48] sm:$0xf] }
 0x148   :  { %v1577_v21 = vpop.f32.mrf.mxu3  ;;  %v1603_v48 = vpop.f32.mrf.mxu2  ;;  %2179 = vmatpush.bf16.msra.mxu0 %v5382_v36  ;;  %v5529_v36 = vld [vmem:[#allocation6 + $0xa8] sm:$0xf]  ;;  %v5482_v16 = vor.u32 %v6741_v14, %v5481_v13  ;;  %v6919_v13 = vld [vmem:[#allocation7 + $0x4e8] sm:$0xf0] }
 0x149   :  { %2115 = vmatmul.bf16.vlgmr.msrb.gmra.mxu2 %v1689_v19  ;;  %v6754_v21 = vld [vmem:[#allocation6 + $0xc4] sm:$0xf] }
 0x14a   :  { %2422 = vmatpush.bf16.msrb.mxu2 %v5562_v15  ;;  %v5542_v24 = vor.u32 %v6754_v21, %v5539_v35  ;;  %v5478_v15 = vor.u32 %v6738_v41, %v5475_v12  ;;  %v6736_v21 = vld [vmem:[#allocation6 + $0x2c] sm:$0xf0]  ;;  %v5459_v35 = vld [vmem:[#allocation6 + $0x30] sm:$0xf0]  ;;  %v6807_v41 = vld [vmem:[#allocation7 + $0x168] sm:$0xf0] }
 0x14b   :  { %v6185_v12 = vld [vmem:[#allocation7 + $0x4d0] sm:$0xf] }
 0x14c   :  { %2410 = vmatpush.bf16.msrb.mxu1 %v5542_v24  ;;  %v5465_v24 = vld [vmem:[#allocation6 + $0x28] sm:$0xf] }
 0x14e   :  { %2423 = vmatpush.bf16.msrb.mxu2 %v5546_v25  ;;  %v6737_v25 = vld [vmem:[#allocation6 + $0x34] sm:$0xf0] }
 0x14f   :  { %v5466_v28 = vor.u32 %v6737_v25, %v5465_v24 }
 0x154   :  { %v1627_v11 = vpop.f32.mrf.mxu1 }
 0x155   :  { %v1628_v40 = vadd.f32 %v1627_v11, %v1615_v37  ;;  %v5526_v11 = vor.u32 %v6750_v31, %v5523_v32  ;;  %v6753_v37 = vld [vmem:[#allocation6 + $0xb4] sm:$0xf0]  ;;  %v6732_v31 = vld [vmem:[#allocation6 + $0xc] sm:$0xf0] }
 0x157   :  { %2411 = vmatpush.bf16.msrb.mxu1 %v5526_v11  ;;  %v5443_v11 = vld [vmem:[#allocation6 + $0x10] sm:$0xf0] }
 0x158   :  { %v1666_v38 = vpop.f32.mrf.mxu0 }
 0x159   :  { %2167 = vmatmul.bf16.vlgmr.msra.gmra.mxu2 %v1689_v19  ;;  %v5537_v19 = vld [vmem:[#allocation6 + $0xc0] sm:$0xf] }
 0x15a   :  { %v5538_v48 = vor.u32 %v6756_v57, %v5537_v19  ;;  %v5457_v19 = vld [vmem:[#allocation6 + $0x20] sm:$0xf] }
 0x15b   :  { %v5458_v22 = vor.u32 %v6736_v21, %v5457_v19  ;;  %v5709_v19 = vld [vmem:[#allocation7 + $0x118] sm:$0xf] }
 0x15c   :  { %v1629_v43 = vpop.f32.mrf.mxu1  ;;  %2397 = vmatpush.bf16.msrb.mxu3 %v5538_v48  ;;  %v6734_v48 = vld [vmem:[#allocation6 + $0x24] sm:$0xf]  ;;  %v6157_v21 = vld [vmem:[#allocation7 + $0x498] sm:$0xf] }
 0x15d   :  { %v5530_v43 = vor.u32 %v6753_v37, %v5529_v36  ;;  %v5462_v23 = vor.u32 %v6734_v48, %v5459_v35  ;;  %v5449_v36 = vld [vmem:[#allocation6 + $0x8] sm:$0xf]  ;;  %v5442_v37 = vor.u32 %v6732_v31, %v5441_v30  ;;  %v6353_v48 = vld [vmem:[#allocation7 + $0x620] sm:$0xf]  ;;  %v6961_v35 = vld [vmem:[#allocation7 + $0x638] sm:$0xf0] }
 0x15e   :  { %v6129_v30 = vld [vmem:[#allocation7 + $0x460] sm:$0xf]  ;;  %v6905_v31 = vld [vmem:[#allocation7 + $0x478] sm:$0xf0] }
 0x15f   :  { %2424 = vmatpush.bf16.msrb.mxu2 %v5530_v43  ;;  %v5451_v43 = vld [vmem:[#allocation6 + $0x18] sm:$0xf0] }
 0x160   :  { %v1640_v44 = vpop.f32.mrf.mxu3  ;;  %v1653_v46 = vpop.f32.mrf.mxu2  ;;  %2398 = vmatpush.bf16.msrb.mxu3 %v5522_v33  ;;  %v6730_v33 = vld [vmem:[#allocation6 + $0x4] sm:$0xf] }
 0x161   :  { %v1641_v45 = vadd.f32 %v1640_v44, %v1628_v40  ;;  %v1668_v53 = vpop.f32.mrf.mxu0  ;;  %v5531_v44 = vld [vmem:[#allocation6 + $0xb8] sm:$0xf0] }
 0x162   :  { %v6746_v53 = vld [vmem:[#allocation6 + $0x84] sm:$0xf] }
 0x163   :  { %v1654_v47 = vadd.f32 %v1653_v46, %v1641_v45  ;;  %v5505_v46 = vld [vmem:[#allocation6 + $0x80] sm:$0xf] }
 0x164   :  { %v1679_v20 = vpop.f32.mrf.mxu1 }
 0x165   :  { %v1667_v6 = vadd.f32 %v1666_v38, %v1654_v47  ;;  %v6751_v38 = vld [vmem:[#allocation6 + $0xac] sm:$0xf]  ;;  %v6748_v47 = vld [vmem:[#allocation6 + $0x8c] sm:$0xf0] }
 0x166   :  { %v5534_v45 = vor.u32 %v6751_v38, %v5531_v44  ;;  %v6733_v38 = vld [vmem:[#allocation6 + $0x14] sm:$0xf0] }
 0x167   :  { %v1680_v49 = vadd.f32 %v1679_v20, %v1667_v6  ;;  %v5506_v6 = vor.u32 %v6748_v47, %v5505_v46  ;;  %v5507_v20 = vld [vmem:[#allocation6 + $0x90] sm:$0xf0]  ;;  %v5450_v46 = vor.u32 %v6733_v38, %v5449_v36  ;;  %v6842_v36 = vld [vmem:[#allocation7 + $0x280] sm:$0xf0] }
 0x168   :  { %v1642_v50 = vpop.f32.mrf.mxu3  ;;  %v1655_v51 = vpop.f32.mrf.mxu2  ;;  %v6954_v38 = vld [vmem:[#allocation7 + $0x600] sm:$0xf0] }
 0x169   :  { %v1686_v52 = vmax.f32 %v1680_v49, 0.0  ;;  %v5513_v49 = vld [vmem:[#allocation6 + $0x88] sm:$0xf]  ;;  %v6749_v50 = vld [vmem:[#allocation6 + $0x94] sm:$0xf0]  ;;  %v5510_v51 = vor.u32 %v6746_v53, %v5507_v20  ;;  %2399 = vmatpush.bf16.msrb.mxu3 %v5506_v6 }
 0x16a   :  { %v5989_v20 = vld [vmem:[#allocation7 + $0x348] sm:$0xf] }
 0x16b   :  { %v1690_v54 = vpack.c.bf16 %v1686_v52, %v1686_v52  ;;  %v5514_v52 = vor.u32 %v6749_v50, %v5513_v49  ;;  %2412 = vmatpush.bf16.msrb.mxu1 %v5510_v51  ;;  %v6982_v50 = vld [vmem:[#allocation7 + $0x6e0] sm:$0xf0]  ;;  %v5961_v51 = vld [vmem:[#allocation7 + $0x310] sm:$0xf] }
 0x16c   :  { %v1681_v55 = vpop.f32.mrf.mxu1 }
 0x16d   :  { %2128 = vmatmul.bf16.vlgmr.msrb.gmra.mxu0 %v1690_v54  ;;  %v5515_v55 = vld [vmem:[#allocation6 + $0x98] sm:$0xf0]  ;;  %2425 = vmatpush.bf16.msrb.mxu2 %v5514_v52  ;;  %v6863_v52 = vld [vmem:[#allocation7 + $0x328] sm:$0xf0] }
 0x16e   :  { %2435 = vmatpush.bf16.msrb.mxu0 %v5566_v18  ;;  %v5483_v18 = vld [vmem:[#allocation6 + $0x58] sm:$0xf0] }
 0x16f   :  { %v5486_v57 = vor.u32 %v6739_v17, %v5483_v18  ;;  %v6849_v17 = vld [vmem:[#allocation7 + $0x2b8] sm:$0xf0] }
 0x172   :  { %2436 = vmatpush.bf16.msrb.mxu0 %v5550_v9  ;;  %v5467_v9 = vld [vmem:[#allocation6 + $0x38] sm:$0xf0] }
 0x173   :  { %v5470_v32 = vor.u32 %v6735_v26, %v5467_v9  ;;  %v5681_v26 = vld [vmem:[#allocation7 + $0xe0] sm:$0xf]  ;;  %v6793_v9 = vld [vmem:[#allocation7 + $0xf8] sm:$0xf0] }
 0x176   :  { %2437 = vmatpush.bf16.msrb.mxu0 %v5534_v45  ;;  %v5446_v45 = vor.u32 %v6730_v33, %v5443_v11  ;;  %v6354_v33 = vor.u32 %v6961_v35, %v6353_v48  ;;  %v5877_v11 = vld [vmem:[#allocation7 + $0x268] sm:$0xf] }
 0x17d   :  { %2180 = vmatmul.bf16.vlgmr.msra.gmra.mxu0 %v1690_v54  ;;  %v6747_v54 = vld [vmem:[#allocation6 + $0x8c] sm:$0xf] }
 0x180   :  { %v2090_v60 = vpop.f32.mrf.mxu3 }
 0x181   :  { %v2091_v59 = vadd.f32 %v2090_v60, %v1757_v29  ;;  %v5518_v60 = vor.u32 %v6747_v54, %v5515_v55  ;;  %v6742_v29 = vld [vmem:[#allocation6 + $0x64] sm:$0xf]  ;;  %v6409_v55 = vld [vmem:[#allocation7 + $0x690] sm:$0xf] }
 0x183   :  { %2438 = vmatpush.bf16.msrb.mxu0 %v5518_v60  ;;  %v6975_v60 = vld [vmem:[#allocation7 + $0x6a8] sm:$0xf0] }
 0x188   :  { %v2092_v56 = vpop.f32.mrf.mxu3 }
 0x189   :  { %v5489_v56 = vld [vmem:[#allocation6 + $0x60] sm:$0xf] }
 0x190   :  { %v2103_v34 = vpop.f32.mrf.mxu1 }
 0x191   :  { %v7305_v39 = vadd.f32 %v2103_v34, %v2091_v59  ;;  %v5490_v34 = vor.u32 %v6744_v58, %v5489_v56  ;;  %v5765_v56 = vld [vmem:[#allocation7 + $0x188] sm:$0xf] }
 0x193   :  { %2400 = vmatpush.bf16.msrb.mxu3 %v5490_v34  ;;  %v6814_v34 = vld [vmem:[#allocation7 + $0x1a0] sm:$0xf0] }
 0x197   :  { %2401 = vmatpush.bf16.msrb.mxu3 %v5474_v5  ;;  %v5738_v5 = vor.u32 %v6807_v41, %v5737_v8  ;;  %v6772_v8 = vld [vmem:[#allocation7 + $0x50] sm:$0xf0]  ;;  %v6045_v41 = vld [vmem:[#allocation7 + $0x3b8] sm:$0xf] }
 0x198   :  { %v2105_v62 = vpop.f32.mrf.mxu1 }
 0x199   :  { %v5497_v62 = vld [vmem:[#allocation6 + $0x68] sm:$0xf] }
 0x19b   :  { %2402 = vmatpush.bf16.msrb.mxu3 %v5458_v22  ;;  %v6912_v22 = vld [vmem:[#allocation7 + $0x4b0] sm:$0xf0] }
 0x19c   :  { %v6158_v25 = vor.u32 %v6912_v22, %v6157_v21  ;;  %v6979_v21 = vld [vmem:[#allocation7 + $0x6cc] sm:$0xf] }
 0x19f   :  { %2403 = vmatpush.bf16.msrb.mxu3 %v5442_v37  ;;  %v6325_v37 = vld [vmem:[#allocation7 + $0x5e8] sm:$0xf] }
 0x1a0   :  { %v2142_v61 = vpop.f32.mrf.mxu3  ;;  %v2155_v2 = vpop.f32.mrf.mxu1 }
 0x1a1   :  { %v2143_v1 = vadd.f32 %v2142_v61, %v1758_v0  ;;  %v5491_v61 = vld [vmem:[#allocation6 + $0x70] sm:$0xf0] }
 0x1a2   :  { %v5494_v0 = vor.u32 %v6742_v29, %v5491_v61  ;;  %v5962_v29 = vor.u32 %v6863_v52, %v5961_v51  ;;  %v6213_v61 = vld [vmem:[#allocation7 + $0x508] sm:$0xf] }
 0x1a3   :  { %v7307_v3 = vadd.f32 %v2155_v2, %v2143_v1  ;;  %v6743_v2 = vld [vmem:[#allocation6 + $0x6c] sm:$0xf] }
 0x1a4   :  { %2413 = vmatpush.bf16.msrb.mxu1 %v5494_v0  ;;  %v5766_v0 = vor.u32 %v6814_v34, %v5765_v56  ;;  %v6779_v56 = vld [vmem:[#allocation7 + $0x88] sm:$0xf0] }
 0x1a6   :  { %3880 = vmatpush.bf16.msra.mxu3 %v5766_v0  ;;  %v6940_v0 = vld [vmem:[#allocation7 + $0x590] sm:$0xf0] }
 0x1a8   :  { %v2144_v63 = vpop.f32.mrf.mxu3  ;;  %v2157_v4 = vpop.f32.mrf.mxu1  ;;  %2414 = vmatpush.bf16.msrb.mxu1 %v5478_v15  ;;  %v6186_v15 = vor.u32 %v6919_v13, %v6185_v12 }
 0x1a9   :  { %v6745_v63 = vld [vmem:[#allocation6 + $0x74] sm:$0xf0]  ;;  %v5499_v4 = vld [vmem:[#allocation6 + $0x78] sm:$0xf0] }
 0x1aa   :  { %v5498_v1 = vor.u32 %v6745_v63, %v5497_v62  ;;  %v5502_v42 = vor.u32 %v6743_v2, %v5499_v4  ;;  %v6926_v62 = vld [vmem:[#allocation7 + $0x520] sm:$0xf0]  ;;  %v6410_v63 = vor.u32 %v6975_v60, %v6409_v55  ;;  %v5933_v2 = vld [vmem:[#allocation7 + $0x2d8] sm:$0xf]  ;;  %v6856_v4 = vld [vmem:[#allocation7 + $0x2f0] sm:$0xf0]  ;;  %3881 = vmatpush.bf16.msra.mxu3 %v5738_v5 }
 0x1ab   :  { %v5934_v14 = vor.u32 %v6856_v4, %v5933_v2  ;;  %v6884_v5 = vld [vmem:[#allocation7 + $0x3d0] sm:$0xf0] }
 0x1ac   :  { %2426 = vmatpush.bf16.msrb.mxu2 %v5498_v1  ;;  %2439 = vmatpush.bf16.msrb.mxu0 %v5502_v42  ;;  %v6214_v1 = vor.u32 %v6926_v62, %v6213_v61  ;;  %v6381_v42 = vld [vmem:[#allocation7 + $0x658] sm:$0xf]  ;;  %v6828_v62 = vld [vmem:[#allocation7 + $0x210] sm:$0xf0]  ;;  %v6046_v35 = vor.u32 %v6884_v5, %v6045_v41  ;;  %v6131_v41 = vld [vmem:[#allocation7 + $0x47c] sm:$0xf0] }
 0x1ad   :  { %2415 = vmatpush.bf16.msrb.mxu1 %v5462_v23  ;;  %v6382_v18 = vor.u32 %v6968_v7, %v6381_v42  ;;  %v5821_v61 = vld [vmem:[#allocation7 + $0x1f8] sm:$0xf] }
 0x1ae   :  { %v5597_v42 = vld [vmem:[#allocation7 + $0x38] sm:$0xf]  ;;  %v5822_v7 = vor.u32 %v6828_v62, %v5821_v61  ;;  %v6846_v62 = vld [vmem:[#allocation7 + $0x2a4] sm:$0xf] }
 0x1af   :  { %v5598_v48 = vor.u32 %v6772_v8, %v5597_v42  ;;  %v6790_v42 = vld [vmem:[#allocation7 + $0xe4] sm:$0xf] }
 0x1b0   :  { %2427 = vmatpush.bf16.msrb.mxu2 %v5482_v16  ;;  %2440 = vmatpush.bf16.msrb.mxu0 %v5486_v57  ;;  %v5905_v16 = vld [vmem:[#allocation7 + $0x2a0] sm:$0xf]  ;;  %v6800_v57 = vld [vmem:[#allocation7 + $0x130] sm:$0xf0]  ;;  %v6902_v8 = vld [vmem:[#allocation7 + $0x464] sm:$0xf] }
 0x1b1   :  { %2416 = vmatpush.bf16.msrb.mxu1 %v5446_v45  ;;  %v5710_v24 = vor.u32 %v6800_v57, %v5709_v19  ;;  %v6786_v45 = vld [vmem:[#allocation7 + $0xc0] sm:$0xf0]  ;;  %v6867_v19 = vld [vmem:[#allocation7 + $0x34c] sm:$0xf]  ;;  %v5991_v57 = vld [vmem:[#allocation7 + $0x364] sm:$0xf0] }
 0x1b3   :  { %3882 = vmatpush.bf16.msra.mxu3 %v5710_v24  ;;  %v5569_v24 = vld [vmem:[#allocation7] sm:$0xf] }
 0x1b4   :  { %2428 = vmatpush.bf16.msrb.mxu2 %v5466_v28  ;;  %2441 = vmatpush.bf16.msrb.mxu0 %v5470_v32  ;;  %v5906_v28 = vor.u32 %v6849_v17, %v5905_v16  ;;  %v6821_v16 = vld [vmem:[#allocation7 + $0x1d8] sm:$0xf0]  ;;  %v6241_v17 = vld [vmem:[#allocation7 + $0x540] sm:$0xf] }
 0x1b8   :  { %2429 = vmatpush.bf16.msrb.mxu2 %v5450_v46  ;;  %v6101_v46 = vld [vmem:[#allocation7 + $0x428] sm:$0xf] }
 0x1bc   :  { %3906 = vmatpush.bf16.msra.mxu2 %v6214_v1  ;;  %v2190_v1 = vld [vmem:[%s7409_s1] sm:$0xff] }
 0x1c0   :  { %3907 = vmatpush.bf16.msra.mxu2 %v6186_v15 }
 0x1c4   :  { %3908 = vmatpush.bf16.msra.mxu2 %v6158_v25  ;;  %v6765_v25 = vld [vmem:[#allocation7 + $0x18] sm:$0xf0] }
 0x1cc   :  { %v7309_v10 = vpop.f32.mrf.mxu2 }
 0x1cd   :  { %v2117_v44 = vadd.f32 %v7309_v10, %v7305_v39  ;;  %v6870_v39 = vld [vmem:[#allocation7 + $0x360] sm:$0xf0]  ;;  %v6437_v10 = vld [vmem:[#allocation7 + $0x6c8] sm:$0xf] }
 0x1ce   :  { %v5990_v49 = vor.u32 %v6870_v39, %v5989_v20  ;;  %v6438_v54 = vor.u32 %v6982_v50, %v6437_v10  ;;  %v6326_v20 = vor.u32 %v6954_v38, %v6325_v37  ;;  %v5849_v39 = vld [vmem:[#allocation7 + $0x230] sm:$0xf]  ;;  %v6835_v10 = vld [vmem:[#allocation7 + $0x248] sm:$0xf0]  ;;  %v6860_v38 = vld [vmem:[#allocation7 + $0x314] sm:$0xf] }
 0x1cf   :  { %v6947_v50 = vld [vmem:[#allocation7 + $0x5c8] sm:$0xf0]  ;;  %v5850_v60 = vor.u32 %v6835_v10, %v5849_v39 }
 0x1d0   :  { %3893 = vmatpush.bf16.msra.mxu1 %v5990_v49  ;;  %v6297_v49 = vld [vmem:[#allocation7 + $0x5b0] sm:$0xf] }
 0x1d1   :  { %v6298_v34 = vor.u32 %v6947_v50, %v6297_v49  ;;  %v6853_v49 = vld [vmem:[#allocation7 + $0x2dc] sm:$0xf]  ;;  %v5935_v50 = vld [vmem:[#allocation7 + $0x2f4] sm:$0xf0] }
 0x1d4   :  { %v2118_v40 = vpop.f32.mrf.mxu2  ;;  %3894 = vmatpush.bf16.msra.mxu1 %v5962_v29  ;;  %v6891_v29 = vld [vmem:[#allocation7 + $0x408] sm:$0xf0] }
 0x1d5   :  { %v6731_v40 = vld [vmem:[#allocation6 + $0xc] sm:$0xf] }
 0x1d6   :  { %v5454_v53 = vor.u32 %v6731_v40, %v5451_v43  ;;  %v6130_v40 = vor.u32 %v6905_v31, %v6129_v30  ;;  %v5653_v43 = vld [vmem:[#allocation7 + $0xa8] sm:$0xf] }
 0x1d7   :  { %v5654_v51 = vor.u32 %v6786_v45, %v5653_v43 }
 0x1d8   :  { %2442 = vmatpush.bf16.msrb.mxu0 %v5454_v53  ;;  %3895 = vmatpush.bf16.msra.mxu1 %v5934_v14  ;;  %v5793_v14 = vld [vmem:[#allocation7 + $0x1c0] sm:$0xf] }
 0x1d9   :  { %3909 = vmatpush.bf16.msra.mxu2 %v6130_v40  ;;  %v5794_v30 = vor.u32 %v6821_v16, %v5793_v14  ;;  %v5570_v40 = vor.u32 %v6765_v25, %v5569_v24  ;;  %v5879_v14 = vld [vmem:[#allocation7 + $0x284] sm:$0xf0]  ;;  %v6783_v25 = vld [vmem:[#allocation7 + $0xac] sm:$0xf] }
 0x1da   :  { %v6327_v16 = vld [vmem:[#allocation7 + $0x604] sm:$0xf0] }
 0x1dc   :  { %v7311_v59 = vpop.f32.mrf.mxu2  ;;  %3919 = vmatpush.bf16.msra.mxu0 %v6438_v54  ;;  %3896 = vmatpush.bf16.msra.mxu1 %v5906_v28  ;;  %v5625_v54 = vld [vmem:[#allocation7 + $0x70] sm:$0xf]  ;;  %v6811_v28 = vld [vmem:[#allocation7 + $0x18c] sm:$0xf] }
 0x1dd   :  { %v2169_v23 = vadd.f32 %v7311_v59, %v7307_v3  ;;  %v5682_v59 = vor.u32 %v6793_v9, %v5681_v26  ;;  %v5626_v2 = vor.u32 %v6779_v56, %v5625_v54  ;;  %v6017_v26 = vld [vmem:[#allocation7 + $0x380] sm:$0xf]  ;;  %v5711_v56 = vld [vmem:[#allocation7 + $0x134] sm:$0xf0] }
 0x1df   :  { %3883 = vmatpush.bf16.msra.mxu3 %v5682_v59  ;;  %v6411_v59 = vld [vmem:[#allocation7 + $0x6ac] sm:$0xf0] }
 0x1e0   :  { %3920 = vmatpush.bf16.msra.mxu0 %v6410_v63  ;;  %v6269_v63 = vld [vmem:[#allocation7 + $0x578] sm:$0xf] }
 0x1e1   :  { %v6270_v13 = vor.u32 %v6940_v0, %v6269_v63  ;;  %v5907_v63 = vld [vmem:[#allocation7 + $0x2bc] sm:$0xf0]  ;;  %v6958_v0 = vld [vmem:[#allocation7 + $0x624] sm:$0xf] }
 0x1e2   :  { %v5910_v5 = vor.u32 %v6846_v62, %v5907_v63 }
 0x1e3   :  { %3884 = vmatpush.bf16.msra.mxu3 %v5654_v51  ;;  %v6965_v51 = vld [vmem:[#allocation7 + $0x65c] sm:$0xf] }
 0x1e4   :  { %v2170_v27 = vpop.f32.mrf.mxu2  ;;  %3921 = vmatpush.bf16.msra.mxu0 %v6382_v18  ;;  %v6933_v18 = vld [vmem:[#allocation7 + $0x558] sm:$0xf0] }
 0x1e5   :  { %v6242_v31 = vor.u32 %v6933_v18, %v6241_v17  ;;  %v6134_v18 = vor.u32 %v6902_v8, %v6131_v41  ;;  %v6983_v8 = vld [vmem:[#allocation7 + $0x6e8] sm:$0xf0] }
 0x1e7   :  { %3885 = vmatpush.bf16.msra.mxu3 %v5626_v2 }
 0x1e8   :  { %3922 = vmatpush.bf16.msra.mxu0 %v6354_v33  ;;  %v6923_v33 = vld [vmem:[#allocation7 + $0x50c] sm:$0xf] }
 0x1ea   :  { %v2129_v47 = vpop.f32.mrf.mxu0 }
 0x1eb   :  { %v7315_v6 = vadd.f32 %v2129_v47, %v2117_v44  ;;  %v5878_v44 = vor.u32 %v6842_v36, %v5877_v11  ;;  %v6898_v47 = vld [vmem:[#allocation7 + $0x440] sm:$0xf0]  ;;  %v6215_v11 = vld [vmem:[#allocation7 + $0x524] sm:$0xf0]  ;;  %v5994_v36 = vor.u32 %v6867_v19, %v5991_v57  ;;  %3886 = vmatpush.bf16.msra.mxu3 %v5598_v48  ;;  %v5851_v48 = vld [vmem:[#allocation7 + $0x24c] sm:$0xf0] }
 0x1ec   :  { %v6102_v52 = vor.u32 %v6898_v47, %v6101_v46  ;;  %3923 = vmatpush.bf16.msra.mxu0 %v6326_v20  ;;  %v6218_v45 = vor.u32 %v6923_v33, %v6215_v11  ;;  %v6804_v46 = vld [vmem:[#allocation7 + $0x154] sm:$0xf]  ;;  %v5739_v47 = vld [vmem:[#allocation7 + $0x16c] sm:$0xf0]  ;;  %v6937_v11 = vld [vmem:[#allocation7 + $0x57c] sm:$0xf] }
 0x1ed   :  { %2185 = vst [vmem:[%s7419_s11] sm:$0xff] %v7315_v6  ;;  %3897 = vmatpush.bf16.msra.mxu1 %v5878_v44  ;;  %v6187_v20 = vld [vmem:[#allocation7 + $0x4ec] sm:$0xf0]  ;;  %v5742_v54 = vor.u32 %v6804_v46, %v5739_v47  ;;  %v6930_v46 = vld [vmem:[#allocation7 + $0x544] sm:$0xf] }
 0x1ee   :  { %3910 = vmatpush.bf16.msra.mxu2 %v6102_v52  ;;  %v6383_v52 = vld [vmem:[#allocation7 + $0x674] sm:$0xf0] }
 0x1ef   :  { %3887 = vmatpush.bf16.msra.mxu3 %v5570_v40  ;;  %v6386_v61 = vor.u32 %v6965_v51, %v6383_v52  ;;  %v6075_v40 = vld [vmem:[#allocation7 + $0x40c] sm:$0xf0]  ;;  %v6047_v51 = vld [vmem:[#allocation7 + $0x3d4] sm:$0xf0] }
 0x1f0   :  { %3924 = vmatpush.bf16.msra.mxu0 %v6298_v34  ;;  %v5938_v34 = vor.u32 %v6853_v49, %v5935_v50  ;;  %v6881_v49 = vld [vmem:[#allocation7 + $0x3bc] sm:$0xf] }
 0x1f1   :  { %3898 = vmatpush.bf16.msra.mxu1 %v5850_v60  ;;  %v6797_v60 = vld [vmem:[#allocation7 + $0x11c] sm:$0xf]  ;;  %v6050_v52 = vor.u32 %v6881_v49, %v6047_v51  ;;  %v6962_v51 = vld [vmem:[#allocation7 + $0x640] sm:$0xf0] }
 0x1f2   :  { %v2131_v58 = vpop.f32.mrf.mxu0  ;;  %v5714_v2 = vor.u32 %v6797_v60, %v5711_v56  ;;  %v6874_v56 = vld [vmem:[#allocation7 + $0x384] sm:$0xf] }
 0x1f3   :  { %v6073_v58 = vld [vmem:[#allocation7 + $0x3f0] sm:$0xf] }
 0x1f4   :  { %v6074_v4 = vor.u32 %v6891_v29, %v6073_v58  ;;  %3925 = vmatpush.bf16.msra.mxu0 %v6270_v13  ;;  %v6909_v58 = vld [vmem:[#allocation7 + $0x49c] sm:$0xf]  ;;  %v6159_v29 = vld [vmem:[#allocation7 + $0x4b4] sm:$0xf0]  ;;  %v6839_v13 = vld [vmem:[#allocation7 + $0x26c] sm:$0xf] }
 0x1f5   :  { %3899 = vmatpush.bf16.msra.mxu1 %v5822_v7  ;;  %v5683_v7 = vld [vmem:[#allocation7 + $0xfc] sm:$0xf0]  ;;  %v5882_v19 = vor.u32 %v6839_v13, %v5879_v14 }
 0x1f6   :  { %3911 = vmatpush.bf16.msra.mxu2 %v6074_v4  ;;  %v6162_v4 = vor.u32 %v6909_v58, %v6159_v29  ;;  %v5686_v17 = vor.u32 %v6790_v42, %v5683_v7  ;;  %v6019_v58 = vld [vmem:[#allocation7 + $0x39c] sm:$0xf0]  ;;  %v6445_v7 = vld [vmem:[#allocation7 + $0x6d0] sm:$0xf] }
 0x1f7   :  { %v6022_v29 = vor.u32 %v6874_v56, %v6019_v58  ;;  %v6165_v58 = vld [vmem:[#allocation7 + $0x4a0] sm:$0xf] }
 0x1f8   :  { %3926 = vmatpush.bf16.msra.mxu0 %v6242_v31  ;;  %v6825_v31 = vld [vmem:[#allocation7 + $0x1fc] sm:$0xf] }
 0x1f9   :  { %3900 = vmatpush.bf16.msra.mxu1 %v5794_v30 }
 0x1fa   :  { %v2181_v27 = vpop.f32.mrf.mxu0  ;;  %3912 = vmatpush.bf16.msra.mxu2 %v6046_v35  ;;  %v6944_v35 = vld [vmem:[#allocation7 + $0x5b4] sm:$0xf] }
 0x1fb   :  { %v2182_v32 = vadd.f32 %v2181_v27, %v2169_v23  ;;  %v6439_v23 = vld [vmem:[#allocation7 + $0x6e4] sm:$0xf0]  ;;  %v6877_v27 = vld [vmem:[#allocation7 + $0x398] sm:$0xf0] }
 0x1fc   :  { %v6442_v37 = vor.u32 %v6979_v21, %v6439_v23  ;;  %v6018_v43 = vor.u32 %v6877_v27, %v6017_v26  ;;  %v6832_v21 = vld [vmem:[#allocation7 + $0x234] sm:$0xf]  ;;  %v5655_v26 = vld [vmem:[#allocation7 + $0xc4] sm:$0xf0]  ;;  %v6895_v27 = vld [vmem:[#allocation7 + $0x42c] sm:$0xf] }
 0x1fd   :  { %2186 = vst [vmem:[%s7419_s11 + $0x8] sm:$0xff] %v2182_v32  ;;  %v2187_v3 = vmul.f32 0.5, %v2182_v32  ;;  %v5767_v32 = vld [vmem:[#allocation7 + $0x1a4] sm:$0xf0]  ;;  %v5854_v23 = vor.u32 %v6832_v21, %v5851_v48  ;;  %v6417_v21 = vld [vmem:[#allocation7 + $0x698] sm:$0xf] }
 0x1fe   :  { %v5770_v44 = vor.u32 %v6811_v28, %v5767_v32  ;;  %3913 = vmatpush.bf16.msra.mxu2 %v6018_v43  ;;  %v5658_v28 = vor.u32 %v6783_v25, %v5655_v26  ;;  %v5823_v32 = vld [vmem:[#allocation7 + $0x214] sm:$0xf0]  ;;  %v6976_v48 = vld [vmem:[#allocation7 + $0x6b0] sm:$0xf0] }
 0x1ff   :  { %v2188_v53 = vmul.f32 1.442695, %v2187_v3  ;;  %v6972_v3 = vld [vmem:[#allocation7 + $0x694] sm:$0xf]  ;;  %v5826_v33 = vor.u32 %v6825_v31, %v5823_v32  ;;  %v6418_v32 = vor.u32 %v6976_v48, %v6417_v21  ;;  %v6787_v21 = vld [vmem:[#allocation7 + $0xc8] sm:$0xf0] }
 0x200   :  { %v6414_v10 = vor.u32 %v6972_v3, %v6411_v59  ;;  %v6888_v3 = vld [vmem:[#allocation7 + $0x3f4] sm:$0xf] }
 0x201   :  { %6996 = vpow2.f32 %v2188_v53  ;;  %v6916_v53 = vld [vmem:[#allocation7 + $0x4d4] sm:$0xf]  ;;  %v6078_v43 = vor.u32 %v6888_v3, %v6075_v40  ;;  %v5745_v40 = vld [vmem:[#allocation7 + $0x158] sm:$0xf] }
 0x202   :  { %v2183_v55 = vpop.f32.mrf.mxu0 }
 0x203   :  { %v6190_v55 = vor.u32 %v6916_v53, %v6187_v20  ;;  %v6243_v53 = vld [vmem:[#allocation7 + $0x55c] sm:$0xf0] }
 0x204   :  { %v6246_v20 = vor.u32 %v6930_v46, %v6243_v53  ;;  %v6193_v46 = vld [vmem:[#allocation7 + $0x4d8] sm:$0xf] }
 0x207   :  { %v6997_v12 = vpop.eup %6996 }
 0x208   :  { %v2191_v15 = vmul.f32 %v6997_v12, %v2190_v1  ;;  %v6355_v1 = vld [vmem:[#allocation7 + $0x63c] sm:$0xf0] }
 0x209   :  { %v6358_v12 = vor.u32 %v6958_v0, %v6355_v1 }
 0x20a   :  { %v2192_v22 = vadd.f32 %v2191_v15, %v7315_v6  ;;  %v5963_v6 = vld [vmem:[#allocation7 + $0x32c] sm:$0xf0]  ;;  %v6951_v15 = vld [vmem:[#allocation7 + $0x5ec] sm:$0xf] }
 0x20b   :  { %v5966_v39 = vor.u32 %v6860_v38, %v5963_v6  ;;  %v6330_v57 = vor.u32 %v6951_v15, %v6327_v16  ;;  %v6776_v38 = vld [vmem:[#allocation7 + $0x74] sm:$0xf]  ;;  %v5627_v6 = vld [vmem:[#allocation7 + $0x8c] sm:$0xf0]  ;;  %v6446_v16 = vor.u32 %v6983_v8, %v6445_v7  ;;  %v6137_v8 = vld [vmem:[#allocation7 + $0x468] sm:$0xf] }
 0x20c   :  { %v2193_v9 = vpack.c.bf16 %v2192_v22, %v2192_v22  ;;  %v6299_v22 = vld [vmem:[#allocation7 + $0x5cc] sm:$0xf0]  ;;  %v5630_v59 = vor.u32 %v6776_v38, %v5627_v6  ;;  %v6389_v38 = vld [vmem:[#allocation7 + $0x660] sm:$0xf]  ;;  %v6969_v6 = vld [vmem:[#allocation7 + $0x678] sm:$0xf0] }
 0x20d   :  { %v6302_v24 = vor.u32 %v6944_v35, %v6299_v22  ;;  %v6390_v53 = vor.u32 %v6969_v6, %v6389_v38  ;;  %v6822_v38 = vld [vmem:[#allocation7 + $0x1e0] sm:$0xf0]  ;;  %v6249_v6 = vld [vmem:[#allocation7 + $0x548] sm:$0xf] }
 0x20e   :  { %2404 = vmatmul.bf16.vlgmr.msrb.gmra.mxu3 %v2193_v9  ;;  %2417 = vmatmul.bf16.vlgmr.msrb.gmra.mxu1 %v2193_v9 }
 0x20f   :  { %2430 = vmatmul.bf16.vlgmr.msrb.gmra.mxu2 %v2193_v9  ;;  %2443 = vmatmul.bf16.vlgmr.msrb.gmra.mxu0 %v2193_v9  ;;  %v6103_v9 = vld [vmem:[#allocation7 + $0x444] sm:$0xf0] }
 0x210   :  { %3945 = vmatpush.bf16.msrb.mxu1 %v5994_v36  ;;  %3971 = vmatpush.bf16.msrb.mxu0 %v6442_v37  ;;  %v6106_v30 = vor.u32 %v6895_v27, %v6103_v9  ;;  %v6271_v36 = vld [vmem:[#allocation7 + $0x594] sm:$0xf0]  ;;  %v6927_v9 = vld [vmem:[#allocation7 + $0x528] sm:$0xf0] }
 0x211   :  { %3932 = vmatpush.bf16.msrb.mxu3 %v5770_v44  ;;  %3958 = vmatpush.bf16.msrb.mxu2 %v6218_v45  ;;  %v6274_v37 = vor.u32 %v6937_v11, %v6271_v36  ;;  %v6818_v44 = vld [vmem:[#allocation7 + $0x1c4] sm:$0xf]  ;;  %v5795_v45 = vld [vmem:[#allocation7 + $0x1dc] sm:$0xf0]  ;;  %v6857_v11 = vld [vmem:[#allocation7 + $0x2f8] sm:$0xf0] }
 0x212   :  { %v5798_v47 = vor.u32 %v6818_v44, %v5795_v45 }
 0x214   :  { %3946 = vmatpush.bf16.msrb.mxu1 %v5966_v39  ;;  %3972 = vmatpush.bf16.msrb.mxu0 %v6414_v10  ;;  %v6769_v39 = vld [vmem:[#allocation7 + $0x3c] sm:$0xf]  ;;  %v5599_v10 = vld [vmem:[#allocation7 + $0x54] sm:$0xf0] }
 0x215   :  { %3933 = vmatpush.bf16.msrb.mxu3 %v5742_v54  ;;  %3959 = vmatpush.bf16.msrb.mxu2 %v6190_v55  ;;  %v5602_v50 = vor.u32 %v6769_v39, %v5599_v10  ;;  %v6762_v54 = vld [vmem:[#allocation7 + $0x4] sm:$0xf]  ;;  %v5571_v55 = vld [vmem:[#allocation7 + $0x1c] sm:$0xf0] }
 0x216   :  { %v5574_v60 = vor.u32 %v6762_v54, %v5571_v55  ;;  %v6850_v39 = vld [vmem:[#allocation7 + $0x2c0] sm:$0xf0]  ;;  %v5717_v55 = vld [vmem:[#allocation7 + $0x120] sm:$0xf] }
 0x218   :  { %3947 = vmatpush.bf16.msrb.mxu1 %v5938_v34  ;;  %3973 = vmatpush.bf16.msrb.mxu0 %v6386_v61  ;;  %v2226_v34 = vld [vmem:[%s7415_s7] sm:$0xf] }
 0x219   :  { %3934 = vmatpush.bf16.msrb.mxu3 %v5714_v2  ;;  %3960 = vmatpush.bf16.msrb.mxu2 %v6162_v4  ;;  %v2229_v61 = vperm.slane %v2226_v34, 1  ;;  %v2231_v62 = vperm.slane %v2226_v34, 3  ;;  %v5997_v2 = vld [vmem:[#allocation7 + $0x350] sm:$0xf]  ;;  %v6871_v4 = vld [vmem:[#allocation7 + $0x368] sm:$0xf0] }
 0x21a   :  { %v2230_v13 = vperm.slane %v2226_v34, 2  ;;  %v5998_v14 = vor.u32 %v6871_v4, %v5997_v2  ;;  %v5689_v4 = vld [vmem:[#allocation7 + $0xe8] sm:$0xf] }
 0x21c   :  { %3948 = vmatpush.bf16.msrb.mxu1 %v5910_v5  ;;  %3974 = vmatpush.bf16.msrb.mxu0 %v6358_v12  ;;  %v2228_v5 = vperm.slane %v2226_v34, 0 }
 0x21d   :  { %3935 = vmatpush.bf16.msrb.mxu3 %v5686_v17  ;;  %3961 = vmatpush.bf16.msrb.mxu2 %v6134_v18  ;;  %v5969_v17 = vld [vmem:[#allocation7 + $0x318] sm:$0xf]  ;;  %v6864_v18 = vld [vmem:[#allocation7 + $0x330] sm:$0xf0] }
 0x21e   :  { %v5970_v27 = vor.u32 %v6864_v18, %v5969_v17  ;;  %v6948_v17 = vld [vmem:[#allocation7 + $0x5d0] sm:$0xf0] }
 0x220   :  { %3949 = vmatpush.bf16.msrb.mxu1 %v5882_v19  ;;  %3975 = vmatpush.bf16.msrb.mxu0 %v6330_v57 }
 0x221   :  { %3936 = vmatpush.bf16.msrb.mxu3 %v5658_v28  ;;  %3962 = vmatpush.bf16.msrb.mxu2 %v6106_v30  ;;  %v6221_v28 = vld [vmem:[#allocation7 + $0x510] sm:$0xf] }
 0x224   :  { %3950 = vmatpush.bf16.msrb.mxu1 %v5854_v23  ;;  %3976 = vmatpush.bf16.msrb.mxu0 %v6302_v24  ;;  %v5773_v23 = vld [vmem:[#allocation7 + $0x190] sm:$0xf]  ;;  %v6815_v24 = vld [vmem:[#allocation7 + $0x1a8] sm:$0xf0] }
 0x225   :  { %3937 = vmatpush.bf16.msrb.mxu3 %v5630_v59  ;;  %3963 = vmatpush.bf16.msrb.mxu2 %v6078_v43  ;;  %v6222_v59 = vor.u32 %v6927_v9, %v6221_v28  ;;  %v6808_v43 = vld [vmem:[#allocation7 + $0x170] sm:$0xf0]  ;;  %v6941_v28 = vld [vmem:[#allocation7 + $0x598] sm:$0xf0] }
 0x226   :  { %v5746_v49 = vor.u32 %v6808_v43, %v5745_v40  ;;  %v6868_v43 = vld [vmem:[#allocation7 + $0x354] sm:$0xf] }
 0x228   :  { %3951 = vmatpush.bf16.msrb.mxu1 %v5826_v33  ;;  %3977 = vmatpush.bf16.msrb.mxu0 %v6274_v37  ;;  %v5941_v33 = vld [vmem:[#allocation7 + $0x2e0] sm:$0xf]  ;;  %v5774_v37 = vor.u32 %v6815_v24, %v5773_v23 }
 0x229   :  { %3938 = vmatpush.bf16.msrb.mxu3 %v5602_v50  ;;  %3964 = vmatpush.bf16.msrb.mxu2 %v6050_v52  ;;  %v5942_v45 = vor.u32 %v6857_v11, %v5941_v33  ;;  %v6361_v50 = vld [vmem:[#allocation7 + $0x628] sm:$0xf]  ;;  %v5829_v24 = vld [vmem:[#allocation7 + $0x200] sm:$0xf]  ;;  %v6081_v33 = vld [vmem:[#allocation7 + $0x3f8] sm:$0xf] }
 0x22a   :  { %v6362_v34 = vor.u32 %v6962_v51, %v6361_v50  ;;  %v6892_v11 = vld [vmem:[#allocation7 + $0x410] sm:$0xf0]  ;;  %v6885_v50 = vld [vmem:[#allocation7 + $0x3d8] sm:$0xf0] }
 0x22c   :  { %3952 = vmatpush.bf16.msrb.mxu1 %v5798_v47  ;;  %3978 = vmatpush.bf16.msrb.mxu0 %v6246_v20  ;;  %v6920_v47 = vld [vmem:[#allocation7 + $0x4f0] sm:$0xf0]  ;;  %v5913_v20 = vld [vmem:[#allocation7 + $0x2a8] sm:$0xf] }
 0x22d   :  { %3939 = vmatpush.bf16.msrb.mxu3 %v5574_v60  ;;  %3965 = vmatpush.bf16.msrb.mxu2 %v6022_v29  ;;  %v6194_v54 = vor.u32 %v6920_v47, %v6193_v46  ;;  %v6801_v60 = vld [vmem:[#allocation7 + $0x138] sm:$0xf0]  ;;  %v5914_v56 = vor.u32 %v6850_v39, %v5913_v20  ;;  %v6980_v46 = vld [vmem:[#allocation7 + $0x6d4] sm:$0xf]  ;;  %v6082_v47 = vor.u32 %v6892_v11, %v6081_v33  ;;  %v5605_v20 = vld [vmem:[#allocation7 + $0x40] sm:$0xf] }
 0x22e   :  { %v6913_v29 = vld [vmem:[#allocation7 + $0x4b8] sm:$0xf0]  ;;  %v6910_v33 = vld [vmem:[#allocation7 + $0x4a4] sm:$0xf]  ;;  %v6167_v11 = vld [vmem:[#allocation7 + $0x4bc] sm:$0xf0] }
 0x22f   :  { %v6166_v2 = vor.u32 %v6913_v29, %v6165_v58  ;;  %v6773_v39 = vld [vmem:[#allocation7 + $0x58] sm:$0xf0]  ;;  %v6419_v29 = vld [vmem:[#allocation7 + $0x6b4] sm:$0xf0] }
 0x230   :  { %v6973_v58 = vld [vmem:[#allocation7 + $0x69c] sm:$0xf] }
 0x28b   :  { %v2418_v63 = vpop.f32.mrf.mxu1 }
 0x28c   :  { %v2419_v0 = vadd.f32 %v2418_v63, %v2229_v61  ;;  %v2444_v1 = vpop.f32.mrf.mxu0  ;;  %v5885_v61 = vld [vmem:[#allocation7 + $0x270] sm:$0xf]  ;;  %v5718_v63 = vor.u32 %v6801_v60, %v5717_v55  ;;  %v5606_v60 = vor.u32 %v6773_v39, %v5605_v20  ;;  %v6139_v20 = vld [vmem:[#allocation7 + $0x484] sm:$0xf0] }
 0x28d   :  { %v2445_v42 = vadd.f32 %v2444_v1, %v2231_v62  ;;  %v6843_v62 = vld [vmem:[#allocation7 + $0x288] sm:$0xf0] }
 0x28e   :  { %v2449_v41 = vmax.f32 %v2419_v0, 0.0  ;;  %v6333_v0 = vld [vmem:[#allocation7 + $0x5f0] sm:$0xf]  ;;  %v6955_v1 = vld [vmem:[#allocation7 + $0x608] sm:$0xf0]  ;;  %v5886_v7 = vor.u32 %v6843_v62, %v5885_v61 }
 0x28f   :  { %v2451_v12 = vmax.f32 %v2445_v42, 0.0  ;;  %v6794_v42 = vld [vmem:[#allocation7 + $0x100] sm:$0xf0]  ;;  %v5577_v61 = vld [vmem:[#allocation7 + $0x8] sm:$0xf] }
 0x290   :  { %v7333_v15 = vpack.c.bf16 %v2449_v41, %v2449_v41  ;;  %v6906_v41 = vld [vmem:[#allocation7 + $0x480] sm:$0xf0] }
 0x291   :  { %v7335_v19 = vpack.c.bf16 %v2451_v12, %v2451_v12  ;;  %v2405_v57 = vpop.f32.mrf.mxu3  ;;  %v5857_v12 = vld [vmem:[#allocation7 + $0x238] sm:$0xf]  ;;  %v6138_v18 = vor.u32 %v6906_v41, %v6137_v8  ;;  %v6766_v62 = vld [vmem:[#allocation7 + $0x20] sm:$0xf0]  ;;  %v6422_v8 = vor.u32 %v6973_v58, %v6419_v29  ;;  %v6896_v58 = vld [vmem:[#allocation7 + $0x434] sm:$0xf] }
 0x292   :  { %v2406_v35 = vadd.f32 %v2405_v57, %v2228_v5  ;;  %v2431_v22 = vpop.f32.mrf.mxu2  ;;  %3901 = vmatmul.bf16.vlgmr.msra.gmra.mxu1 %v7333_v15  ;;  %v6334_v5 = vor.u32 %v6955_v1, %v6333_v0  ;;  %v5661_v57 = vld [vmem:[#allocation7 + $0xb0] sm:$0xf]  ;;  %v6878_v0 = vld [vmem:[#allocation7 + $0x3a0] sm:$0xf0]  ;;  %v6812_v1 = vld [vmem:[#allocation7 + $0x194] sm:$0xf]  ;;  %v5578_v41 = vor.u32 %v6766_v62, %v5577_v61 }
 0x293   :  { %v2432_v25 = vadd.f32 %v2431_v22, %v2230_v13  ;;  %3927 = vmatmul.bf16.vlgmr.msra.gmra.mxu0 %v7335_v19  ;;  %3997 = vmatpush.bf16.msra.mxu1 %v5998_v14  ;;  %v2420_v26 = vpop.f32.mrf.mxu1  ;;  %v6836_v13 = vld [vmem:[#allocation7 + $0x250] sm:$0xf0]  ;;  %v5690_v14 = vor.u32 %v6794_v42, %v5689_v4  ;;  %v6899_v22 = vld [vmem:[#allocation7 + $0x448] sm:$0xf0]  ;;  %v6111_v29 = vld [vmem:[#allocation7 + $0x44c] sm:$0xf0] }
 0x294   :  { %v2448_v30 = vmax.f32 %v2406_v35, 0.0  ;;  %4023 = vmatpush.bf16.msra.mxu0 %v6446_v16  ;;  %v2446_v31 = vpop.f32.mrf.mxu0  ;;  %v6305_v16 = vld [vmem:[#allocation7 + $0x5b8] sm:$0xf]  ;;  %v5858_v48 = vor.u32 %v6836_v13, %v5857_v12  ;;  %v6109_v35 = vld [vmem:[#allocation7 + $0x430] sm:$0xf]  ;;  %v5662_v26 = vor.u32 %v6787_v21, %v5661_v57 }
 0x295   :  { %v2450_v36 = vmax.f32 %v2432_v25, 0.0  ;;  %v6306_v23 = vor.u32 %v6948_v17, %v6305_v16  ;;  %v6829_v25 = vld [vmem:[#allocation7 + $0x218] sm:$0xf0]  ;;  %v6110_v9 = vor.u32 %v6899_v22, %v6109_v35  ;;  %v6780_v31 = vld [vmem:[#allocation7 + $0x90] sm:$0xf0] }
 0x296   :  { %v7339_v3 = vpack.c.bf16 %v2448_v30, %v2448_v30  ;;  %v5633_v30 = vld [vmem:[#allocation7 + $0x78] sm:$0xf]  ;;  %v6924_v42 = vld [vmem:[#allocation7 + $0x514] sm:$0xf]  ;;  %v5943_v12 = vld [vmem:[#allocation7 + $0x2fc] sm:$0xf0] }
 0x297   :  { %v7341_v44 = vpack.c.bf16 %v2450_v36, %v2450_v36  ;;  %3998 = vmatpush.bf16.msra.mxu1 %v5970_v27  ;;  %v6277_v27 = vld [vmem:[#allocation7 + $0x580] sm:$0xf]  ;;  %v5801_v36 = vld [vmem:[#allocation7 + $0x1c8] sm:$0xf]  ;;  %v5634_v40 = vor.u32 %v6780_v31, %v5633_v30  ;;  %v6966_v16 = vld [vmem:[#allocation7 + $0x664] sm:$0xf] }
 0x298   :  { %4024 = vmatpush.bf16.msra.mxu0 %v6418_v32  ;;  %3888 = vmatmul.bf16.vlgmr.msra.gmra.mxu3 %v7339_v3  ;;  %v5830_v32 = vor.u32 %v6829_v25, %v5829_v24  ;;  %v6391_v17 = vld [vmem:[#allocation7 + $0x67c] sm:$0xf0]  ;;  %v6805_v57 = vld [vmem:[#allocation7 + $0x15c] sm:$0xf]  ;;  %v5747_v21 = vld [vmem:[#allocation7 + $0x174] sm:$0xf0] }
 0x299   :  { %3914 = vmatmul.bf16.vlgmr.msra.gmra.mxu2 %v7341_v44  ;;  %3984 = vmatpush.bf16.msra.mxu3 %v5774_v37  ;;  %v2407_v10 = vpop.f32.mrf.mxu3  ;;  %v6278_v37 = vor.u32 %v6941_v28, %v6277_v27  ;;  %v6917_v35 = vld [vmem:[#allocation7 + $0x4dc] sm:$0xf]  ;;  %v6195_v22 = vld [vmem:[#allocation7 + $0x4f4] sm:$0xf0]  ;;  %v6847_v24 = vld [vmem:[#allocation7 + $0x2ac] sm:$0xf] }
 0x29a   :  { %4010 = vmatpush.bf16.msra.mxu2 %v6222_v59  ;;  %v2433_v52 = vpop.f32.mrf.mxu2  ;;  %v6934_v59 = vld [vmem:[#allocation7 + $0x560] sm:$0xf0]  ;;  %v5802_v10 = vor.u32 %v6822_v38, %v5801_v36  ;;  %v5915_v25 = vld [vmem:[#allocation7 + $0x2c4] sm:$0xf0]  ;;  %v6959_v27 = vld [vmem:[#allocation7 + $0x62c] sm:$0xf] }
 0x29b   :  { %3999 = vmatpush.bf16.msra.mxu1 %v5942_v45  ;;  %v5999_v45 = vld [vmem:[#allocation7 + $0x36c] sm:$0xf0]  ;;  %v6250_v51 = vor.u32 %v6934_v59, %v6249_v6  ;;  %v6363_v28 = vld [vmem:[#allocation7 + $0x644] sm:$0xf0]  ;;  %v6798_v30 = vld [vmem:[#allocation7 + $0x124] sm:$0xf] }
 0x29c   :  { %4025 = vmatpush.bf16.msra.mxu0 %v6390_v53  ;;  %v6447_v53 = vld [vmem:[#allocation7 + $0x6ec] sm:$0xf0]  ;;  %v6002_v52 = vor.u32 %v6868_v43, %v5999_v45  ;;  %v5719_v31 = vld [vmem:[#allocation7 + $0x13c] sm:$0xf0]  ;;  %v6366_v36 = vor.u32 %v6959_v27, %v6363_v28  ;;  %v6952_v59 = vld [vmem:[#allocation7 + $0x5f4] sm:$0xf]  ;;  %v6170_v43 = vor.u32 %v6910_v33, %v6167_v11 }
 0x29d   :  { %3985 = vmatpush.bf16.msra.mxu3 %v5746_v49  ;;  %v6053_v49 = vld [vmem:[#allocation7 + $0x3c0] sm:$0xf]  ;;  %v6450_v55 = vor.u32 %v6980_v46, %v6447_v53  ;;  %v5887_v38 = vld [vmem:[#allocation7 + $0x28c] sm:$0xf0]  ;;  %v5722_v6 = vor.u32 %v6798_v30, %v5719_v31  ;;  %v6791_v45 = vld [vmem:[#allocation7 + $0xec] sm:$0xf] }
 0x29e   :  { %4011 = vmatpush.bf16.msra.mxu2 %v6194_v54  ;;  %v6861_v54 = vld [vmem:[#allocation7 + $0x31c] sm:$0xf]  ;;  %v5691_v46 = vld [vmem:[#allocation7 + $0x104] sm:$0xf0]  ;;  %v6903_v53 = vld [vmem:[#allocation7 + $0x46c] sm:$0xf] }
 0x29f   :  { %4000 = vmatpush.bf16.msra.mxu1 %v5914_v56  ;;  %v5971_v56 = vld [vmem:[#allocation7 + $0x334] sm:$0xf0]  ;;  %v6826_v61 = vld [vmem:[#allocation7 + $0x204] sm:$0xf]  ;;  %v5831_v62 = vld [vmem:[#allocation7 + $0x21c] sm:$0xf0] }
 0x2a0   :  { %4026 = vmatpush.bf16.msra.mxu0 %v6362_v34  ;;  %v6054_v34 = vor.u32 %v6885_v50, %v6053_v49  ;;  %v5974_v4 = vor.u32 %v6861_v54, %v5971_v56  ;;  %v5859_v49 = vld [vmem:[#allocation7 + $0x254] sm:$0xf0]  ;;  %v5694_v50 = vor.u32 %v6791_v45, %v5691_v46  ;;  %v6142_v54 = vor.u32 %v6903_v53, %v6139_v20  ;;  %v6425_v33 = vld [vmem:[#allocation7 + $0x6a0] sm:$0xf]  ;;  %v6977_v11 = vld [vmem:[#allocation7 + $0x6b8] sm:$0xf0] }
 0x2a1   :  { %3986 = vmatpush.bf16.msra.mxu3 %v5718_v63  ;;  %v6025_v63 = vld [vmem:[#allocation7 + $0x388] sm:$0xf]  ;;  %v6229_v46 = vld [vmem:[#allocation7 + $0x518] sm:$0xf]  ;;  %v6426_v53 = vor.u32 %v6977_v11, %v6425_v33  ;;  %v6900_v11 = vld [vmem:[#allocation7 + $0x450] sm:$0xf0] }
 0x2a2   :  { %4012 = vmatpush.bf16.msra.mxu2 %v6166_v2  ;;  %3953 = vmatmul.bf16.vlgmr.msrb.gmra.mxu1 %v7333_v15  ;;  %v5775_v2 = vld [vmem:[#allocation7 + $0x1ac] sm:$0xf0]  ;;  %v6026_v13 = vor.u32 %v6878_v0, %v6025_v63  ;;  %v6938_v0 = vld [vmem:[#allocation7 + $0x584] sm:$0xf]  ;;  %v6117_v33 = vld [vmem:[#allocation7 + $0x438] sm:$0xf] }
 0x2a3   :  { %3979 = vmatmul.bf16.vlgmr.msrb.gmra.mxu0 %v7335_v19  ;;  %4001 = vmatpush.bf16.msra.mxu1 %v5886_v7  ;;  %v6223_v7 = vld [vmem:[#allocation7 + $0x52c] sm:$0xf0] }
 0x2a4   :  { %4027 = vmatpush.bf16.msra.mxu0 %v6334_v5  ;;  %v6854_v5 = vld [vmem:[#allocation7 + $0x2e4] sm:$0xf] }
 0x2a5   :  { %3987 = vmatpush.bf16.msra.mxu3 %v5690_v14  ;;  %v5778_v14 = vor.u32 %v6812_v1, %v5775_v2  ;;  %v6279_v1 = vld [vmem:[#allocation7 + $0x59c] sm:$0xf0]  ;;  %v6114_v2 = vor.u32 %v6896_v58, %v6111_v29  ;;  %v6921_v29 = vld [vmem:[#allocation7 + $0x4f8] sm:$0xf0] }
 0x2a6   :  { %4013 = vmatpush.bf16.msra.mxu2 %v6138_v18  ;;  %v6226_v18 = vor.u32 %v6924_v42, %v6223_v7  ;;  %v5635_v42 = vld [vmem:[#allocation7 + $0x94] sm:$0xf0]  ;;  %v5834_v7 = vor.u32 %v6826_v61, %v5831_v62  ;;  %v6201_v58 = vld [vmem:[#allocation7 + $0x4e0] sm:$0xf]  ;;  %v5921_v61 = vld [vmem:[#allocation7 + $0x2b0] sm:$0xf] }
 0x2a7   :  { %4002 = vmatpush.bf16.msra.mxu1 %v5858_v48  ;;  %v5946_v48 = vor.u32 %v6854_v5, %v5943_v12  ;;  %v6819_v5 = vld [vmem:[#allocation7 + $0x1cc] sm:$0xf]  ;;  %v6282_v12 = vor.u32 %v6938_v0, %v6279_v1  ;;  %v6369_v0 = vld [vmem:[#allocation7 + $0x630] sm:$0xf] }
 0x2a8   :  { %4028 = vmatpush.bf16.msra.mxu0 %v6306_v23  ;;  %3940 = vmatmul.bf16.vlgmr.msrb.gmra.mxu3 %v7339_v3  ;;  %v6394_v23 = vor.u32 %v6966_v16, %v6391_v17  ;;  %v6251_v16 = vld [vmem:[#allocation7 + $0x564] sm:$0xf0]  ;;  %v6851_v62 = vld [vmem:[#allocation7 + $0x2c8] sm:$0xf0] }
 0x2a9   :  { %3966 = vmatmul.bf16.vlgmr.msrb.gmra.mxu2 %v7341_v44  ;;  %3988 = vmatpush.bf16.msra.mxu3 %v5662_v26  ;;  %v5750_v26 = vor.u32 %v6805_v57, %v5747_v21  ;;  %v6872_v57 = vld [vmem:[#allocation7 + $0x370] sm:$0xf0]  ;;  %v6453_v21 = vld [vmem:[#allocation7 + $0x6d8] sm:$0xf]  ;;  %v6963_v1 = vld [vmem:[#allocation7 + $0x648] sm:$0xf0] }
 0x2aa   :  { %4014 = vmatpush.bf16.msra.mxu2 %v6110_v9  ;;  %v6198_v9 = vor.u32 %v6917_v35, %v6195_v22  ;;  %v6984_v35 = vld [vmem:[#allocation7 + $0x6f0] sm:$0xf0]  ;;  %v6770_v22 = vld [vmem:[#allocation7 + $0x44] sm:$0xf] }
 0x2ab   :  { %4003 = vmatpush.bf16.msra.mxu1 %v5830_v32  ;;  %v5918_v32 = vor.u32 %v6847_v24, %v5915_v25  ;;  %v6882_v25 = vld [vmem:[#allocation7 + $0x3c4] sm:$0xf]  ;;  %v6454_v30 = vor.u32 %v6984_v35, %v6453_v21  ;;  %v6795_v21 = vld [vmem:[#allocation7 + $0x108] sm:$0xf0]  ;;  %v6145_v35 = vld [vmem:[#allocation7 + $0x470] sm:$0xf] }
 0x2ac   :  { %4029 = vmatpush.bf16.msra.mxu0 %v6278_v37  ;;  %v6840_v37 = vld [vmem:[#allocation7 + $0x274] sm:$0xf] }
 0x2ad   :  { %3989 = vmatpush.bf16.msra.mxu3 %v5634_v40  ;;  %v6335_v40 = vld [vmem:[#allocation7 + $0x60c] sm:$0xf0] }
 0x2ae   :  { %4015 = vmatpush.bf16.msra.mxu2 %v6082_v47  ;;  %v5890_v47 = vor.u32 %v6840_v37, %v5887_v38  ;;  %v6338_v39 = vor.u32 %v6952_v59, %v6335_v40  ;;  %v6763_v37 = vld [vmem:[#allocation7 + $0xc] sm:$0xf]  ;;  %v5579_v38 = vld [vmem:[#allocation7 + $0x24] sm:$0xf0]  ;;  %v5781_v40 = vld [vmem:[#allocation7 + $0x198] sm:$0xf] }
 0x2af   :  { %4004 = vmatpush.bf16.msra.mxu1 %v5802_v10  ;;  %v6833_v10 = vld [vmem:[#allocation7 + $0x23c] sm:$0xf]  ;;  %v6027_v59 = vld [vmem:[#allocation7 + $0x3a4] sm:$0xf0]  ;;  %v5582_v20 = vor.u32 %v6763_v37, %v5579_v38  ;;  %v6830_v38 = vld [vmem:[#allocation7 + $0x220] sm:$0xf0] }
 0x2b0   :  { %4030 = vmatpush.bf16.msra.mxu0 %v6250_v51  ;;  %v6945_v51 = vld [vmem:[#allocation7 + $0x5bc] sm:$0xf]  ;;  %v5862_v56 = vor.u32 %v6833_v10, %v5859_v49  ;;  %v6858_v10 = vld [vmem:[#allocation7 + $0x300] sm:$0xf0]  ;;  %v5837_v37 = vld [vmem:[#allocation7 + $0x208] sm:$0xf] }
 0x2b1   :  { %3990 = vmatpush.bf16.msra.mxu3 %v5606_v60  ;;  %v5663_v60 = vld [vmem:[#allocation7 + $0xcc] sm:$0xf0] }
 0x2b2   :  { %4016 = vmatpush.bf16.msra.mxu2 %v6054_v34  ;;  %4005 = vmatmul.bf16.vlgmr.msra.gmra.mxu1 %v7333_v15 }
 0x2b3   :  { %4049 = vmatpush.bf16.msrb.mxu1 %v6002_v52  ;;  %4031 = vmatmul.bf16.vlgmr.msra.gmra.mxu0 %v7335_v19  ;;  %v6307_v52 = vld [vmem:[#allocation7 + $0x5d4] sm:$0xf0] }
 0x2b4   :  { %4075 = vmatpush.bf16.msrb.mxu0 %v6450_v55  ;;  %v6784_v55 = vld [vmem:[#allocation7 + $0xb4] sm:$0xf]  ;;  %v6310_v34 = vor.u32 %v6945_v51, %v6307_v52  ;;  %v6397_v51 = vld [vmem:[#allocation7 + $0x668] sm:$0xf]  ;;  %v6970_v52 = vld [vmem:[#allocation7 + $0x680] sm:$0xf0] }
 0x2b5   :  { %3991 = vmatpush.bf16.msra.mxu3 %v5578_v41  ;;  %v5666_v63 = vor.u32 %v6784_v55, %v5663_v60  ;;  %v6083_v41 = vld [vmem:[#allocation7 + $0x414] sm:$0xf0]  ;;  %v5753_v55 = vld [vmem:[#allocation7 + $0x160] sm:$0xf]  ;;  %v6809_v60 = vld [vmem:[#allocation7 + $0x178] sm:$0xf0] }
 0x2b6   :  { %4017 = vmatpush.bf16.msra.mxu2 %v6026_v13  ;;  %v5803_v13 = vld [vmem:[#allocation7 + $0x1e4] sm:$0xf0] }
 0x2b7   :  { %4050 = vmatpush.bf16.msrb.mxu1 %v5974_v4  ;;  %v6777_v4 = vld [vmem:[#allocation7 + $0x7c] sm:$0xf]  ;;  %v5806_v24 = vor.u32 %v6819_v5, %v5803_v13  ;;  %v6370_v5 = vor.u32 %v6963_v1, %v6369_v0  ;;  %v6844_v13 = vld [vmem:[#allocation7 + $0x290] sm:$0xf0] }
 0x2b8   :  { %4076 = vmatpush.bf16.msrb.mxu0 %v6422_v8  ;;  %3992 = vmatmul.bf16.vlgmr.msra.gmra.mxu3 %v7339_v3  ;;  %v6889_v8 = vld [vmem:[#allocation7 + $0x3fc] sm:$0xf]  ;;  %v5638_v17 = vor.u32 %v6777_v4, %v5635_v42  ;;  %v5725_v4 = vld [vmem:[#allocation7 + $0x128] sm:$0xf]  ;;  %v6802_v42 = vld [vmem:[#allocation7 + $0x140] sm:$0xf0] }
 0x2b9   :  { %4036 = vmatpush.bf16.msrb.mxu3 %v5778_v14  ;;  %4018 = vmatmul.bf16.vlgmr.msra.gmra.mxu2 %v7341_v44  ;;  %v6931_v14 = vld [vmem:[#allocation7 + $0x54c] sm:$0xf] }
 0x2ba   :  { %4062 = vmatpush.bf16.msrb.mxu2 %v6226_v18  ;;  %v6005_v18 = vld [vmem:[#allocation7 + $0x358] sm:$0xf]  ;;  %v6254_v27 = vor.u32 %v6931_v14, %v6251_v16  ;;  %v5726_v14 = vor.u32 %v6802_v42, %v5725_v4 }
 0x2bb   :  { %4051 = vmatpush.bf16.msrb.mxu1 %v5946_v48  ;;  %v6086_v48 = vor.u32 %v6889_v8, %v6083_v41  ;;  %v6006_v28 = vor.u32 %v6872_v57, %v6005_v18  ;;  %v6173_v8 = vld [vmem:[#allocation7 + $0x4a8] sm:$0xf]  ;;  %v6914_v41 = vld [vmem:[#allocation7 + $0x4c0] sm:$0xf0]  ;;  %v6341_v16 = vld [vmem:[#allocation7 + $0x5f8] sm:$0xf] }
 0x2bc   :  { %4077 = vmatpush.bf16.msrb.mxu0 %v6394_v23  ;;  %v5607_v23 = vld [vmem:[#allocation7 + $0x5c] sm:$0xf0]  ;;  %v6174_v18 = vor.u32 %v6914_v41, %v6173_v8  ;;  %v5697_v57 = vld [vmem:[#allocation7 + $0xf0] sm:$0xf]  ;;  %v6974_v8 = vld [vmem:[#allocation7 + $0x6a4] sm:$0xf] }
 0x2bd   :  { %4037 = vmatpush.bf16.msrb.mxu3 %v5750_v26  ;;  %v6055_v26 = vld [vmem:[#allocation7 + $0x3dc] sm:$0xf0]  ;;  %v5610_v31 = vor.u32 %v6770_v22, %v5607_v23  ;;  %v6907_v22 = vld [vmem:[#allocation7 + $0x488] sm:$0xf0] }
 0x2be   :  { %4063 = vmatpush.bf16.msrb.mxu2 %v6198_v9  ;;  %v5977_v9 = vld [vmem:[#allocation7 + $0x320] sm:$0xf] }
 0x2bf   :  { %4052 = vmatpush.bf16.msrb.mxu1 %v5918_v32  ;;  %v6865_v32 = vld [vmem:[#allocation7 + $0x338] sm:$0xf0]  ;;  %v6427_v41 = vld [vmem:[#allocation7 + $0x6bc] sm:$0xf0] }
 0x2c0   :  { %4078 = vmatpush.bf16.msrb.mxu0 %v6366_v36  ;;  %v6058_v36 = vor.u32 %v6882_v25, %v6055_v26  ;;  %v5978_v45 = vor.u32 %v6865_v32, %v5977_v9  ;;  %v6837_v25 = vld [vmem:[#allocation7 + $0x258] sm:$0xf0]  ;;  %v5698_v26 = vor.u32 %v6795_v21, %v5697_v57  ;;  %v6146_v9 = vor.u32 %v6907_v22, %v6145_v35 }
 0x2c1   :  { %4038 = vmatpush.bf16.msrb.mxu3 %v5722_v6  ;;  %v6875_v6 = vld [vmem:[#allocation7 + $0x38c] sm:$0xf]  ;;  %v6925_v21 = vld [vmem:[#allocation7 + $0x51c] sm:$0xf]  ;;  %v6430_v35 = vor.u32 %v6974_v8, %v6427_v41  ;;  %v6119_v41 = vld [vmem:[#allocation7 + $0x454] sm:$0xf0] }
 0x2c2   :  { %4064 = vmatpush.bf16.msrb.mxu2 %v6170_v43  ;;  %v6816_v43 = vld [vmem:[#allocation7 + $0x1b0] sm:$0xf0]  ;;  %v6030_v49 = vor.u32 %v6875_v6, %v6027_v59  ;;  %v6285_v59 = vld [vmem:[#allocation7 + $0x588] sm:$0xf]  ;;  %v6897_v8 = vld [vmem:[#allocation7 + $0x43c] sm:$0xf] }
 0x2c3   :  { %4053 = vmatpush.bf16.msrb.mxu1 %v5890_v47  ;;  %v6928_v47 = vld [vmem:[#allocation7 + $0x530] sm:$0xf0] }
 0x2c4   :  { %4079 = vmatpush.bf16.msrb.mxu0 %v6338_v39  ;;  %v5949_v39 = vld [vmem:[#allocation7 + $0x2e8] sm:$0xf] }
 0x2c5   :  { %4039 = vmatpush.bf16.msrb.mxu3 %v5694_v50  ;;  %v5782_v50 = vor.u32 %v6816_v43, %v5781_v40  ;;  %v6942_v40 = vld [vmem:[#allocation7 + $0x5a0] sm:$0xf0]  ;;  %v6118_v43 = vor.u32 %v6900_v11, %v6117_v33  ;;  %v6203_v11 = vld [vmem:[#allocation7 + $0x4fc] sm:$0xf0] }
 0x2c6   :  { %4065 = vmatpush.bf16.msrb.mxu2 %v6142_v54  ;;  %v6230_v54 = vor.u32 %v6928_v47, %v6229_v46  ;;  %v6781_v46 = vld [vmem:[#allocation7 + $0x98] sm:$0xf0]  ;;  %v5838_v47 = vor.u32 %v6830_v38, %v5837_v37  ;;  %v6918_v33 = vld [vmem:[#allocation7 + $0x4e4] sm:$0xf]  ;;  %v6848_v37 = vld [vmem:[#allocation7 + $0x2b4] sm:$0xf] }
 0x2c7   :  { %4054 = vmatpush.bf16.msrb.mxu1 %v5862_v56  ;;  %v5950_v56 = vor.u32 %v6858_v10, %v5949_v39  ;;  %v5809_v39 = vld [vmem:[#allocation7 + $0x1d0] sm:$0xf]  ;;  %v6286_v10 = vor.u32 %v6942_v40, %v6285_v59  ;;  %v6960_v59 = vld [vmem:[#allocation7 + $0x634] sm:$0xf] }
 0x2c8   :  { %4080 = vmatpush.bf16.msrb.mxu0 %v6310_v34  ;;  %v6398_v34 = vor.u32 %v6970_v52, %v6397_v51  ;;  %v6935_v51 = vld [vmem:[#allocation7 + $0x568] sm:$0xf0]  ;;  %v5923_v38 = vld [vmem:[#allocation7 + $0x2cc] sm:$0xf0] }
 0x2c9   :  { %4040 = vmatpush.bf16.msrb.mxu3 %v5666_v63  ;;  %v5754_v63 = vor.u32 %v6809_v60, %v5753_v55  ;;  %v6007_v55 = vld [vmem:[#allocation7 + $0x374] sm:$0xf0]  ;;  %v6981_v60 = vld [vmem:[#allocation7 + $0x6dc] sm:$0xf]  ;;  %v6371_v40 = vld [vmem:[#allocation7 + $0x64c] sm:$0xf0] }
 0x2ca   :  { %4066 = vmatpush.bf16.msrb.mxu2 %v6114_v2  ;;  %v6202_v2 = vor.u32 %v6921_v29, %v6201_v58  ;;  %v6455_v58 = vld [vmem:[#allocation7 + $0x6f4] sm:$0xf0]  ;;  %v5613_v29 = vld [vmem:[#allocation7 + $0x48] sm:$0xf] }
 0x2cb   :  { %4055 = vmatpush.bf16.msrb.mxu1 %v5834_v7  ;;  %v5922_v7 = vor.u32 %v6851_v62, %v5921_v61  ;;  %v6061_v62 = vld [vmem:[#allocation7 + $0x3c8] sm:$0xf]  ;;  %v6458_v4 = vor.u32 %v6981_v60, %v6455_v58  ;;  %v5699_v60 = vld [vmem:[#allocation7 + $0x10c] sm:$0xf0]  ;;  %v6904_v58 = vld [vmem:[#allocation7 + $0x474] sm:$0xf] }
 0x2cc   :  { %4081 = vmatpush.bf16.msrb.mxu0 %v6282_v12  ;;  %v5893_v12 = vld [vmem:[#allocation7 + $0x278] sm:$0xf] }
 0x2cd   :  { %4041 = vmatpush.bf16.msrb.mxu3 %v5638_v17  ;;  %v6956_v17 = vld [vmem:[#allocation7 + $0x610] sm:$0xf0] }
 0x2ce   :  { %4067 = vmatpush.bf16.msrb.mxu2 %v6086_v48  ;;  %v5894_v48 = vor.u32 %v6844_v13, %v5893_v12  ;;  %v6342_v23 = vor.u32 %v6956_v17, %v6341_v16  ;;  %v5585_v12 = vld [vmem:[#allocation7 + $0x10] sm:$0xf]  ;;  %v6767_v13 = vld [vmem:[#allocation7 + $0x28] sm:$0xf0]  ;;  %v6813_v17 = vld [vmem:[#allocation7 + $0x19c] sm:$0xf] }
 0x2cf   :  { %4056 = vmatpush.bf16.msrb.mxu1 %v5806_v24  ;;  %v5865_v24 = vld [vmem:[#allocation7 + $0x240] sm:$0xf]  ;;  %v6879_v16 = vld [vmem:[#allocation7 + $0x3a8] sm:$0xf0]  ;;  %v5586_v22 = vor.u32 %v6767_v13, %v5585_v12  ;;  %v5839_v13 = vld [vmem:[#allocation7 + $0x224] sm:$0xf0] }
 0x2d0   :  { %4082 = vmatpush.bf16.msrb.mxu0 %v6254_v27  ;;  %v6313_v27 = vld [vmem:[#allocation7 + $0x5c0] sm:$0xf]  ;;  %v5866_v32 = vor.u32 %v6837_v25, %v5865_v24  ;;  %v5951_v24 = vld [vmem:[#allocation7 + $0x304] sm:$0xf0]  ;;  %v6827_v12 = vld [vmem:[#allocation7 + $0x20c] sm:$0xf] }
 0x2d1   :  { %4042 = vmatpush.bf16.msrb.mxu3 %v5610_v31  ;;  %v6788_v31 = vld [vmem:[#allocation7 + $0xd0] sm:$0xf0] }
 0x2d2   :  { %4068 = vmatpush.bf16.msrb.mxu2 %v6058_v36  ;;  %4057 = vmatmul.bf16.vlgmr.msrb.gmra.mxu1 %v7333_v15 }
 0x2d3   :  { %4101 = vmatpush.bf16.msra.mxu1 %v6006_v28  ;;  %4083 = vmatmul.bf16.vlgmr.msrb.gmra.mxu0 %v7335_v19  ;;  %v6949_v28 = vld [vmem:[#allocation7 + $0x5d8] sm:$0xf0] }
 0x2d4   :  { %4127 = vmatpush.bf16.msra.mxu0 %v6454_v30  ;;  %v5669_v30 = vld [vmem:[#allocation7 + $0xb8] sm:$0xf]  ;;  %v6314_v36 = vor.u32 %v6949_v28, %v6313_v27  ;;  %v6967_v27 = vld [vmem:[#allocation7 + $0x66c] sm:$0xf]  ;;  %v6399_v28 = vld [vmem:[#allocation7 + $0x684] sm:$0xf0] }
 0x2d5   :  { %4043 = vmatpush.bf16.msrb.mxu3 %v5582_v20  ;;  %v5670_v6 = vor.u32 %v6788_v31, %v5669_v30  ;;  %v6893_v20 = vld [vmem:[#allocation7 + $0x418] sm:$0xf0]  ;;  %v6806_v30 = vld [vmem:[#allocation7 + $0x164] sm:$0xf]  ;;  %v5755_v31 = vld [vmem:[#allocation7 + $0x17c] sm:$0xf0] }
 0x2d6   :  { %4069 = vmatpush.bf16.msrb.mxu2 %v6030_v49  ;;  %v6823_v49 = vld [vmem:[#allocation7 + $0x1e8] sm:$0xf0] }
 0x2d7   :  { %4102 = vmatpush.bf16.msra.mxu1 %v5978_v45  ;;  %v5641_v45 = vld [vmem:[#allocation7 + $0x80] sm:$0xf]  ;;  %v5810_v61 = vor.u32 %v6823_v49, %v5809_v39  ;;  %v6374_v39 = vor.u32 %v6960_v59, %v6371_v40  ;;  %v5895_v49 = vld [vmem:[#allocation7 + $0x294] sm:$0xf0] }
 0x2d8   :  { %4128 = vmatpush.bf16.msra.mxu0 %v6426_v53  ;;  %4044 = vmatmul.bf16.vlgmr.msrb.gmra.mxu3 %v7339_v3  ;;  %v6089_v53 = vld [vmem:[#allocation7 + $0x400] sm:$0xf]  ;;  %v5642_v52 = vor.u32 %v6781_v46, %v5641_v45  ;;  %v6799_v45 = vld [vmem:[#allocation7 + $0x12c] sm:$0xf]  ;;  %v5727_v46 = vld [vmem:[#allocation7 + $0x144] sm:$0xf0] }
 0x2d9   :  { %4088 = vmatpush.bf16.msra.mxu3 %v5782_v50  ;;  %4070 = vmatmul.bf16.vlgmr.msrb.gmra.mxu2 %v7341_v44  ;;  %v6257_v50 = vld [vmem:[#allocation7 + $0x550] sm:$0xf] }
 0x2da   :  { %4114 = vmatpush.bf16.msra.mxu2 %v6230_v54  ;;  %v6869_v54 = vld [vmem:[#allocation7 + $0x35c] sm:$0xf]  ;;  %v6258_v0 = vor.u32 %v6935_v51, %v6257_v50  ;;  %v5730_v50 = vor.u32 %v6799_v45, %v5727_v46 }
 0x2db   :  { %4103 = vmatpush.bf16.msra.mxu1 %v5950_v56  ;;  %v6090_v56 = vor.u32 %v6893_v20, %v6089_v53  ;;  %v6010_v1 = vor.u32 %v6869_v54, %v6007_v55  ;;  %v6911_v53 = vld [vmem:[#allocation7 + $0x4ac] sm:$0xf]  ;;  %v6175_v20 = vld [vmem:[#allocation7 + $0x4c4] sm:$0xf0]  ;;  %v6953_v51 = vld [vmem:[#allocation7 + $0x5fc] sm:$0xf] }
 0x2dc   :  { %4129 = vmatpush.bf16.msra.mxu0 %v6398_v34  ;;  %v6774_v34 = vld [vmem:[#allocation7 + $0x60] sm:$0xf0]  ;;  %v6178_v54 = vor.u32 %v6911_v53, %v6175_v20  ;;  %v6792_v55 = vld [vmem:[#allocation7 + $0xf4] sm:$0xf]  ;;  %v6433_v53 = vld [vmem:[#allocation7 + $0x6a8] sm:$0xf] }
 0x2dd   :  { %4089 = vmatpush.bf16.msra.mxu3 %v5754_v63  ;;  %v6886_v63 = vld [vmem:[#allocation7 + $0x3e0] sm:$0xf0]  ;;  %v5614_v42 = vor.u32 %v6774_v34, %v5613_v29  ;;  %v6147_v29 = vld [vmem:[#allocation7 + $0x48c] sm:$0xf0] }
 0x2de   :  { %4115 = vmatpush.bf16.msra.mxu2 %v6202_v2  ;;  %v6862_v2 = vld [vmem:[#allocation7 + $0x324] sm:$0xf] }
 0x2df   :  { %4104 = vmatpush.bf16.msra.mxu1 %v5922_v7  ;;  %v5979_v7 = vld [vmem:[#allocation7 + $0x33c] sm:$0xf0]  ;;  %v6978_v20 = vld [vmem:[#allocation7 + $0x6c0] sm:$0xf0] }
 0x2e0   :  { %4130 = vmatpush.bf16.msra.mxu0 %v6370_v5  ;;  %v6062_v5 = vor.u32 %v6886_v63, %v6061_v62  ;;  %v5982_v57 = vor.u32 %v6862_v2, %v5979_v7  ;;  %v5867_v62 = vld [vmem:[#allocation7 + $0x25c] sm:$0xf0]  ;;  %v5702_v63 = vor.u32 %v6792_v55, %v5699_v60  ;;  %v6150_v2 = vor.u32 %v6904_v58, %v6147_v29 }
 0x2e1   :  { %4090 = vmatpush.bf16.msra.mxu3 %v5726_v14  ;;  %v6033_v14 = vld [vmem:[#allocation7 + $0x390] sm:$0xf]  ;;  %v6237_v60 = vld [vmem:[#allocation7 + $0x520] sm:$0xf]  ;;  %v6434_v58 = vor.u32 %v6978_v20, %v6433_v53  ;;  %v6789_v20 = vld [vmem:[#allocation7 + $0xd8] sm:$0xf0] }
 0x2e2   :  { %4116 = vmatpush.bf16.msra.mxu2 %v6174_v18  ;;  %v5783_v18 = vld [vmem:[#allocation7 + $0x1b4] sm:$0xf0]  ;;  %v6034_v25 = vor.u32 %v6879_v16, %v6033_v14  ;;  %v6939_v16 = vld [vmem:[#allocation7 + $0x58c] sm:$0xf]  ;;  %v5677_v53 = vld [vmem:[#allocation7 + $0xc0] sm:$0xf] }
 0x2e3   :  { %4105 = vmatpush.bf16.msra.mxu1 %v5894_v48  ;;  %v6231_v48 = vld [vmem:[#allocation7 + $0x534] sm:$0xf0] }
 0x2e4   :  { %4131 = vmatpush.bf16.msra.mxu0 %v6342_v23  ;;  %v6855_v23 = vld [vmem:[#allocation7 + $0x2ec] sm:$0xf] }
 0x2e5   :  { %4091 = vmatpush.bf16.msra.mxu3 %v5698_v26  ;;  %v5786_v26 = vor.u32 %v6813_v17, %v5783_v18  ;;  %v6287_v17 = vld [vmem:[#allocation7 + $0x5a4] sm:$0xf0]  ;;  %v6122_v18 = vor.u32 %v6897_v8, %v6119_v41  ;;  %v6922_v41 = vld [vmem:[#allocation7 + $0x500] sm:$0xf0] }
 0x2e6   :  { %4117 = vmatpush.bf16.msra.mxu2 %v6146_v9  ;;  %v6234_v9 = vor.u32 %v6925_v21, %v6231_v48  ;;  %v5643_v21 = vld [vmem:[#allocation7 + $0x9c] sm:$0xf0]  ;;  %v5842_v48 = vor.u32 %v6827_v12, %v5839_v13  ;;  %v6209_v8 = vld [vmem:[#allocation7 + $0x4e8] sm:$0xf]  ;;  %v5929_v12 = vld [vmem:[#allocation7 + $0x2b8] sm:$0xf] }
 0x2e7   :  { %4106 = vmatpush.bf16.msra.mxu1 %v5866_v32  ;;  %v5954_v32 = vor.u32 %v6855_v23, %v5951_v24  ;;  %v6820_v23 = vld [vmem:[#allocation7 + $0x1d4] sm:$0xf]  ;;  %v6290_v24 = vor.u32 %v6939_v16, %v6287_v17  ;;  %v6377_v16 = vld [vmem:[#allocation7 + $0x638] sm:$0xf] }
 0x2e8   :  { %4132 = vmatpush.bf16.msra.mxu0 %v6314_v36  ;;  %v6402_v36 = vor.u32 %v6967_v27, %v6399_v28  ;;  %v6259_v27 = vld [vmem:[#allocation7 + $0x56c] sm:$0xf0]  ;;  %v6852_v13 = vld [vmem:[#allocation7 + $0x2d0] sm:$0xf0] }
 0x2e9   :  { %4092 = vmatpush.bf16.msra.mxu3 %v5670_v6  ;;  %v5758_v6 = vor.u32 %v6806_v30, %v5755_v31  ;;  %v6873_v30 = vld [vmem:[#allocation7 + $0x378] sm:$0xf0]  ;;  %v6461_v31 = vld [vmem:[#allocation7 + $0x6e0] sm:$0xf]  ;;  %v6964_v17 = vld [vmem:[#allocation7 + $0x650] sm:$0xf0] }
 0x2ea   :  { %4118 = vmatpush.bf16.msra.mxu2 %v6118_v43  ;;  %v6206_v43 = vor.u32 %v6918_v33, %v6203_v11  ;;  %v6985_v33 = vld [vmem:[#allocation7 + $0x6f8] sm:$0xf0]  ;;  %v6771_v11 = vld [vmem:[#allocation7 + $0x4c] sm:$0xf] }
 0x2eb   :  { %4107 = vmatpush.bf16.msra.mxu1 %v5838_v47  ;;  %v5926_v47 = vor.u32 %v6848_v37, %v5923_v38  ;;  %v6883_v38 = vld [vmem:[#allocation7 + $0x3cc] sm:$0xf]  ;;  %v6462_v45 = vor.u32 %v6985_v33, %v6461_v31  ;;  %v6796_v33 = vld [vmem:[#allocation7 + $0x110] sm:$0xf0] }
 0x2ec   :  { %4133 = vmatpush.bf16.msra.mxu0 %v6286_v10  ;;  %v6841_v10 = vld [vmem:[#allocation7 + $0x27c] sm:$0xf] }
 0x2ed   :  { %4093 = vmatpush.bf16.msra.mxu3 %v5642_v52  ;;  %v6343_v52 = vld [vmem:[#allocation7 + $0x614] sm:$0xf0] }
 0x2ee   :  { %4119 = vmatpush.bf16.msra.mxu2 %v6090_v56  ;;  %v5898_v56 = vor.u32 %v6841_v10, %v5895_v49  ;;  %v6346_v34 = vor.u32 %v6953_v51, %v6343_v52  ;;  %v6764_v10 = vld [vmem:[#allocation7 + $0x14] sm:$0xf]  ;;  %v5587_v49 = vld [vmem:[#allocation7 + $0x2c] sm:$0xf0]  ;;  %v5789_v52 = vld [vmem:[#allocation7 + $0x1a0] sm:$0xf] }
 0x2ef   :  { %4108 = vmatpush.bf16.msra.mxu1 %v5810_v61  ;;  %v6834_v61 = vld [vmem:[#allocation7 + $0x244] sm:$0xf]  ;;  %v6035_v51 = vld [vmem:[#allocation7 + $0x3ac] sm:$0xf0]  ;;  %v5590_v29 = vor.u32 %v6764_v10, %v5587_v49  ;;  %v6125_v49 = vld [vmem:[#allocation7 + $0x440] sm:$0xf] }
 0x2f0   :  { %4134 = vmatpush.bf16.msra.mxu0 %v6258_v0  ;;  %v6946_v0 = vld [vmem:[#allocation7 + $0x5c4] sm:$0xf]  ;;  %v5870_v7 = vor.u32 %v6834_v61, %v5867_v62  ;;  %v6859_v61 = vld [vmem:[#allocation7 + $0x308] sm:$0xf0] }
 0x2f1   :  { %4094 = vmatpush.bf16.msra.mxu3 %v5614_v42  ;;  %v5671_v42 = vld [vmem:[#allocation7 + $0xd4] sm:$0xf0] }
 0x2f2   :  { %4120 = vmatpush.bf16.msra.mxu2 %v6062_v5  ;;  %4109 = vmatmul.bf16.vlgmr.msra.gmra.mxu1 %v7333_v15 }
 0x2f3   :  { %4153 = vmatpush.bf16.msrb.mxu1 %v6010_v1  ;;  %4135 = vmatmul.bf16.vlgmr.msra.gmra.mxu0 %v7335_v19  ;;  %v6315_v1 = vld [vmem:[#allocation7 + $0x5dc] sm:$0xf0] }
 0x2f4   :  { %4179 = vmatpush.bf16.msrb.mxu0 %v6458_v4  ;;  %v6785_v4 = vld [vmem:[#allocation7 + $0xbc] sm:$0xf]  ;;  %v6318_v5 = vor.u32 %v6946_v0, %v6315_v1  ;;  %v6405_v0 = vld [vmem:[#allocation7 + $0x670] sm:$0xf]  ;;  %v6971_v1 = vld [vmem:[#allocation7 + $0x688] sm:$0xf0] }
 0x2f5   :  { %4095 = vmatpush.bf16.msra.mxu3 %v5586_v22  ;;  %v5674_v14 = vor.u32 %v6785_v4, %v5671_v42  ;;  %v6091_v22 = vld [vmem:[#allocation7 + $0x41c] sm:$0xf0]  ;;  %v5761_v4 = vld [vmem:[#allocation7 + $0x168] sm:$0xf]  ;;  %v6810_v42 = vld [vmem:[#allocation7 + $0x180] sm:$0xf0] }
 0x2f6   :  { %4121 = vmatpush.bf16.msra.mxu2 %v6034_v25  ;;  %v5811_v25 = vld [vmem:[#allocation7 + $0x1ec] sm:$0xf0] }
 0x2f7   :  { %4154 = vmatpush.bf16.msrb.mxu1 %v5982_v57  ;;  %v6778_v57 = vld [vmem:[#allocation7 + $0x84] sm:$0xf]  ;;  %v5814_v37 = vor.u32 %v6820_v23, %v5811_v25  ;;  %v6915_v23 = vld [vmem:[#allocation7 + $0x4c8] sm:$0xf0]  ;;  %v6378_v25 = vor.u32 %v6964_v17, %v6377_v16  ;;  %v5621_v17 = vld [vmem:[#allocation7 + $0x50] sm:$0xf] }
 0x2f8   :  { %4180 = vmatpush.bf16.msrb.mxu0 %v6430_v35  ;;  %4096 = vmatmul.bf16.vlgmr.msra.gmra.mxu3 %v7339_v3  ;;  %v6890_v35 = vld [vmem:[#allocation7 + $0x404] sm:$0xf]  ;;  %v5646_v28 = vor.u32 %v6778_v57, %v5643_v21  ;;  %v5733_v57 = vld [vmem:[#allocation7 + $0x130] sm:$0xf]  ;;  %v6803_v21 = vld [vmem:[#allocation7 + $0x148] sm:$0xf0] }
 0x2f9   :  { %4140 = vmatpush.bf16.msrb.mxu3 %v5786_v26  ;;  %4122 = vmatmul.bf16.vlgmr.msra.gmra.mxu2 %v7341_v44  ;;  %v6932_v26 = vld [vmem:[#allocation7 + $0x554] sm:$0xf] }
 0x2fa   :  { %4166 = vmatpush.bf16.msrb.mxu2 %v6234_v9  ;;  %v6013_v9 = vld [vmem:[#allocation7 + $0x360] sm:$0xf]  ;;  %v6262_v59 = vor.u32 %v6932_v26, %v6259_v27  ;;  %v6845_v27 = vld [vmem:[#allocation7 + $0x298] sm:$0xf0] }
 0x2fb   :  { %4155 = vmatpush.bf16.msrb.mxu1 %v5954_v32  ;;  %v6094_v32 = vor.u32 %v6890_v35, %v6091_v22  ;;  %v6014_v40 = vor.u32 %v6873_v30, %v6013_v9  ;;  %v5930_v35 = vor.u32 %v6852_v13, %v5929_v12  ;;  %v6181_v22 = vld [vmem:[#allocation7 + $0x4b0] sm:$0xf]  ;;  %v5901_v26 = vld [vmem:[#allocation7 + $0x280] sm:$0xf]  ;;  %v6957_v30 = vld [vmem:[#allocation7 + $0x618] sm:$0xf0] }
 0x2fc   :  { %4181 = vmatpush.bf16.msrb.mxu0 %v6402_v36  ;;  %v5615_v36 = vld [vmem:[#allocation7 + $0x64] sm:$0xf0]  ;;  %v6349_v9 = vld [vmem:[#allocation7 + $0x600] sm:$0xf]  ;;  %v6182_v31 = vor.u32 %v6915_v23, %v6181_v22  ;;  %v6265_v12 = vld [vmem:[#allocation7 + $0x558] sm:$0xf] }
 0x2fd   :  { %4141 = vmatpush.bf16.msrb.mxu3 %v5758_v6  ;;  %v6063_v6 = vld [vmem:[#allocation7 + $0x3e4] sm:$0xf0]  ;;  %v5618_v46 = vor.u32 %v6771_v11, %v5615_v36  ;;  %v5902_v11 = vor.u32 %v6845_v27, %v5901_v26  ;;  %v6153_v36 = vld [vmem:[#allocation7 + $0x478] sm:$0xf]  ;;  %v6936_v13 = vld [vmem:[#allocation7 + $0x570] sm:$0xf0] }
 0x2fe   :  { %4167 = vmatpush.bf16.msrb.mxu2 %v6206_v43  ;;  %v5985_v43 = vld [vmem:[#allocation7 + $0x328] sm:$0xf]  ;;  %v6887_v22 = vld [vmem:[#allocation7 + $0x3e8] sm:$0xf0]  ;;  %v6266_v26 = vor.u32 %v6936_v13, %v6265_v12 }
 0x2ff   :  { %4156 = vmatpush.bf16.msrb.mxu1 %v5926_v47  ;;  %v6866_v47 = vld [vmem:[#allocation7 + $0x340] sm:$0xf0] }
 0x300   :  { %4182 = vmatpush.bf16.msrb.mxu0 %v6374_v39  ;;  %v6066_v39 = vor.u32 %v6883_v38, %v6063_v6  ;;  %v5986_v55 = vor.u32 %v6866_v47, %v5985_v43  ;;  %v6350_v38 = vor.u32 %v6957_v30, %v6349_v9  ;;  %v5873_v6 = vld [vmem:[#allocation7 + $0x248] sm:$0xf]  ;;  %v6768_v30 = vld [vmem:[#allocation7 + $0x30] sm:$0xf0] }
 0x301   :  { %4142 = vmatpush.bf16.msrb.mxu3 %v5730_v50  ;;  %v6876_v50 = vld [vmem:[#allocation7 + $0x394] sm:$0xf]  ;;  %v6321_v43 = vld [vmem:[#allocation7 + $0x5c8] sm:$0xf] }
 0x302   :  { %4168 = vmatpush.bf16.msrb.mxu2 %v6178_v54  ;;  %v6817_v54 = vld [vmem:[#allocation7 + $0x1b8] sm:$0xf0]  ;;  %v6038_v62 = vor.u32 %v6876_v50, %v6035_v51 }
 0x303   :  { %4157 = vmatpush.bf16.msrb.mxu1 %v5898_v56  ;;  %v6929_v56 = vld [vmem:[#allocation7 + $0x538] sm:$0xf0] }
 0x304   :  { %4183 = vmatpush.bf16.msrb.mxu0 %v6346_v34  ;;  %v5957_v34 = vld [vmem:[#allocation7 + $0x2f0] sm:$0xf]  ;;  %v6901_v50 = vld [vmem:[#allocation7 + $0x458] sm:$0xf0] }
 0x305   :  { %4143 = vmatpush.bf16.msrb.mxu3 %v5702_v63  ;;  %v5790_v63 = vor.u32 %v6817_v54, %v5789_v52 }
 0x306   :  { %4169 = vmatpush.bf16.msrb.mxu2 %v6150_v2  ;;  %v6238_v2 = vor.u32 %v6929_v56, %v6237_v60  ;;  %v6831_v60 = vld [vmem:[#allocation7 + $0x228] sm:$0xf0]  ;;  %v5678_v56 = vor.u32 %v6789_v20, %v5677_v53 }
 0x307   :  { %4158 = vmatpush.bf16.msrb.mxu1 %v5870_v7  ;;  %v5958_v7 = vor.u32 %v6859_v61, %v5957_v34  ;;  %v6126_v34 = vor.u32 %v6901_v50, %v6125_v49  ;;  %v5649_v61 = vld [vmem:[#allocation7 + $0x88] sm:$0xf] }
 0x308   :  { %4184 = vmatpush.bf16.msrb.mxu0 %v6318_v5  ;;  %v6406_v5 = vor.u32 %v6971_v1, %v6405_v0  ;;  %v6097_v1 = vld [vmem:[#allocation7 + $0x408] sm:$0xf] }
 0x309   :  { %4144 = vmatpush.bf16.msrb.mxu3 %v5674_v14  ;;  %v5762_v14 = vor.u32 %v6810_v42, %v5761_v4 }
 0x30a   :  { %4170 = vmatpush.bf16.msrb.mxu2 %v6122_v18  ;;  %v6210_v18 = vor.u32 %v6922_v41, %v6209_v8  ;;  %v5817_v8 = vld [vmem:[#allocation7 + $0x1d8] sm:$0xf]  ;;  %v6824_v41 = vld [vmem:[#allocation7 + $0x1f0] sm:$0xf0] }
 0x30b   :  { %4159 = vmatpush.bf16.msrb.mxu1 %v5842_v48 }
 0x30c   :  { %4185 = vmatpush.bf16.msrb.mxu0 %v6290_v24 }
 0x30d   :  { %4145 = vmatpush.bf16.msrb.mxu3 %v5646_v28  ;;  %v5734_v28 = vor.u32 %v6803_v21, %v5733_v57  ;;  %v5818_v21 = vor.u32 %v6824_v41, %v5817_v8 }
 0x30e   :  { %4171 = vmatpush.bf16.msrb.mxu2 %v6094_v32  ;;  %v5705_v32 = vld [vmem:[#allocation7 + $0xf8] sm:$0xf] }
 0x30f   :  { %4160 = vmatpush.bf16.msrb.mxu1 %v5814_v37  ;;  %v7364_v48 = vpop.f32.mrf.mxu1  ;;  %v6908_v37 = vld [vmem:[#allocation7 + $0x490] sm:$0xf0] }
 0x310   :  { %4186 = vmatpush.bf16.msrb.mxu0 %v6262_v59  ;;  %v7367_v24 = vpop.f32.mrf.mxu0  ;;  %v6838_v59 = vld [vmem:[#allocation7 + $0x260] sm:$0xf0]  ;;  %v6154_v47 = vor.u32 %v6908_v37, %v6153_v36 }
 0x311   :  { %4146 = vmatpush.bf16.msrb.mxu3 %v5618_v46  ;;  %v7372_v46 = vld [vmem:[%s7417_s9] sm:$0xff]  ;;  %v5874_v10 = vor.u32 %v6838_v59, %v5873_v6 }
 0x312   :  { %4172 = vmatpush.bf16.msrb.mxu2 %v6066_v39  ;;  %4161 = vmatmul.bf16.vlgmr.msrb.gmra.mxu1 %v7333_v15  ;;  %v2714_v54 = vperm.slane %v7372_v46, 0  ;;  %v2715_v59 = vperm.slane %v7372_v46, 1 }
 0x313   :  { %4205 = vmatpush.bf16.msra.mxu1 %v6014_v40  ;;  %4187 = vmatmul.bf16.vlgmr.msrb.gmra.mxu0 %v7335_v19  ;;  %v5706_v40 = vor.u32 %v6796_v33, %v5705_v32  ;;  %v6041_v32 = vld [vmem:[#allocation7 + $0x398] sm:$0xf]  ;;  %v6880_v33 = vld [vmem:[#allocation7 + $0x3b0] sm:$0xf0] }
 0x314   :  { %4231 = vmatpush.bf16.msra.mxu0 %v6462_v45  ;;  %v6950_v45 = vld [vmem:[#allocation7 + $0x5e0] sm:$0xf0] }
 0x315   :  { %4147 = vmatpush.bf16.msrb.mxu3 %v5590_v29  ;;  %v6322_v52 = vor.u32 %v6950_v45, %v6321_v43  ;;  %v6943_v29 = vld [vmem:[#allocation7 + $0x5a8] sm:$0xf0] }
 0x316   :  { %4173 = vmatpush.bf16.msrb.mxu2 %v6038_v62  ;;  %v6782_v62 = vld [vmem:[#allocation7 + $0xa0] sm:$0xf0] }
 0x317   :  { %4206 = vmatpush.bf16.msra.mxu1 %v5986_v55  ;;  %v3904_v39 = vpop.f32.mrf.mxu1  ;;  %v5845_v55 = vld [vmem:[#allocation7 + $0x210] sm:$0xf] }
 0x318   :  { %4232 = vmatpush.bf16.msra.mxu0 %v6434_v58  ;;  %4148 = vmatmul.bf16.vlgmr.msrb.gmra.mxu3 %v7339_v3  ;;  %v3930_v51 = vpop.f32.mrf.mxu0  ;;  %v6293_v58 = vld [vmem:[#allocation7 + $0x590] sm:$0xf]  ;;  %v5846_v0 = vor.u32 %v6831_v60, %v5845_v55 }
 0x319   :  { %4192 = vmatpush.bf16.msra.mxu3 %v5790_v63  ;;  %4174 = vmatmul.bf16.vlgmr.msrb.gmra.mxu2 %v7341_v44 }
 0x31a   :  { %4218 = vmatpush.bf16.msra.mxu2 %v6238_v2  ;;  %v6894_v2 = vld [vmem:[#allocation7 + $0x420] sm:$0xf0] }
 0x31b   :  { %4207 = vmatpush.bf16.msra.mxu1 %v5958_v7  ;;  %v3889_v63 = vpop.f32.mrf.mxu3  ;;  %v6294_v7 = vor.u32 %v6943_v29, %v6293_v58  ;;  %v6098_v16 = vor.u32 %v6894_v2, %v6097_v1 }
 0x31c   :  { %4233 = vmatpush.bf16.msra.mxu0 %v6406_v5  ;;  %v3890_v4 = vadd.f32 %v3889_v63, %v2714_v54  ;;  %v3915_v42 = vpop.f32.mrf.mxu2  ;;  %v5650_v5 = vor.u32 %v6782_v62, %v5649_v61 }
 0x31d   :  { %4193 = vmatpush.bf16.msra.mxu3 %v5762_v14 }
 0x31e   :  { %4219 = vmatpush.bf16.msra.mxu2 %v6210_v18  ;;  %v3903_v14 = vadd.f32 %v7364_v48, %v3890_v4  ;;  %v6775_v18 = vld [vmem:[#allocation7 + $0x68] sm:$0xf0]  ;;  %v5593_v48 = vld [vmem:[#allocation7 + $0x18] sm:$0xf] }
 0x31f   :  { %4208 = vmatpush.bf16.msra.mxu1 %v5930_v35  ;;  %v3954_v57 = vpop.f32.mrf.mxu1  ;;  %v6069_v35 = vld [vmem:[#allocation7 + $0x3d0] sm:$0xf]  ;;  %v5622_v27 = vor.u32 %v6775_v18, %v5621_v17  ;;  %v5594_v37 = vor.u32 %v6768_v30, %v5593_v48 }
 0x320   :  { %4234 = vmatpush.bf16.msra.mxu0 %v6378_v25  ;;  %v3916_v23 = vadd.f32 %v3915_v42, %v3903_v14  ;;  %v3980_v25 = vpop.f32.mrf.mxu0  ;;  %v6070_v9 = vor.u32 %v6887_v22, %v6069_v35 }
 0x321   :  { %4194 = vmatpush.bf16.msra.mxu3 %v5734_v28 }
 0x322   :  { %4220 = vmatpush.bf16.msra.mxu2 %v6182_v31  ;;  %v3929_v28 = vadd.f32 %v7367_v24, %v3916_v23 }
 0x323   :  { %4209 = vmatpush.bf16.msra.mxu1 %v5902_v11  ;;  %v3891_v31 = vpop.f32.mrf.mxu3 }
 0x324   :  { %4235 = vmatpush.bf16.msra.mxu0 %v6350_v38  ;;  %v6463_v11 = vmul.f32 -1.442695, %v3929_v28  ;;  %v3917_v36 = vpop.f32.mrf.mxu2  ;;  %v6042_v38 = vor.u32 %v6880_v33, %v6041_v32  ;;  %v2717_v32 = vperm.slane %v7372_v46, 3 }
 0x325   :  { %4195 = vmatpush.bf16.msra.mxu3 %v5706_v40 }
 0x326   :  { %4221 = vmatpush.bf16.msra.mxu2 %v6154_v47  ;;  %6998 = vpow2.f32 %v6463_v11 }
 0x327   :  { %4210 = vmatpush.bf16.msra.mxu1 %v5874_v10  ;;  %v3956_v24 = vpop.f32.mrf.mxu1 }
 0x328   :  { %4236 = vmatpush.bf16.msra.mxu0 %v6322_v52  ;;  %v3982_v6 = vpop.f32.mrf.mxu0 }
 0x329   :  { %4196 = vmatpush.bf16.msra.mxu3 %v5678_v56 }
 0x32a   :  { %4222 = vmatpush.bf16.msra.mxu2 %v6126_v34 }
 0x32b   :  { %4211 = vmatpush.bf16.msra.mxu1 %v5846_v0  ;;  %v3941_v40 = vpop.f32.mrf.mxu3 }
 0x32c   :  { %4237 = vmatpush.bf16.msra.mxu0 %v6294_v7  ;;  %v6999_v43 = vpop.eup %6998  ;;  %v3942_v45 = vadd.f32 %v3941_v40, %v2715_v59  ;;  %v3967_v47 = vpop.f32.mrf.mxu2 }
 0x32d   :  { %4197 = vmatpush.bf16.msra.mxu3 %v5650_v5  ;;  %v4265_v53 = vadd.f32 1.0, %v6999_v43 }
 0x32e   :  { %4223 = vmatpush.bf16.msra.mxu2 %v6098_v16  ;;  %v3955_v20 = vadd.f32 %v3954_v57, %v3942_v45 }
 0x32f   :  { %4212 = vmatpush.bf16.msra.mxu1 %v5818_v21  ;;  %7000 = vrcp.f32 %v4265_v53  ;;  %v4283_v58 = vand.u32 2147483648, %v4265_v53  ;;  %vm4277_vm2 = vweird.f32 %v4265_v53 }
 0x330   :  { %4238 = vmatpush.bf16.msra.mxu0 %v6266_v26  ;;  %v3968_v39 = vadd.f32 %v3967_v47, %v3955_v20 }
 0x331   :  { %4198 = vmatpush.bf16.msra.mxu3 %v5622_v27  ;;  %v4284_v1 = vor.u32 1.1754944e-38, %v4283_v58 }
 0x332   :  { %4224 = vmatpush.bf16.msra.mxu2 %v6070_v9  ;;  %4213 = vmatmul.bf16.vlgmr.msra.gmra.mxu1 %v7333_v15  ;;  %v4006_v15 = vpop.f32.mrf.mxu1  ;;  %v3981_v10 = vadd.f32 %v3980_v25, %v3968_v39 }
 0x333   :  { %4239 = vmatmul.bf16.vlgmr.msra.gmra.mxu0 %v7335_v19  ;;  %v4032_v19 = vpop.f32.mrf.mxu0  ;;  %v3943_v49 = vpop.f32.mrf.mxu3 }
 0x334   :  { %v6464_v50 = vmul.f32 -1.442695, %v3981_v10  ;;  %v3969_v51 = vpop.f32.mrf.mxu2 }
 0x335   :  { %4199 = vmatpush.bf16.msra.mxu3 %v5594_v37  ;;  %v7001_v52 = vpop.eup %7000 }
 0x336   :  { %4225 = vmatpush.bf16.msra.mxu2 %v6042_v38  ;;  %v4273_v54 = vmul.f32 %v7001_v52, %v4265_v53  ;;  %7002 = vpow2.f32 %v6464_v50  ;;  %vm4278_vm1 = vweird.f32 %v7001_v52 }
 0x337   :  { %vm4279_vm3 = vmor %vm4277_vm2, %vm4278_vm1 }
 0x338   :  { %4200 = vmatmul.bf16.vlgmr.msra.gmra.mxu3 %v7339_v3  ;;  %v4274_v60 = vsub.f32 1.0, %v4273_v54  ;;  %v2716_v3 = vperm.slane %v7372_v46, 2 }
 0x339   :  { %4226 = vmatmul.bf16.vlgmr.msra.gmra.mxu2 %v7341_v44  ;;  %v4281_v44 = vand.u32 2147483647, %v4265_v53 }
 0x33a   :  { %v4008_v55 = vpop.f32.mrf.mxu1  ;;  %v4275_v29 = vmul.f32 %v7001_v52, %v4274_v60 }
 0x33b   :  { %v4034_v56 = vpop.f32.mrf.mxu0  ;;  %v3993_v34 = vpop.f32.mrf.mxu3  ;;  %vm4282_vm4 = vcmp.eq.f32.partialorder %v4281_v44, 8.507059e+37 }
 0x33c   :  { %v7003_v61 = vpop.eup %7002  ;;  %v4276_v62 = vadd.f32 %v7001_v52, %v4275_v29  ;;  %v3994_v63 = vadd.f32 %v3993_v34, %v2716_v3  ;;  %v4019_v0 = vpop.f32.mrf.mxu2  ;;  %v2718_v56 = vperm.slane %v7372_v46, 4 }
 0x33d   :  { %v4266_v2 = vadd.f32 1.0, %v7003_v61 }
 0x33e   :  { %v4280_v4 = vsel %vm4279_vm3, %v7001_v52, %v4276_v62  ;;  %v4007_v42 = vadd.f32 %v4006_v15, %v3994_v63 }
 0x33f   :  { %v4285_v7 = vsel %vm4282_vm4, %v4284_v1, %v4280_v4  ;;  %7004 = vrcp.f32 %v4266_v2  ;;  %v4298_v18 = vand.u32 2147483648, %v4266_v2  ;;  %v4296_v21 = vand.u32 2147483647, %v4266_v2 }
 0x340   :  { %4377 = vst [vmem:[%s7418_s10] sm:$0xff] %v4285_v7  ;;  %v4020_v8 = vadd.f32 %v4019_v0, %v4007_v42  ;;  %vm4292_vm6 = vweird.f32 %v4266_v2 }
 0x341   :  { %v4299_v25 = vor.u32 1.1754944e-38, %v4298_v18  ;;  %vm4297_vm8 = vcmp.eq.f32.partialorder %v4296_v21, 8.507059e+37 }
 0x342   :  { %v4033_v41 = vadd.f32 %v4032_v19, %v4020_v8 }
 0x343   :  { %v3995_v5 = vpop.f32.mrf.mxu3 }
 0x344   :  { %v6465_v12 = vmul.f32 -1.442695, %v4033_v41  ;;  %v4021_v13 = vpop.f32.mrf.mxu2 }
 0x345   :  { %v7005_v14 = vpop.eup %7004 }
 0x346   :  { %v4288_v16 = vmul.f32 %v7005_v14, %v4266_v2  ;;  %7006 = vpow2.f32 %v6465_v12  ;;  %vm4293_vm5 = vweird.f32 %v7005_v14 }
 0x347   :  { %vm4294_vm7 = vmor %vm4292_vm6, %vm4293_vm5 }
 0x348   :  { %v4289_v17 = vsub.f32 1.0, %v4288_v16 }
 0x34a   :  { %v4290_v57 = vmul.f32 %v7005_v14, %v4289_v17 }
 0x34c   :  { %v7007_v35 = vpop.eup %7006  ;;  %v4291_v22 = vadd.f32 %v7005_v14, %v4290_v57 }
 0x34d   :  { %v4267_v26 = vadd.f32 1.0, %v7007_v35  ;;  %v2719_v35 = vperm.slane %v7372_v46, 5 }
 0x34e   :  { %v4295_v28 = vsel %vm4294_vm7, %v7005_v14, %v4291_v22 }
 0x34f   :  { %v4058_v23 = vpop.f32.mrf.mxu1  ;;  %v4300_v9 = vsel %vm4297_vm8, %v4299_v25, %v4295_v28  ;;  %7008 = vrcp.f32 %v4267_v26  ;;  %v4313_v37 = vand.u32 2147483648, %v4267_v26  ;;  %v4311_v59 = vand.u32 2147483647, %v4267_v26 }
 0x350   :  { %v4084_v27 = vpop.f32.mrf.mxu0  ;;  %4378 = vst [vmem:[%s7418_s10 + $0x8] sm:$0xff] %v4300_v9  ;;  %vm4307_vm10 = vweird.f32 %v4267_v26 }
 0x351   :  { %v4314_v45 = vor.u32 1.1754944e-38, %v4313_v37  ;;  %vm4312_vm12 = vcmp.eq.f32.partialorder %v4311_v59, 8.507059e+37 }
 0x355   :  { %v7009_v30 = vpop.eup %7008 }
 0x356   :  { %v4303_v33 = vmul.f32 %v7009_v30, %v4267_v26  ;;  %vm4308_vm9 = vweird.f32 %v7009_v30 }
 0x357   :  { %v4060_v48 = vpop.f32.mrf.mxu1  ;;  %vm4309_vm11 = vmor %vm4307_vm10, %vm4308_vm9 }
 0x358   :  { %v4086_v31 = vpop.f32.mrf.mxu0  ;;  %v4304_v11 = vsub.f32 1.0, %v4303_v33 }
 0x35a   :  { %v4305_v6 = vmul.f32 %v7009_v30, %v4304_v11 }
 0x35b   :  { %v4045_v36 = vpop.f32.mrf.mxu3 }
 0x35c   :  { %v4046_v38 = vadd.f32 %v4045_v36, %v2717_v32  ;;  %v4071_v24 = vpop.f32.mrf.mxu2  ;;  %v4306_v43 = vadd.f32 %v7009_v30, %v4305_v6 }
 0x35e   :  { %v4059_v40 = vadd.f32 %v4058_v23, %v4046_v38  ;;  %v4310_v53 = vsel %vm4309_vm11, %v7009_v30, %v4306_v43 }
 0x35f   :  { %v4315_v20 = vsel %vm4312_vm12, %v4314_v45, %v4310_v53 }
 0x360   :  { %v4072_v47 = vadd.f32 %v4071_v24, %v4059_v40  ;;  %4379 = vst [vmem:[%s7418_s10 + $0x10] sm:$0xff] %v4315_v20 }
 0x362   :  { %v4085_v15 = vadd.f32 %v4084_v27, %v4072_v47 }
 0x363   :  { %v4047_v39 = vpop.f32.mrf.mxu3 }
 0x364   :  { %v6466_v19 = vmul.f32 -1.442695, %v4085_v15  ;;  %v4073_v10 = vpop.f32.mrf.mxu2  ;;  %v2720_v15 = vperm.slane %v7372_v46, 6 }
 0x366   :  { %7010 = vpow2.f32 %v6466_v19 }
 0x36c   :  { %v7011_v49 = vpop.eup %7010 }
 0x36d   :  { %v4268_v51 = vadd.f32 1.0, %v7011_v49 }
 0x36f   :  { %v4110_v50 = vpop.f32.mrf.mxu1  ;;  %7012 = vrcp.f32 %v4268_v51  ;;  %v4328_v44 = vand.u32 2147483648, %v4268_v51  ;;  %v4326_v63 = vand.u32 2147483647, %v4268_v51  ;;  %vm4322_vm14 = vweird.f32 %v4268_v51 }
 0x370   :  { %v4136_v52 = vpop.f32.mrf.mxu0 }
 0x371   :  { %v4329_v2 = vor.u32 1.1754944e-38, %v4328_v44  ;;  %vm4327_vm0 = vcmp.eq.f32.partialorder %v4326_v63, 8.507059e+37 }
 0x375   :  { %v7013_v55 = vpop.eup %7012 }
 0x376   :  { %v4318_v3 = vmul.f32 %v7013_v55, %v4268_v51  ;;  %vm4323_vm13 = vweird.f32 %v7013_v55 }
 0x377   :  { %v4112_v54 = vpop.f32.mrf.mxu1  ;;  %vm4324_vm15 = vmor %vm4322_vm14, %vm4323_vm13 }
 0x378   :  { %v4138_v60 = vpop.f32.mrf.mxu0  ;;  %v4319_v58 = vsub.f32 1.0, %v4318_v3 }
 0x37a   :  { %v4320_v62 = vmul.f32 %v7013_v55, %v4319_v58 }
 0x37b   :  { %v4097_v29 = vpop.f32.mrf.mxu3 }
 0x37c   :  { %v4098_v34 = vadd.f32 %v4097_v29, %v2718_v56  ;;  %v4123_v61 = vpop.f32.mrf.mxu2  ;;  %v4321_v1 = vadd.f32 %v7013_v55, %v4320_v62 }
 0x37e   :  { %v4111_v0 = vadd.f32 %v4110_v50, %v4098_v34  ;;  %v4325_v42 = vsel %vm4324_vm15, %v7013_v55, %v4321_v1 }
 0x37f   :  { %v4330_v7 = vsel %vm4327_vm0, %v4329_v2, %v4325_v42 }
 0x380   :  { %v4124_v4 = vadd.f32 %v4123_v61, %v4111_v0  ;;  %4380 = vst [vmem:[%s7418_s10 + $0x18] sm:$0xff] %v4330_v7 }
 0x382   :  { %v4137_v8 = vadd.f32 %v4136_v52, %v4124_v4 }
 0x383   :  { %v4099_v41 = vpop.f32.mrf.mxu3 }
 0x384   :  { %v6467_v5 = vmul.f32 -1.442695, %v4137_v8  ;;  %v4125_v12 = vpop.f32.mrf.mxu2 }
 0x386   :  { %7014 = vpow2.f32 %v6467_v5 }
 0x38c   :  { %v7015_v13 = vpop.eup %7014 }
 0x38d   :  { %v4269_v16 = vadd.f32 1.0, %v7015_v13 }
 0x38f   :  { %v4162_v14 = vpop.f32.mrf.mxu1  ;;  %7016 = vrcp.f32 %v4269_v16  ;;  %v4343_v26 = vand.u32 2147483648, %v4269_v16  ;;  %v4341_v48 = vand.u32 2147483647, %v4269_v16  ;;  %vm4337_vm2 = vweird.f32 %v4269_v16 }
 0x390   :  { %v4188_v17 = vpop.f32.mrf.mxu0 }
 0x391   :  { %v4344_v32 = vor.u32 1.1754944e-38, %v4343_v26  ;;  %vm4342_vm4 = vcmp.eq.f32.partialorder %v4341_v48, 8.507059e+37 }
 0x395   :  { %v7017_v57 = vpop.eup %7016 }
 0x396   :  { %v4333_v22 = vmul.f32 %v7017_v57, %v4269_v16  ;;  %vm4338_vm1 = vweird.f32 %v7017_v57 }
 0x397   :  { %v4164_v18 = vpop.f32.mrf.mxu1  ;;  %vm4339_vm3 = vmor %vm4337_vm2, %vm4338_vm1 }
 0x398   :  { %v4190_v21 = vpop.f32.mrf.mxu0  ;;  %v4334_v23 = vsub.f32 1.0, %v4333_v22 }
 0x39a   :  { %v4335_v9 = vmul.f32 %v7017_v57, %v4334_v23 }
 0x39b   :  { %v4149_v25 = vpop.f32.mrf.mxu3 }
 0x39c   :  { %v4150_v27 = vadd.f32 %v4149_v25, %v2719_v35  ;;  %v4175_v28 = vpop.f32.mrf.mxu2  ;;  %v4336_v31 = vadd.f32 %v7017_v57, %v4335_v9 }
 0x39e   :  { %v4163_v30 = vadd.f32 %v4162_v14, %v4150_v27  ;;  %v4340_v11 = vsel %vm4339_vm3, %v7017_v57, %v4336_v31 }
 0x39f   :  { %v4345_v36 = vsel %vm4342_vm4, %v4344_v32, %v4340_v11 }
 0x3a0   :  { %v4176_v33 = vadd.f32 %v4175_v28, %v4163_v30  ;;  %4381 = vst [vmem:[%s7418_s10 + $0x20] sm:$0xff] %v4345_v36 }
 0x3a2   :  { %v4189_v37 = vadd.f32 %v4188_v17, %v4176_v33 }
 0x3a3   :  { %v4151_v38 = vpop.f32.mrf.mxu3 }
 0x3a4   :  { %v6468_v24 = vmul.f32 -1.442695, %v4189_v37  ;;  %v4177_v6 = vpop.f32.mrf.mxu2 }
 0x3a6   :  { %7018 = vpow2.f32 %v6468_v24 }
 0x3ac   :  { %v7019_v59 = vpop.eup %7018 }
 0x3ad   :  { %v4270_v43 = vadd.f32 1.0, %v7019_v59 }
 0x3af   :  { %v4214_v40 = vpop.f32.mrf.mxu1  ;;  %7020 = vrcp.f32 %v4270_v43  ;;  %v4358_v49 = vand.u32 2147483648, %v4270_v43  ;;  %v4356_v54 = vand.u32 2147483647, %v4270_v43  ;;  %vm4352_vm6 = vweird.f32 %v4270_v43 }
 0x3b0   :  { %v4240_v45 = vpop.f32.mrf.mxu0 }
 0x3b1   :  { %v4359_v56 = vor.u32 1.1754944e-38, %v4358_v49  ;;  %vm4357_vm8 = vcmp.eq.f32.partialorder %v4356_v54, 8.507059e+37 }
 0x3b5   :  { %v7021_v53 = vpop.eup %7020 }
 0x3b6   :  { %v4348_v39 = vmul.f32 %v7021_v53, %v4270_v43  ;;  %vm4353_vm5 = vweird.f32 %v7021_v53 }
 0x3b7   :  { %v4216_v47 = vpop.f32.mrf.mxu1  ;;  %vm4354_vm7 = vmor %vm4352_vm6, %vm4353_vm5 }
 0x3b8   :  { %v4242_v20 = vpop.f32.mrf.mxu0  ;;  %v4349_v19 = vsub.f32 1.0, %v4348_v39 }
 0x3ba   :  { %v4350_v52 = vmul.f32 %v7021_v53, %v4349_v19 }
 0x3bb   :  { %v4201_v10 = vpop.f32.mrf.mxu3 }
 0x3bc   :  { %v4202_v50 = vadd.f32 %v4201_v10, %v2720_v15  ;;  %v4227_v51 = vpop.f32.mrf.mxu2  ;;  %v4351_v60 = vadd.f32 %v7021_v53, %v4350_v52 }
 0x3be   :  { %v4215_v55 = vadd.f32 %v4214_v40, %v4202_v50  ;;  %v4355_v58 = vsel %vm4354_vm7, %v7021_v53, %v4351_v60 }
 0x3bf   :  { %v4360_v29 = vsel %vm4357_vm8, %v4359_v56, %v4355_v58 }
 0x3c0   :  { %v4228_v3 = vadd.f32 %v4227_v51, %v4215_v55  ;;  %4382 = vst [vmem:[%s7418_s10 + $0x28] sm:$0xff] %v4360_v29 }
 0x3c2   :  { %v4241_v44 = vadd.f32 %v4240_v45, %v4228_v3 }
 0x3c3   :  { %v4203_v46 = vpop.f32.mrf.mxu3 }
 0x3c4   :  { %v6469_v34 = vmul.f32 -1.442695, %v4241_v44  ;;  %v4229_v61 = vpop.f32.mrf.mxu2 }
 0x3c6   :  { %7022 = vpow2.f32 %v6469_v34 }
 0x3cc   :  { %v7023_v62 = vpop.eup %7022 }
 0x3cd   :  { %v4271_v63 = vadd.f32 1.0, %v7023_v62 }
 0x3cf   :  { %7024 = vrcp.f32 %v4271_v63  ;;  %v4373_v4 = vand.u32 2147483648, %v4271_v63  ;;  %v4371_v7 = vand.u32 2147483647, %v4271_v63  ;;  %vm4367_vm10 = vweird.f32 %v4271_v63 }
 0x3d1   :  { %v4374_v41 = vor.u32 1.1754944e-38, %v4373_v4  ;;  %vm4372_vm12 = vcmp.eq.f32.partialorder %v4371_v7, 8.507059e+37 }
 0x3d5   :  { %v7025_v0 = vpop.eup %7024 }
 0x3d6   :  { %v4363_v1 = vmul.f32 %v7025_v0, %v4271_v63  ;;  %vm4368_vm9 = vweird.f32 %v7025_v0 }
 0x3d7   :  { %vm4369_vm11 = vmor %vm4367_vm10, %vm4368_vm9 }
 0x3d8   :  { %v4364_v2 = vsub.f32 1.0, %v4363_v1 }
 0x3da   :  { %v4365_v42 = vmul.f32 %v7025_v0, %v4364_v2 }
 0x3dc   :  { %v4366_v8 = vadd.f32 %v7025_v0, %v4365_v42 }
 0x3de   :  { %v4370_v5 = vsel %vm4369_vm11, %v7025_v0, %v4366_v8 }
 0x3df   :  { %v4375_v12 = vsel %vm4372_vm12, %v4374_v41, %v4370_v5 }
 0x3e0   :  { %4383 = vst [vmem:[%s7418_s10 + $0x30] sm:$0xff] %v4375_v12 }
 0x3e1   :  { %4392 = vsyncpa [#allocation3], 1 }
 0x3e2   :  { %4393 = vsyncpa [#allocation5], 1 }
 0x3e3   :  { %4394 = vsyncpa [#allocation8], 1 }

</bundles_post_ra>
